<compile_context>
chip_gen: v7x
topology: tpu7x:2x2x1
jax: 0.10.0
libtpu: 0.0.40
codegen_flags: <defaults>
</compile_context>

<pallas_src>
import functools
import math

import jax
import jax.numpy as jnp
from jax.experimental import pallas as pl
from jax.experimental.pallas import tpu as pltpu


# ----------------------------------------------------------------------------
# In-kernel helpers (traced inline inside the Pallas kernel)
# ----------------------------------------------------------------------------

def _layer_norm(x, g, b, eps=1e-5):
    # x: (S, D); g, b: (D,)
    mean = jnp.mean(x, axis=-1, keepdims=True)
    xc = x - mean
    var = jnp.mean(xc * xc, axis=-1, keepdims=True)
    return xc * jax.lax.rsqrt(var + eps) * g + b


def _attend(q, k, v, scale):
    # q, k, v: (G, T, hd) -> (G, T, hd); softmax over the key axis.
    s = jnp.einsum("gqd,gkd->gqk", q, k,
                   preferred_element_type=jnp.float32) * scale
    s = s - jnp.max(s, axis=-1, keepdims=True)
    p = jnp.exp(s)
    p = p * pl.reciprocal(jnp.sum(p, axis=-1, keepdims=True), approx=True)
    return jnp.einsum("gqk,gkd->gqd", p, v, preferred_element_type=jnp.float32)


def _mha(y, w_in_ref, b_in_ref, w_out_ref, b_out_ref, *, num_heads, groups):
    # y: (S, D).  The S rows form `groups` independent, CONTIGUOUS sequences
    # of length S // groups (groups == 1 -> global self-attention).
    S, D = y.shape
    H = num_heads
    hd = D // H
    T = S // groups
    scale = 1.0 / math.sqrt(hd)

    # Fused QKV projection: one (S, D) x (D, 3D) MXU matmul.
    qkv = jnp.dot(y, w_in_ref[...], preferred_element_type=jnp.float32) + b_in_ref[0]
    qkv = qkv.reshape(groups, T, 3 * D)          # leading-dim split only (tile aligned)

    heads = []
    for h in range(H):                           # H is small & static
        q = qkv[:, :, h * hd:(h + 1) * hd]
        k = qkv[:, :, D + h * hd:D + (h + 1) * hd]
        v = qkv[:, :, 2 * D + h * hd:2 * D + (h + 1) * hd]
        heads.append(_attend(q, k, v, scale).reshape(S, hd))
    attn = jnp.concatenate(heads, axis=-1)       # (S, D)

    return jnp.dot(attn, w_out_ref[...],
                   preferred_element_type=jnp.float32) + b_out_ref[0]


# ----------------------------------------------------------------------------
# Fused encoder-layer kernel (one grid step = one batch element)
# ----------------------------------------------------------------------------

def _encoder_layer_kernel(x_ref,
                          ln1g_ref, ln1b_ref, ln2g_ref, ln2b_ref,
                          ln3g_ref, ln3b_ref,
                          wt_in_ref, bt_in_ref, wt_out_ref, bt_out_ref,
                          wg_in_ref, bg_in_ref, wg_out_ref, bg_out_ref,
                          w1_ref, b1_ref, w2_ref, b2_ref,
                          o_ref, *, num_heads, n_keypoints):
    x = x_ref[0].astype(jnp.float32)             # (S, D), keypoint-major rows

    # --- temporal attention over each keypoint track (+ residual) ---
    y = _layer_norm(x, ln1g_ref[0], ln1b_ref[0])
    x = x + _mha(y, wt_in_ref, bt_in_ref, wt_out_ref, bt_out_ref,
                 num_heads=num_heads, groups=n_keypoints)

    # --- global attention over the full sequence (+ residual) ---
    y = _layer_norm(x, ln2g_ref[0], ln2b_ref[0])
    x = x + _mha(y, wg_in_ref, bg_in_ref, wg_out_ref, bg_out_ref,
                 num_heads=num_heads, groups=1)

    # --- feed-forward (relu) (+ residual) ---
    y = _layer_norm(x, ln3g_ref[0], ln3b_ref[0])
    h = jnp.dot(y, w1_ref[...], preferred_element_type=jnp.float32) + b1_ref[0]
    h = jnp.maximum(h, 0.0)
    x = x + jnp.dot(h, w2_ref[...], preferred_element_type=jnp.float32) + b2_ref[0]

    o_ref[0] = x.astype(o_ref.dtype)


# ----------------------------------------------------------------------------
# Wrapper: one pallas_call + the two boundary permutations
# ----------------------------------------------------------------------------

def customized_encoder_layer(x, params, *, num_heads, n_keypoints,
                             key_padding_mask=None):
    assert key_padding_mask is None  # TODO(synk): masked softmax not implemented
    B, S, D = x.shape
    KP = n_keypoints
    L = S // KP

    # 'b (l kp) d -> b (kp l) d' : keypoint-major sequence layout.  The whole
    # layer is permutation-equivariant over the sequence axis except for the
    # temporal grouping, which becomes contiguous row blocks in this layout.
    xp = x.reshape(B, L, KP, D).transpose(0, 2, 1, 3).reshape(B, S, D)

    t, g, f = params["mha_t"], params["mha_g"], params["ffn"]
    flat = (
        params["ln1_g"], params["ln1_b"],
        params["ln2_g"], params["ln2_b"],
        params["ln3_g"], params["ln3_b"],
        t["w_in_t"], t["b_in"], t["w_out_t"], t["b_out"],
        g["w_in_t"], g["b_in"], g["w_out_t"], g["b_out"],
        f["w1_t"], f["b1"], f["w2_t"], f["b2"],
    )

    kernel = functools.partial(_encoder_layer_kernel,
                               num_heads=num_heads, n_keypoints=KP)
    out_p = pl.pallas_call(
        kernel,
        out_shape=jax.ShapeDtypeStruct((B, S, D), x.dtype),
        grid=(B,),
        in_specs=[pl.BlockSpec((1, S, D), lambda i: (i, 0, 0))]
                 + [pl.BlockSpec(p.shape, lambda i: (0, 0)) for p in flat],
        out_specs=pl.BlockSpec((1, S, D), lambda i: (i, 0, 0)),
        compiler_params=pltpu.CompilerParams(
            dimension_semantics=("parallel",)),
    )(xp, *flat)

    # inverse permutation: 'b (kp l) d -> b (l kp) d'
    return out_p.reshape(B, KP, L, D).transpose(0, 2, 1, 3).reshape(B, S, D)


# ----------------------------------------------------------------------------
# Parameter init (deterministic, shapes match the PyTorch module, eval mode)
# ----------------------------------------------------------------------------

def _init_mha_params(key, d_model):
    k1, k2 = jax.random.split(key)
    # nn.MultiheadAttention: in_proj_weight (3D, D), in_proj_bias zeros,
    # out_proj.weight (D, D), out_proj.bias zeros.
    in_proj_w = jax.random.normal(k1, (3 * d_model, d_model), jnp.float32) * 0.05
    out_w = jax.random.normal(k2, (d_model, d_model), jnp.float32) * 0.05
    return {
        "w_in_t": in_proj_w.T,                            # (D, 3D): y @ w -> [q|k|v]
        "b_in": jnp.zeros((1, 3 * d_model), jnp.float32),
        "w_out_t": out_w.T,                               # (D, D)
        "b_out": jnp.zeros((1, d_model), jnp.float32),
    }


def init_encoder_params(key, d_model, d_ff):
    keys = jax.random.split(key, 6)
    w1 = jax.random.normal(keys[0], (d_ff, d_model), jnp.float32) * 0.05
    b1 = jax.random.normal(keys[1], (d_ff,), jnp.float32) * 0.01
    w2 = jax.random.normal(keys[2], (d_model, d_ff), jnp.float32) * 0.05
    b2 = jax.random.normal(keys[3], (d_model,), jnp.float32) * 0.01
    return {
        "ln1_g": jnp.ones((1, d_model), jnp.float32),
        "ln1_b": jnp.zeros((1, d_model), jnp.float32),
        "ln2_g": jnp.ones((1, d_model), jnp.float32),
        "ln2_b": jnp.zeros((1, d_model), jnp.float32),
        "ln3_g": jnp.ones((1, d_model), jnp.float32),
        "ln3_b": jnp.zeros((1, d_model), jnp.float32),
        "mha_t": _init_mha_params(keys[4], d_model),
        "mha_g": _init_mha_params(keys[5], d_model),
        "ffn": {"w1_t": w1.T, "b1": b1[None, :], "w2_t": w2.T, "b2": b2[None, :]},
    }


# ----------------------------------------------------------------------------
# Pure-JAX reference (matches the PyTorch forward in eval mode)
# ----------------------------------------------------------------------------

def _reference_forward(x, params, *, num_heads, n_keypoints):
    B, S, D = x.shape
    KP, L = n_keypoints, S // n_keypoints
    H, hd = num_heads, D // num_heads

    def ln(v, g, b):
        m = jnp.mean(v, -1, keepdims=True)
        var = jnp.mean((v - m) ** 2, -1, keepdims=True)
        return (v - m) / jnp.sqrt(var + 1e-5) * g[0] + b[0]

    def mha(y, p):
        N, T, _ = y.shape
        qkv = y @ p["w_in_t"] + p["b_in"][0]
        q, k, v = jnp.split(qkv, 3, axis=-1)
        q = q.reshape(N, T, H, hd).transpose(0, 2, 1, 3)
        k = k.reshape(N, T, H, hd).transpose(0, 2, 1, 3)
        v = v.reshape(N, T, H, hd).transpose(0, 2, 1, 3)
        s = jnp.einsum("nhqd,nhkd->nhqk", q, k) / math.sqrt(hd)
        a = jax.nn.softmax(s, axis=-1)
        o = jnp.einsum("nhqk,nhkd->nhqd", a, v)
        o = o.transpose(0, 2, 1, 3).reshape(N, T, D)
        return o @ p["w_out_t"] + p["b_out"][0]

    y = ln(x, params["ln1_g"], params["ln1_b"])
    y = y.reshape(B, L, KP, D).transpose(0, 2, 1, 3).reshape(B * KP, L, D)
    a = mha(y, params["mha_t"])
    a = a.reshape(B, KP, L, D).transpose(0, 2, 1, 3).reshape(B, S, D)
    x = x + a
    y = ln(x, params["ln2_g"], params["ln2_b"])
    x = x + mha(y, params["mha_g"])
    y = ln(x, params["ln3_g"], params["ln3_b"])
    f = params["ffn"]
    h = jnp.maximum(y @ f["w1_t"] + f["b1"][0], 0.0)
    return x + h @ f["w2_t"] + f["b2"][0]


# ----------------------------------------------------------------------------
# Main
# ----------------------------------------------------------------------------

if __name__ == "__main__":
    d_model = 32
    d_ff = 64
    num_heads = 4
    n_keypoints = 4
    seq_len = 8                 # "len" in the rearrange
    batch = 2
    S = seq_len * n_keypoints   # total sequence length of x

    key = jax.random.PRNGKey(0)
    k_x, k_p = jax.random.split(key)
    x = jax.random.normal(k_x, (batch, S, d_model), jnp.float32)
    params = init_encoder_params(k_p, d_model, d_ff)

    fwd = jax.jit(functools.partial(customized_encoder_layer,
                                    num_heads=num_heads,
                                    n_keypoints=n_keypoints))
    out = fwd(x, params)
    jax.block_until_ready(out)
    assert out.shape == (batch, S, d_model)

    ref = _reference_forward(x, params, num_heads=num_heads,
                             n_keypoints=n_keypoints)
    err = float(jnp.max(jnp.abs(out - ref)))
    assert jnp.allclose(out, ref, atol=1e-2, rtol=1e-2), err
    print("KERNEL_OK")
</pallas_src>

<mosaic_0001>
module attributes {stable_mosaic.version = 11 : i64} {
  func.func @_encoder_layer_kernel(%arg0: i32, %arg1: memref<1x32x32xf32, #tpu.memory_space<vmem>>, %arg2: memref<1x32xf32, #tpu.memory_space<vmem>>, %arg3: memref<1x32xf32, #tpu.memory_space<vmem>>, %arg4: memref<1x32xf32, #tpu.memory_space<vmem>>, %arg5: memref<1x32xf32, #tpu.memory_space<vmem>>, %arg6: memref<1x32xf32, #tpu.memory_space<vmem>>, %arg7: memref<1x32xf32, #tpu.memory_space<vmem>>, %arg8: memref<32x96xf32, #tpu.memory_space<vmem>>, %arg9: memref<1x96xf32, #tpu.memory_space<vmem>>, %arg10: memref<32x32xf32, #tpu.memory_space<vmem>>, %arg11: memref<1x32xf32, #tpu.memory_space<vmem>>, %arg12: memref<32x96xf32, #tpu.memory_space<vmem>>, %arg13: memref<1x96xf32, #tpu.memory_space<vmem>>, %arg14: memref<32x32xf32, #tpu.memory_space<vmem>>, %arg15: memref<1x32xf32, #tpu.memory_space<vmem>>, %arg16: memref<32x64xf32, #tpu.memory_space<vmem>>, %arg17: memref<1x64xf32, #tpu.memory_space<vmem>>, %arg18: memref<64x32xf32, #tpu.memory_space<vmem>>, %arg19: memref<1x32xf32, #tpu.memory_space<vmem>>, %arg20: memref<1x32x32xf32, #tpu.memory_space<vmem>>) attributes {dimension_semantics = [#tpu.dimension_semantics<parallel>], iteration_bounds = array<i64: 2>, scalar_prefetch = 0 : i64, scratch_operands = 0 : i64, tpu.core_type = #tpu.core_type<tc>, window_params = [{transform_indices = @transform_0, window_bounds = array<i64: 1, 32, 32>}, {pipeline_mode = #tpu.pipeline_mode<synchronous>, transform_indices = @transform_1, window_bounds = array<i64: 1, 32>}, {pipeline_mode = #tpu.pipeline_mode<synchronous>, transform_indices = @transform_2, window_bounds = array<i64: 1, 32>}, {pipeline_mode = #tpu.pipeline_mode<synchronous>, transform_indices = @transform_3, window_bounds = array<i64: 1, 32>}, {pipeline_mode = #tpu.pipeline_mode<synchronous>, transform_indices = @transform_4, window_bounds = array<i64: 1, 32>}, {pipeline_mode = #tpu.pipeline_mode<synchronous>, transform_indices = @transform_5, window_bounds = array<i64: 1, 32>}, {pipeline_mode = #tpu.pipeline_mode<synchronous>, transform_indices = @transform_6, window_bounds = array<i64: 1, 32>}, {pipeline_mode = #tpu.pipeline_mode<synchronous>, transform_indices = @transform_7, window_bounds = array<i64: 32, 96>}, {pipeline_mode = #tpu.pipeline_mode<synchronous>, transform_indices = @transform_8, window_bounds = array<i64: 1, 96>}, {pipeline_mode = #tpu.pipeline_mode<synchronous>, transform_indices = @transform_9, window_bounds = array<i64: 32, 32>}, {pipeline_mode = #tpu.pipeline_mode<synchronous>, transform_indices = @transform_10, window_bounds = array<i64: 1, 32>}, {pipeline_mode = #tpu.pipeline_mode<synchronous>, transform_indices = @transform_11, window_bounds = array<i64: 32, 96>}, {pipeline_mode = #tpu.pipeline_mode<synchronous>, transform_indices = @transform_12, window_bounds = array<i64: 1, 96>}, {pipeline_mode = #tpu.pipeline_mode<synchronous>, transform_indices = @transform_13, window_bounds = array<i64: 32, 32>}, {pipeline_mode = #tpu.pipeline_mode<synchronous>, transform_indices = @transform_14, window_bounds = array<i64: 1, 32>}, {pipeline_mode = #tpu.pipeline_mode<synchronous>, transform_indices = @transform_15, window_bounds = array<i64: 32, 64>}, {pipeline_mode = #tpu.pipeline_mode<synchronous>, transform_indices = @transform_16, window_bounds = array<i64: 1, 64>}, {pipeline_mode = #tpu.pipeline_mode<synchronous>, transform_indices = @transform_17, window_bounds = array<i64: 64, 32>}, {pipeline_mode = #tpu.pipeline_mode<synchronous>, transform_indices = @transform_18, window_bounds = array<i64: 1, 32>}, {transform_indices = @transform_19, window_bounds = array<i64: 1, 32, 32>}]} {
    %c0 = arith.constant 0 : index
    %c0_0 = arith.constant 0 : index
    %c0_1 = arith.constant 0 : index
    %0 = vector.load %arg1[%c0, %c0_0, %c0_1] : memref<1x32x32xf32, #tpu.memory_space<vmem>>, vector<1x32x32xf32>
    %1 = vector.shape_cast %0 : vector<1x32x32xf32> to vector<32x32xf32>
    %c0_2 = arith.constant 0 : index
    %c0_3 = arith.constant 0 : index
    %2 = vector.load %arg2[%c0_2, %c0_3] : memref<1x32xf32, #tpu.memory_space<vmem>>, vector<1x32xf32>
    %3 = vector.shape_cast %2 : vector<1x32xf32> to vector<32xf32>
    %c0_4 = arith.constant 0 : index
    %c0_5 = arith.constant 0 : index
    %4 = vector.load %arg3[%c0_4, %c0_5] : memref<1x32xf32, #tpu.memory_space<vmem>>, vector<1x32xf32>
    %5 = vector.shape_cast %4 : vector<1x32xf32> to vector<32xf32>
    %cst = arith.constant dense<0.000000e+00> : vector<32xf32>
    %6 = vector.multi_reduction <add>, %1, %cst [1] : vector<32x32xf32> to vector<32xf32>
    %7 = vector.shape_cast %6 : vector<32xf32> to vector<32x1xf32>
    %cst_6 = arith.constant 3.200000e+01 : f32
    %8 = vector.broadcast %cst_6 : f32 to vector<32x1xf32>
    %9 = arith.divf %7, %8 : vector<32x1xf32>
    %10 = vector.broadcast %9 : vector<32x1xf32> to vector<32x32xf32>
    %11 = arith.subf %1, %10 : vector<32x32xf32>
    %12 = arith.mulf %11, %11 : vector<32x32xf32>
    %cst_7 = arith.constant dense<0.000000e+00> : vector<32xf32>
    %13 = vector.multi_reduction <add>, %12, %cst_7 [1] : vector<32x32xf32> to vector<32xf32>
    %14 = vector.shape_cast %13 : vector<32xf32> to vector<32x1xf32>
    %cst_8 = arith.constant 3.200000e+01 : f32
    %15 = vector.broadcast %cst_8 : f32 to vector<32x1xf32>
    %16 = arith.divf %14, %15 : vector<32x1xf32>
    %cst_9 = arith.constant 9.99999974E-6 : f32
    %17 = vector.broadcast %cst_9 : f32 to vector<32x1xf32>
    %18 = arith.addf %16, %17 : vector<32x1xf32>
    %19 = math.rsqrt %18 : vector<32x1xf32>
    %20 = vector.broadcast %19 : vector<32x1xf32> to vector<32x32xf32>
    %21 = arith.mulf %11, %20 : vector<32x32xf32>
    %22 = vector.shape_cast %3 : vector<32xf32> to vector<1x32xf32>
    %23 = vector.broadcast %22 : vector<1x32xf32> to vector<32x32xf32>
    %24 = arith.mulf %21, %23 : vector<32x32xf32>
    %25 = vector.shape_cast %5 : vector<32xf32> to vector<1x32xf32>
    %26 = vector.broadcast %25 : vector<1x32xf32> to vector<32x32xf32>
    %27 = arith.addf %24, %26 : vector<32x32xf32>
    %c0_10 = arith.constant 0 : index
    %c0_11 = arith.constant 0 : index
    %28 = vector.load %arg8[%c0_10, %c0_11] : memref<32x96xf32, #tpu.memory_space<vmem>>, vector<32x96xf32>
    %cst_12 = arith.constant dense<0.000000e+00> : vector<32x96xf32>
    %29 = tpu.matmul %27, %28, %cst_12 {dimension_numbers = #tpu.dot_dimension_numbers<[1], [0], [0], [1], [0, 0, 1, 1], [], []>} : vector<32x32xf32>, vector<32x96xf32>, vector<32x96xf32> -> vector<32x96xf32>
    %c0_13 = arith.constant 0 : index
    %c0_14 = arith.constant 0 : index
    %30 = vector.load %arg9[%c0_13, %c0_14] : memref<1x96xf32, #tpu.memory_space<vmem>>, vector<1x96xf32>
    %31 = vector.shape_cast %30 : vector<1x96xf32> to vector<96xf32>
    %32 = vector.shape_cast %31 : vector<96xf32> to vector<1x96xf32>
    %33 = vector.broadcast %32 : vector<1x96xf32> to vector<32x96xf32>
    %34 = arith.addf %29, %33 : vector<32x96xf32>
    %35 = vector.shape_cast %34 : vector<32x96xf32> to vector<4x8x96xf32>
    %36 = vector.extract_strided_slice %35 {offsets = [0, 0, 0], sizes = [4, 8, 8], strides = [1, 1, 1]} : vector<4x8x96xf32> to vector<4x8x8xf32>
    %37 = vector.extract_strided_slice %35 {offsets = [0, 0, 32], sizes = [4, 8, 8], strides = [1, 1, 1]} : vector<4x8x96xf32> to vector<4x8x8xf32>
    %38 = vector.extract_strided_slice %35 {offsets = [0, 0, 64], sizes = [4, 8, 8], strides = [1, 1, 1]} : vector<4x8x96xf32> to vector<4x8x8xf32>
    "tpu.trace_start"() <{level = 10 : i32, message = "gqd,gkd->gqk"}> : () -> ()
    %cst_15 = arith.constant dense<0.000000e+00> : vector<4x8x8xf32>
    %39 = tpu.matmul %36, %37, %cst_15 {dimension_numbers = #tpu.dot_dimension_numbers<[2], [2], [1], [1], [0, 0, 0, 1, 1, 1], [0], [0]>} : vector<4x8x8xf32>, vector<4x8x8xf32>, vector<4x8x8xf32> -> vector<4x8x8xf32>
    "tpu.trace_stop"() : () -> ()
    %cst_16 = arith.constant 0.353553385 : f32
    %40 = vector.broadcast %cst_16 : f32 to vector<4x8x8xf32>
    %41 = arith.mulf %39, %40 : vector<4x8x8xf32>
    %cst_17 = arith.constant dense<0xFF800000> : vector<4x8xf32>
    %42 = vector.multi_reduction <maximumf>, %41, %cst_17 [2] : vector<4x8x8xf32> to vector<4x8xf32>
    %43 = vector.shape_cast %42 : vector<4x8xf32> to vector<4x8x1xf32>
    %44 = vector.broadcast %43 : vector<4x8x1xf32> to vector<4x8x8xf32>
    %45 = arith.subf %41, %44 : vector<4x8x8xf32>
    %46 = math.exp %45 : vector<4x8x8xf32>
    %cst_18 = arith.constant dense<0.000000e+00> : vector<4x8xf32>
    %47 = vector.multi_reduction <add>, %46, %cst_18 [2] : vector<4x8x8xf32> to vector<4x8xf32>
    %48 = vector.shape_cast %47 : vector<4x8xf32> to vector<4x8x1xf32>
    %49 = tpu.reciprocal %48 {approx = true} : vector<4x8x1xf32> -> vector<4x8x1xf32>
    %50 = vector.broadcast %49 : vector<4x8x1xf32> to vector<4x8x8xf32>
    %51 = arith.mulf %46, %50 : vector<4x8x8xf32>
    "tpu.trace_start"() <{level = 10 : i32, message = "gqk,gkd->gqd"}> : () -> ()
    %cst_19 = arith.constant dense<0.000000e+00> : vector<4x8x8xf32>
    %52 = tpu.matmul %51, %38, %cst_19 {dimension_numbers = #tpu.dot_dimension_numbers<[2], [1], [1], [2], [0, 0, 0, 1, 1, 2], [0], [0]>} : vector<4x8x8xf32>, vector<4x8x8xf32>, vector<4x8x8xf32> -> vector<4x8x8xf32>
    "tpu.trace_stop"() : () -> ()
    %53 = vector.shape_cast %52 : vector<4x8x8xf32> to vector<32x8xf32>
    %54 = vector.extract_strided_slice %35 {offsets = [0, 0, 8], sizes = [4, 8, 8], strides = [1, 1, 1]} : vector<4x8x96xf32> to vector<4x8x8xf32>
    %55 = vector.extract_strided_slice %35 {offsets = [0, 0, 40], sizes = [4, 8, 8], strides = [1, 1, 1]} : vector<4x8x96xf32> to vector<4x8x8xf32>
    %56 = vector.extract_strided_slice %35 {offsets = [0, 0, 72], sizes = [4, 8, 8], strides = [1, 1, 1]} : vector<4x8x96xf32> to vector<4x8x8xf32>
    "tpu.trace_start"() <{level = 10 : i32, message = "gqd,gkd->gqk"}> : () -> ()
    %cst_20 = arith.constant dense<0.000000e+00> : vector<4x8x8xf32>
    %57 = tpu.matmul %54, %55, %cst_20 {dimension_numbers = #tpu.dot_dimension_numbers<[2], [2], [1], [1], [0, 0, 0, 1, 1, 1], [0], [0]>} : vector<4x8x8xf32>, vector<4x8x8xf32>, vector<4x8x8xf32> -> vector<4x8x8xf32>
    "tpu.trace_stop"() : () -> ()
    %cst_21 = arith.constant 0.353553385 : f32
    %58 = vector.broadcast %cst_21 : f32 to vector<4x8x8xf32>
    %59 = arith.mulf %57, %58 : vector<4x8x8xf32>
    %cst_22 = arith.constant dense<0xFF800000> : vector<4x8xf32>
    %60 = vector.multi_reduction <maximumf>, %59, %cst_22 [2] : vector<4x8x8xf32> to vector<4x8xf32>
    %61 = vector.shape_cast %60 : vector<4x8xf32> to vector<4x8x1xf32>
    %62 = vector.broadcast %61 : vector<4x8x1xf32> to vector<4x8x8xf32>
    %63 = arith.subf %59, %62 : vector<4x8x8xf32>
    %64 = math.exp %63 : vector<4x8x8xf32>
    %cst_23 = arith.constant dense<0.000000e+00> : vector<4x8xf32>
    %65 = vector.multi_reduction <add>, %64, %cst_23 [2] : vector<4x8x8xf32> to vector<4x8xf32>
    %66 = vector.shape_cast %65 : vector<4x8xf32> to vector<4x8x1xf32>
    %67 = tpu.reciprocal %66 {approx = true} : vector<4x8x1xf32> -> vector<4x8x1xf32>
    %68 = vector.broadcast %67 : vector<4x8x1xf32> to vector<4x8x8xf32>
    %69 = arith.mulf %64, %68 : vector<4x8x8xf32>
    "tpu.trace_start"() <{level = 10 : i32, message = "gqk,gkd->gqd"}> : () -> ()
    %cst_24 = arith.constant dense<0.000000e+00> : vector<4x8x8xf32>
    %70 = tpu.matmul %69, %56, %cst_24 {dimension_numbers = #tpu.dot_dimension_numbers<[2], [1], [1], [2], [0, 0, 0, 1, 1, 2], [0], [0]>} : vector<4x8x8xf32>, vector<4x8x8xf32>, vector<4x8x8xf32> -> vector<4x8x8xf32>
    "tpu.trace_stop"() : () -> ()
    %71 = vector.shape_cast %70 : vector<4x8x8xf32> to vector<32x8xf32>
    %72 = vector.extract_strided_slice %35 {offsets = [0, 0, 16], sizes = [4, 8, 8], strides = [1, 1, 1]} : vector<4x8x96xf32> to vector<4x8x8xf32>
    %73 = vector.extract_strided_slice %35 {offsets = [0, 0, 48], sizes = [4, 8, 8], strides = [1, 1, 1]} : vector<4x8x96xf32> to vector<4x8x8xf32>
    %74 = vector.extract_strided_slice %35 {offsets = [0, 0, 80], sizes = [4, 8, 8], strides = [1, 1, 1]} : vector<4x8x96xf32> to vector<4x8x8xf32>
    "tpu.trace_start"() <{level = 10 : i32, message = "gqd,gkd->gqk"}> : () -> ()
    %cst_25 = arith.constant dense<0.000000e+00> : vector<4x8x8xf32>
    %75 = tpu.matmul %72, %73, %cst_25 {dimension_numbers = #tpu.dot_dimension_numbers<[2], [2], [1], [1], [0, 0, 0, 1, 1, 1], [0], [0]>} : vector<4x8x8xf32>, vector<4x8x8xf32>, vector<4x8x8xf32> -> vector<4x8x8xf32>
    "tpu.trace_stop"() : () -> ()
    %cst_26 = arith.constant 0.353553385 : f32
    %76 = vector.broadcast %cst_26 : f32 to vector<4x8x8xf32>
    %77 = arith.mulf %75, %76 : vector<4x8x8xf32>
    %cst_27 = arith.constant dense<0xFF800000> : vector<4x8xf32>
    %78 = vector.multi_reduction <maximumf>, %77, %cst_27 [2] : vector<4x8x8xf32> to vector<4x8xf32>
    %79 = vector.shape_cast %78 : vector<4x8xf32> to vector<4x8x1xf32>
    %80 = vector.broadcast %79 : vector<4x8x1xf32> to vector<4x8x8xf32>
    %81 = arith.subf %77, %80 : vector<4x8x8xf32>
    %82 = math.exp %81 : vector<4x8x8xf32>
    %cst_28 = arith.constant dense<0.000000e+00> : vector<4x8xf32>
    %83 = vector.multi_reduction <add>, %82, %cst_28 [2] : vector<4x8x8xf32> to vector<4x8xf32>
    %84 = vector.shape_cast %83 : vector<4x8xf32> to vector<4x8x1xf32>
    %85 = tpu.reciprocal %84 {approx = true} : vector<4x8x1xf32> -> vector<4x8x1xf32>
    %86 = vector.broadcast %85 : vector<4x8x1xf32> to vector<4x8x8xf32>
    %87 = arith.mulf %82, %86 : vector<4x8x8xf32>
    "tpu.trace_start"() <{level = 10 : i32, message = "gqk,gkd->gqd"}> : () -> ()
    %cst_29 = arith.constant dense<0.000000e+00> : vector<4x8x8xf32>
    %88 = tpu.matmul %87, %74, %cst_29 {dimension_numbers = #tpu.dot_dimension_numbers<[2], [1], [1], [2], [0, 0, 0, 1, 1, 2], [0], [0]>} : vector<4x8x8xf32>, vector<4x8x8xf32>, vector<4x8x8xf32> -> vector<4x8x8xf32>
    "tpu.trace_stop"() : () -> ()
    %89 = vector.shape_cast %88 : vector<4x8x8xf32> to vector<32x8xf32>
    %90 = vector.extract_strided_slice %35 {offsets = [0, 0, 24], sizes = [4, 8, 8], strides = [1, 1, 1]} : vector<4x8x96xf32> to vector<4x8x8xf32>
    %91 = vector.extract_strided_slice %35 {offsets = [0, 0, 56], sizes = [4, 8, 8], strides = [1, 1, 1]} : vector<4x8x96xf32> to vector<4x8x8xf32>
    %92 = vector.extract_strided_slice %35 {offsets = [0, 0, 88], sizes = [4, 8, 8], strides = [1, 1, 1]} : vector<4x8x96xf32> to vector<4x8x8xf32>
    "tpu.trace_start"() <{level = 10 : i32, message = "gqd,gkd->gqk"}> : () -> ()
    %cst_30 = arith.constant dense<0.000000e+00> : vector<4x8x8xf32>
    %93 = tpu.matmul %90, %91, %cst_30 {dimension_numbers = #tpu.dot_dimension_numbers<[2], [2], [1], [1], [0, 0, 0, 1, 1, 1], [0], [0]>} : vector<4x8x8xf32>, vector<4x8x8xf32>, vector<4x8x8xf32> -> vector<4x8x8xf32>
    "tpu.trace_stop"() : () -> ()
    %cst_31 = arith.constant 0.353553385 : f32
    %94 = vector.broadcast %cst_31 : f32 to vector<4x8x8xf32>
    %95 = arith.mulf %93, %94 : vector<4x8x8xf32>
    %cst_32 = arith.constant dense<0xFF800000> : vector<4x8xf32>
    %96 = vector.multi_reduction <maximumf>, %95, %cst_32 [2] : vector<4x8x8xf32> to vector<4x8xf32>
    %97 = vector.shape_cast %96 : vector<4x8xf32> to vector<4x8x1xf32>
    %98 = vector.broadcast %97 : vector<4x8x1xf32> to vector<4x8x8xf32>
    %99 = arith.subf %95, %98 : vector<4x8x8xf32>
    %100 = math.exp %99 : vector<4x8x8xf32>
    %cst_33 = arith.constant dense<0.000000e+00> : vector<4x8xf32>
    %101 = vector.multi_reduction <add>, %100, %cst_33 [2] : vector<4x8x8xf32> to vector<4x8xf32>
    %102 = vector.shape_cast %101 : vector<4x8xf32> to vector<4x8x1xf32>
    %103 = tpu.reciprocal %102 {approx = true} : vector<4x8x1xf32> -> vector<4x8x1xf32>
    %104 = vector.broadcast %103 : vector<4x8x1xf32> to vector<4x8x8xf32>
    %105 = arith.mulf %100, %104 : vector<4x8x8xf32>
    "tpu.trace_start"() <{level = 10 : i32, message = "gqk,gkd->gqd"}> : () -> ()
    %cst_34 = arith.constant dense<0.000000e+00> : vector<4x8x8xf32>
    %106 = tpu.matmul %105, %92, %cst_34 {dimension_numbers = #tpu.dot_dimension_numbers<[2], [1], [1], [2], [0, 0, 0, 1, 1, 2], [0], [0]>} : vector<4x8x8xf32>, vector<4x8x8xf32>, vector<4x8x8xf32> -> vector<4x8x8xf32>
    "tpu.trace_stop"() : () -> ()
    %107 = vector.shape_cast %106 : vector<4x8x8xf32> to vector<32x8xf32>
    %108 = tpu.concatenate %53, %71, %89, %107 in 1 : vector<32x8xf32>, vector<32x8xf32>, vector<32x8xf32>, vector<32x8xf32> -> vector<32x32xf32>
    %c0_35 = arith.constant 0 : index
    %c0_36 = arith.constant 0 : index
    %109 = vector.load %arg10[%c0_35, %c0_36] : memref<32x32xf32, #tpu.memory_space<vmem>>, vector<32x32xf32>
    %cst_37 = arith.constant dense<0.000000e+00> : vector<32x32xf32>
    %110 = tpu.matmul %108, %109, %cst_37 {dimension_numbers = #tpu.dot_dimension_numbers<[1], [0], [0], [1], [0, 0, 1, 1], [], []>} : vector<32x32xf32>, vector<32x32xf32>, vector<32x32xf32> -> vector<32x32xf32>
    %c0_38 = arith.constant 0 : index
    %c0_39 = arith.constant 0 : index
    %111 = vector.load %arg11[%c0_38, %c0_39] : memref<1x32xf32, #tpu.memory_space<vmem>>, vector<1x32xf32>
    %112 = vector.shape_cast %111 : vector<1x32xf32> to vector<32xf32>
    %113 = vector.shape_cast %112 : vector<32xf32> to vector<1x32xf32>
    %114 = vector.broadcast %113 : vector<1x32xf32> to vector<32x32xf32>
    %115 = arith.addf %110, %114 : vector<32x32xf32>
    %116 = arith.addf %1, %115 : vector<32x32xf32>
    %c0_40 = arith.constant 0 : index
    %c0_41 = arith.constant 0 : index
    %117 = vector.load %arg4[%c0_40, %c0_41] : memref<1x32xf32, #tpu.memory_space<vmem>>, vector<1x32xf32>
    %118 = vector.shape_cast %117 : vector<1x32xf32> to vector<32xf32>
    %c0_42 = arith.constant 0 : index
    %c0_43 = arith.constant 0 : index
    %119 = vector.load %arg5[%c0_42, %c0_43] : memref<1x32xf32, #tpu.memory_space<vmem>>, vector<1x32xf32>
    %120 = vector.shape_cast %119 : vector<1x32xf32> to vector<32xf32>
    %cst_44 = arith.constant dense<0.000000e+00> : vector<32xf32>
    %121 = vector.multi_reduction <add>, %116, %cst_44 [1] : vector<32x32xf32> to vector<32xf32>
    %122 = vector.shape_cast %121 : vector<32xf32> to vector<32x1xf32>
    %cst_45 = arith.constant 3.200000e+01 : f32
    %123 = vector.broadcast %cst_45 : f32 to vector<32x1xf32>
    %124 = arith.divf %122, %123 : vector<32x1xf32>
    %125 = vector.broadcast %124 : vector<32x1xf32> to vector<32x32xf32>
    %126 = arith.subf %116, %125 : vector<32x32xf32>
    %127 = arith.mulf %126, %126 : vector<32x32xf32>
    %cst_46 = arith.constant dense<0.000000e+00> : vector<32xf32>
    %128 = vector.multi_reduction <add>, %127, %cst_46 [1] : vector<32x32xf32> to vector<32xf32>
    %129 = vector.shape_cast %128 : vector<32xf32> to vector<32x1xf32>
    %cst_47 = arith.constant 3.200000e+01 : f32
    %130 = vector.broadcast %cst_47 : f32 to vector<32x1xf32>
    %131 = arith.divf %129, %130 : vector<32x1xf32>
    %cst_48 = arith.constant 9.99999974E-6 : f32
    %132 = vector.broadcast %cst_48 : f32 to vector<32x1xf32>
    %133 = arith.addf %131, %132 : vector<32x1xf32>
    %134 = math.rsqrt %133 : vector<32x1xf32>
    %135 = vector.broadcast %134 : vector<32x1xf32> to vector<32x32xf32>
    %136 = arith.mulf %126, %135 : vector<32x32xf32>
    %137 = vector.shape_cast %118 : vector<32xf32> to vector<1x32xf32>
    %138 = vector.broadcast %137 : vector<1x32xf32> to vector<32x32xf32>
    %139 = arith.mulf %136, %138 : vector<32x32xf32>
    %140 = vector.shape_cast %120 : vector<32xf32> to vector<1x32xf32>
    %141 = vector.broadcast %140 : vector<1x32xf32> to vector<32x32xf32>
    %142 = arith.addf %139, %141 : vector<32x32xf32>
    %c0_49 = arith.constant 0 : index
    %c0_50 = arith.constant 0 : index
    %143 = vector.load %arg12[%c0_49, %c0_50] : memref<32x96xf32, #tpu.memory_space<vmem>>, vector<32x96xf32>
    %cst_51 = arith.constant dense<0.000000e+00> : vector<32x96xf32>
    %144 = tpu.matmul %142, %143, %cst_51 {dimension_numbers = #tpu.dot_dimension_numbers<[1], [0], [0], [1], [0, 0, 1, 1], [], []>} : vector<32x32xf32>, vector<32x96xf32>, vector<32x96xf32> -> vector<32x96xf32>
    %c0_52 = arith.constant 0 : index
    %c0_53 = arith.constant 0 : index
    %145 = vector.load %arg13[%c0_52, %c0_53] : memref<1x96xf32, #tpu.memory_space<vmem>>, vector<1x96xf32>
    %146 = vector.shape_cast %145 : vector<1x96xf32> to vector<96xf32>
    %147 = vector.shape_cast %146 : vector<96xf32> to vector<1x96xf32>
    %148 = vector.broadcast %147 : vector<1x96xf32> to vector<32x96xf32>
    %149 = arith.addf %144, %148 : vector<32x96xf32>
    %150 = vector.shape_cast %149 : vector<32x96xf32> to vector<1x32x96xf32>
    %151 = vector.extract_strided_slice %150 {offsets = [0, 0, 0], sizes = [1, 32, 8], strides = [1, 1, 1]} : vector<1x32x96xf32> to vector<1x32x8xf32>
    %152 = vector.extract_strided_slice %150 {offsets = [0, 0, 32], sizes = [1, 32, 8], strides = [1, 1, 1]} : vector<1x32x96xf32> to vector<1x32x8xf32>
    %153 = vector.extract_strided_slice %150 {offsets = [0, 0, 64], sizes = [1, 32, 8], strides = [1, 1, 1]} : vector<1x32x96xf32> to vector<1x32x8xf32>
    "tpu.trace_start"() <{level = 10 : i32, message = "gqd,gkd->gqk"}> : () -> ()
    %cst_54 = arith.constant dense<0.000000e+00> : vector<1x32x32xf32>
    %154 = tpu.matmul %151, %152, %cst_54 {dimension_numbers = #tpu.dot_dimension_numbers<[2], [2], [1], [1], [0, 0, 0, 1, 1, 1], [0], [0]>} : vector<1x32x8xf32>, vector<1x32x8xf32>, vector<1x32x32xf32> -> vector<1x32x32xf32>
    "tpu.trace_stop"() : () -> ()
    %cst_55 = arith.constant 0.353553385 : f32
    %155 = vector.broadcast %cst_55 : f32 to vector<1x32x32xf32>
    %156 = arith.mulf %154, %155 : vector<1x32x32xf32>
    %cst_56 = arith.constant dense<0xFF800000> : vector<1x32xf32>
    %157 = vector.multi_reduction <maximumf>, %156, %cst_56 [2] : vector<1x32x32xf32> to vector<1x32xf32>
    %158 = vector.shape_cast %157 : vector<1x32xf32> to vector<1x32x1xf32>
    %159 = vector.broadcast %158 : vector<1x32x1xf32> to vector<1x32x32xf32>
    %160 = arith.subf %156, %159 : vector<1x32x32xf32>
    %161 = math.exp %160 : vector<1x32x32xf32>
    %cst_57 = arith.constant dense<0.000000e+00> : vector<1x32xf32>
    %162 = vector.multi_reduction <add>, %161, %cst_57 [2] : vector<1x32x32xf32> to vector<1x32xf32>
    %163 = vector.shape_cast %162 : vector<1x32xf32> to vector<1x32x1xf32>
    %164 = tpu.reciprocal %163 {approx = true} : vector<1x32x1xf32> -> vector<1x32x1xf32>
    %165 = vector.broadcast %164 : vector<1x32x1xf32> to vector<1x32x32xf32>
    %166 = arith.mulf %161, %165 : vector<1x32x32xf32>
    "tpu.trace_start"() <{level = 10 : i32, message = "gqk,gkd->gqd"}> : () -> ()
    %cst_58 = arith.constant dense<0.000000e+00> : vector<1x32x8xf32>
    %167 = tpu.matmul %166, %153, %cst_58 {dimension_numbers = #tpu.dot_dimension_numbers<[2], [1], [1], [2], [0, 0, 0, 1, 1, 2], [0], [0]>} : vector<1x32x32xf32>, vector<1x32x8xf32>, vector<1x32x8xf32> -> vector<1x32x8xf32>
    "tpu.trace_stop"() : () -> ()
    %168 = vector.shape_cast %167 : vector<1x32x8xf32> to vector<32x8xf32>
    %169 = vector.extract_strided_slice %150 {offsets = [0, 0, 8], sizes = [1, 32, 8], strides = [1, 1, 1]} : vector<1x32x96xf32> to vector<1x32x8xf32>
    %170 = vector.extract_strided_slice %150 {offsets = [0, 0, 40], sizes = [1, 32, 8], strides = [1, 1, 1]} : vector<1x32x96xf32> to vector<1x32x8xf32>
    %171 = vector.extract_strided_slice %150 {offsets = [0, 0, 72], sizes = [1, 32, 8], strides = [1, 1, 1]} : vector<1x32x96xf32> to vector<1x32x8xf32>
    "tpu.trace_start"() <{level = 10 : i32, message = "gqd,gkd->gqk"}> : () -> ()
    %cst_59 = arith.constant dense<0.000000e+00> : vector<1x32x32xf32>
    %172 = tpu.matmul %169, %170, %cst_59 {dimension_numbers = #tpu.dot_dimension_numbers<[2], [2], [1], [1], [0, 0, 0, 1, 1, 1], [0], [0]>} : vector<1x32x8xf32>, vector<1x32x8xf32>, vector<1x32x32xf32> -> vector<1x32x32xf32>
    "tpu.trace_stop"() : () -> ()
    %cst_60 = arith.constant 0.353553385 : f32
    %173 = vector.broadcast %cst_60 : f32 to vector<1x32x32xf32>
    %174 = arith.mulf %172, %173 : vector<1x32x32xf32>
    %cst_61 = arith.constant dense<0xFF800000> : vector<1x32xf32>
    %175 = vector.multi_reduction <maximumf>, %174, %cst_61 [2] : vector<1x32x32xf32> to vector<1x32xf32>
    %176 = vector.shape_cast %175 : vector<1x32xf32> to vector<1x32x1xf32>
    %177 = vector.broadcast %176 : vector<1x32x1xf32> to vector<1x32x32xf32>
    %178 = arith.subf %174, %177 : vector<1x32x32xf32>
    %179 = math.exp %178 : vector<1x32x32xf32>
    %cst_62 = arith.constant dense<0.000000e+00> : vector<1x32xf32>
    %180 = vector.multi_reduction <add>, %179, %cst_62 [2] : vector<1x32x32xf32> to vector<1x32xf32>
    %181 = vector.shape_cast %180 : vector<1x32xf32> to vector<1x32x1xf32>
    %182 = tpu.reciprocal %181 {approx = true} : vector<1x32x1xf32> -> vector<1x32x1xf32>
    %183 = vector.broadcast %182 : vector<1x32x1xf32> to vector<1x32x32xf32>
    %184 = arith.mulf %179, %183 : vector<1x32x32xf32>
    "tpu.trace_start"() <{level = 10 : i32, message = "gqk,gkd->gqd"}> : () -> ()
    %cst_63 = arith.constant dense<0.000000e+00> : vector<1x32x8xf32>
    %185 = tpu.matmul %184, %171, %cst_63 {dimension_numbers = #tpu.dot_dimension_numbers<[2], [1], [1], [2], [0, 0, 0, 1, 1, 2], [0], [0]>} : vector<1x32x32xf32>, vector<1x32x8xf32>, vector<1x32x8xf32> -> vector<1x32x8xf32>
    "tpu.trace_stop"() : () -> ()
    %186 = vector.shape_cast %185 : vector<1x32x8xf32> to vector<32x8xf32>
    %187 = vector.extract_strided_slice %150 {offsets = [0, 0, 16], sizes = [1, 32, 8], strides = [1, 1, 1]} : vector<1x32x96xf32> to vector<1x32x8xf32>
    %188 = vector.extract_strided_slice %150 {offsets = [0, 0, 48], sizes = [1, 32, 8], strides = [1, 1, 1]} : vector<1x32x96xf32> to vector<1x32x8xf32>
    %189 = vector.extract_strided_slice %150 {offsets = [0, 0, 80], sizes = [1, 32, 8], strides = [1, 1, 1]} : vector<1x32x96xf32> to vector<1x32x8xf32>
    "tpu.trace_start"() <{level = 10 : i32, message = "gqd,gkd->gqk"}> : () -> ()
    %cst_64 = arith.constant dense<0.000000e+00> : vector<1x32x32xf32>
    %190 = tpu.matmul %187, %188, %cst_64 {dimension_numbers = #tpu.dot_dimension_numbers<[2], [2], [1], [1], [0, 0, 0, 1, 1, 1], [0], [0]>} : vector<1x32x8xf32>, vector<1x32x8xf32>, vector<1x32x32xf32> -> vector<1x32x32xf32>
    "tpu.trace_stop"() : () -> ()
    %cst_65 = arith.constant 0.353553385 : f32
    %191 = vector.broadcast %cst_65 : f32 to vector<1x32x32xf32>
    %192 = arith.mulf %190, %191 : vector<1x32x32xf32>
    %cst_66 = arith.constant dense<0xFF800000> : vector<1x32xf32>
    %193 = vector.multi_reduction <maximumf>, %192, %cst_66 [2] : vector<1x32x32xf32> to vector<1x32xf32>
    %194 = vector.shape_cast %193 : vector<1x32xf32> to vector<1x32x1xf32>
    %195 = vector.broadcast %194 : vector<1x32x1xf32> to vector<1x32x32xf32>
    %196 = arith.subf %192, %195 : vector<1x32x32xf32>
    %197 = math.exp %196 : vector<1x32x32xf32>
    %cst_67 = arith.constant dense<0.000000e+00> : vector<1x32xf32>
    %198 = vector.multi_reduction <add>, %197, %cst_67 [2] : vector<1x32x32xf32> to vector<1x32xf32>
    %199 = vector.shape_cast %198 : vector<1x32xf32> to vector<1x32x1xf32>
    %200 = tpu.reciprocal %199 {approx = true} : vector<1x32x1xf32> -> vector<1x32x1xf32>
    %201 = vector.broadcast %200 : vector<1x32x1xf32> to vector<1x32x32xf32>
    %202 = arith.mulf %197, %201 : vector<1x32x32xf32>
    "tpu.trace_start"() <{level = 10 : i32, message = "gqk,gkd->gqd"}> : () -> ()
    %cst_68 = arith.constant dense<0.000000e+00> : vector<1x32x8xf32>
    %203 = tpu.matmul %202, %189, %cst_68 {dimension_numbers = #tpu.dot_dimension_numbers<[2], [1], [1], [2], [0, 0, 0, 1, 1, 2], [0], [0]>} : vector<1x32x32xf32>, vector<1x32x8xf32>, vector<1x32x8xf32> -> vector<1x32x8xf32>
    "tpu.trace_stop"() : () -> ()
    %204 = vector.shape_cast %203 : vector<1x32x8xf32> to vector<32x8xf32>
    %205 = vector.extract_strided_slice %150 {offsets = [0, 0, 24], sizes = [1, 32, 8], strides = [1, 1, 1]} : vector<1x32x96xf32> to vector<1x32x8xf32>
    %206 = vector.extract_strided_slice %150 {offsets = [0, 0, 56], sizes = [1, 32, 8], strides = [1, 1, 1]} : vector<1x32x96xf32> to vector<1x32x8xf32>
    %207 = vector.extract_strided_slice %150 {offsets = [0, 0, 88], sizes = [1, 32, 8], strides = [1, 1, 1]} : vector<1x32x96xf32> to vector<1x32x8xf32>
    "tpu.trace_start"() <{level = 10 : i32, message = "gqd,gkd->gqk"}> : () -> ()
    %cst_69 = arith.constant dense<0.000000e+00> : vector<1x32x32xf32>
    %208 = tpu.matmul %205, %206, %cst_69 {dimension_numbers = #tpu.dot_dimension_numbers<[2], [2], [1], [1], [0, 0, 0, 1, 1, 1], [0], [0]>} : vector<1x32x8xf32>, vector<1x32x8xf32>, vector<1x32x32xf32> -> vector<1x32x32xf32>
    "tpu.trace_stop"() : () -> ()
    %cst_70 = arith.constant 0.353553385 : f32
    %209 = vector.broadcast %cst_70 : f32 to vector<1x32x32xf32>
    %210 = arith.mulf %208, %209 : vector<1x32x32xf32>
    %cst_71 = arith.constant dense<0xFF800000> : vector<1x32xf32>
    %211 = vector.multi_reduction <maximumf>, %210, %cst_71 [2] : vector<1x32x32xf32> to vector<1x32xf32>
    %212 = vector.shape_cast %211 : vector<1x32xf32> to vector<1x32x1xf32>
    %213 = vector.broadcast %212 : vector<1x32x1xf32> to vector<1x32x32xf32>
    %214 = arith.subf %210, %213 : vector<1x32x32xf32>
    %215 = math.exp %214 : vector<1x32x32xf32>
    %cst_72 = arith.constant dense<0.000000e+00> : vector<1x32xf32>
    %216 = vector.multi_reduction <add>, %215, %cst_72 [2] : vector<1x32x32xf32> to vector<1x32xf32>
    %217 = vector.shape_cast %216 : vector<1x32xf32> to vector<1x32x1xf32>
    %218 = tpu.reciprocal %217 {approx = true} : vector<1x32x1xf32> -> vector<1x32x1xf32>
    %219 = vector.broadcast %218 : vector<1x32x1xf32> to vector<1x32x32xf32>
    %220 = arith.mulf %215, %219 : vector<1x32x32xf32>
    "tpu.trace_start"() <{level = 10 : i32, message = "gqk,gkd->gqd"}> : () -> ()
    %cst_73 = arith.constant dense<0.000000e+00> : vector<1x32x8xf32>
    %221 = tpu.matmul %220, %207, %cst_73 {dimension_numbers = #tpu.dot_dimension_numbers<[2], [1], [1], [2], [0, 0, 0, 1, 1, 2], [0], [0]>} : vector<1x32x32xf32>, vector<1x32x8xf32>, vector<1x32x8xf32> -> vector<1x32x8xf32>
    "tpu.trace_stop"() : () -> ()
    %222 = vector.shape_cast %221 : vector<1x32x8xf32> to vector<32x8xf32>
    %223 = tpu.concatenate %168, %186, %204, %222 in 1 : vector<32x8xf32>, vector<32x8xf32>, vector<32x8xf32>, vector<32x8xf32> -> vector<32x32xf32>
    %c0_74 = arith.constant 0 : index
    %c0_75 = arith.constant 0 : index
    %224 = vector.load %arg14[%c0_74, %c0_75] : memref<32x32xf32, #tpu.memory_space<vmem>>, vector<32x32xf32>
    %cst_76 = arith.constant dense<0.000000e+00> : vector<32x32xf32>
    %225 = tpu.matmul %223, %224, %cst_76 {dimension_numbers = #tpu.dot_dimension_numbers<[1], [0], [0], [1], [0, 0, 1, 1], [], []>} : vector<32x32xf32>, vector<32x32xf32>, vector<32x32xf32> -> vector<32x32xf32>
    %c0_77 = arith.constant 0 : index
    %c0_78 = arith.constant 0 : index
    %226 = vector.load %arg15[%c0_77, %c0_78] : memref<1x32xf32, #tpu.memory_space<vmem>>, vector<1x32xf32>
    %227 = vector.shape_cast %226 : vector<1x32xf32> to vector<32xf32>
    %228 = vector.shape_cast %227 : vector<32xf32> to vector<1x32xf32>
    %229 = vector.broadcast %228 : vector<1x32xf32> to vector<32x32xf32>
    %230 = arith.addf %225, %229 : vector<32x32xf32>
    %231 = arith.addf %116, %230 : vector<32x32xf32>
    %c0_79 = arith.constant 0 : index
    %c0_80 = arith.constant 0 : index
    %232 = vector.load %arg6[%c0_79, %c0_80] : memref<1x32xf32, #tpu.memory_space<vmem>>, vector<1x32xf32>
    %233 = vector.shape_cast %232 : vector<1x32xf32> to vector<32xf32>
    %c0_81 = arith.constant 0 : index
    %c0_82 = arith.constant 0 : index
    %234 = vector.load %arg7[%c0_81, %c0_82] : memref<1x32xf32, #tpu.memory_space<vmem>>, vector<1x32xf32>
    %235 = vector.shape_cast %234 : vector<1x32xf32> to vector<32xf32>
    %cst_83 = arith.constant dense<0.000000e+00> : vector<32xf32>
    %236 = vector.multi_reduction <add>, %231, %cst_83 [1] : vector<32x32xf32> to vector<32xf32>
    %237 = vector.shape_cast %236 : vector<32xf32> to vector<32x1xf32>
    %cst_84 = arith.constant 3.200000e+01 : f32
    %238 = vector.broadcast %cst_84 : f32 to vector<32x1xf32>
    %239 = arith.divf %237, %238 : vector<32x1xf32>
    %240 = vector.broadcast %239 : vector<32x1xf32> to vector<32x32xf32>
    %241 = arith.subf %231, %240 : vector<32x32xf32>
    %242 = arith.mulf %241, %241 : vector<32x32xf32>
    %cst_85 = arith.constant dense<0.000000e+00> : vector<32xf32>
    %243 = vector.multi_reduction <add>, %242, %cst_85 [1] : vector<32x32xf32> to vector<32xf32>
    %244 = vector.shape_cast %243 : vector<32xf32> to vector<32x1xf32>
    %cst_86 = arith.constant 3.200000e+01 : f32
    %245 = vector.broadcast %cst_86 : f32 to vector<32x1xf32>
    %246 = arith.divf %244, %245 : vector<32x1xf32>
    %cst_87 = arith.constant 9.99999974E-6 : f32
    %247 = vector.broadcast %cst_87 : f32 to vector<32x1xf32>
    %248 = arith.addf %246, %247 : vector<32x1xf32>
    %249 = math.rsqrt %248 : vector<32x1xf32>
    %250 = vector.broadcast %249 : vector<32x1xf32> to vector<32x32xf32>
    %251 = arith.mulf %241, %250 : vector<32x32xf32>
    %252 = vector.shape_cast %233 : vector<32xf32> to vector<1x32xf32>
    %253 = vector.broadcast %252 : vector<1x32xf32> to vector<32x32xf32>
    %254 = arith.mulf %251, %253 : vector<32x32xf32>
    %255 = vector.shape_cast %235 : vector<32xf32> to vector<1x32xf32>
    %256 = vector.broadcast %255 : vector<1x32xf32> to vector<32x32xf32>
    %257 = arith.addf %254, %256 : vector<32x32xf32>
    %c0_88 = arith.constant 0 : index
    %c0_89 = arith.constant 0 : index
    %258 = vector.load %arg16[%c0_88, %c0_89] : memref<32x64xf32, #tpu.memory_space<vmem>>, vector<32x64xf32>
    %cst_90 = arith.constant dense<0.000000e+00> : vector<32x64xf32>
    %259 = tpu.matmul %257, %258, %cst_90 {dimension_numbers = #tpu.dot_dimension_numbers<[1], [0], [0], [1], [0, 0, 1, 1], [], []>} : vector<32x32xf32>, vector<32x64xf32>, vector<32x64xf32> -> vector<32x64xf32>
    %c0_91 = arith.constant 0 : index
    %c0_92 = arith.constant 0 : index
    %260 = vector.load %arg17[%c0_91, %c0_92] : memref<1x64xf32, #tpu.memory_space<vmem>>, vector<1x64xf32>
    %261 = vector.shape_cast %260 : vector<1x64xf32> to vector<64xf32>
    %262 = vector.shape_cast %261 : vector<64xf32> to vector<1x64xf32>
    %263 = vector.broadcast %262 : vector<1x64xf32> to vector<32x64xf32>
    %264 = arith.addf %259, %263 : vector<32x64xf32>
    %cst_93 = arith.constant 0.000000e+00 : f32
    %265 = vector.broadcast %cst_93 : f32 to vector<32x64xf32>
    %266 = arith.maximumf %264, %265 : vector<32x64xf32>
    %c0_94 = arith.constant 0 : index
    %c0_95 = arith.constant 0 : index
    %267 = vector.load %arg18[%c0_94, %c0_95] : memref<64x32xf32, #tpu.memory_space<vmem>>, vector<64x32xf32>
    %cst_96 = arith.constant dense<0.000000e+00> : vector<32x32xf32>
    %268 = tpu.matmul %266, %267, %cst_96 {dimension_numbers = #tpu.dot_dimension_numbers<[1], [0], [0], [1], [0, 0, 1, 1], [], []>} : vector<32x64xf32>, vector<64x32xf32>, vector<32x32xf32> -> vector<32x32xf32>
    %269 = arith.addf %231, %268 : vector<32x32xf32>
    %c0_97 = arith.constant 0 : index
    %c0_98 = arith.constant 0 : index
    %270 = vector.load %arg19[%c0_97, %c0_98] : memref<1x32xf32, #tpu.memory_space<vmem>>, vector<1x32xf32>
    %271 = vector.shape_cast %270 : vector<1x32xf32> to vector<32xf32>
    %272 = vector.shape_cast %271 : vector<32xf32> to vector<1x32xf32>
    %273 = vector.broadcast %272 : vector<1x32xf32> to vector<32x32xf32>
    %274 = arith.addf %269, %273 : vector<32x32xf32>
    %c0_99 = arith.constant 0 : index
    %c0_100 = arith.constant 0 : index
    %c0_101 = arith.constant 0 : index
    %275 = vector.load %arg20[%c0_99, %c0_100, %c0_101] : memref<1x32x32xf32, #tpu.memory_space<vmem>>, vector<1x32x32xf32>
    %276 = vector.shape_cast %275 : vector<1x32x32xf32> to vector<32x32xf32>
    %277 = vector.shape_cast %274 : vector<32x32xf32> to vector<1x32x32xf32>
    tpu.vector_store %arg20[%c0_99, %c0_100, %c0_101], %277 {strides = array<i32>} : memref<1x32x32xf32, #tpu.memory_space<vmem>>, vector<1x32x32xf32>,
    return
  }
  func.func @transform_0(%arg0: i32) -> (i32, i32, i32) {
    %c0_i32 = arith.constant 0 : i32
    %c0_i32_0 = arith.constant 0 : i32
    %c0_i32_1 = arith.constant 0 : i32
    return %arg0, %c0_i32, %c0_i32_0 : i32, i32, i32
  }
  func.func @transform_1(%arg0: i32) -> (i32, i32) {
    %c0_i32 = arith.constant 0 : i32
    %c0_i32_0 = arith.constant 0 : i32
    %c0_i32_1 = arith.constant 0 : i32
    return %c0_i32, %c0_i32_0 : i32, i32
  }
  func.func @transform_2(%arg0: i32) -> (i32, i32) {
    %c0_i32 = arith.constant 0 : i32
    %c0_i32_0 = arith.constant 0 : i32
    %c0_i32_1 = arith.constant 0 : i32
    return %c0_i32, %c0_i32_0 : i32, i32
  }
  func.func @transform_3(%arg0: i32) -> (i32, i32) {
    %c0_i32 = arith.constant 0 : i32
    %c0_i32_0 = arith.constant 0 : i32
    %c0_i32_1 = arith.constant 0 : i32
    return %c0_i32, %c0_i32_0 : i32, i32
  }
  func.func @transform_4(%arg0: i32) -> (i32, i32) {
    %c0_i32 = arith.constant 0 : i32
    %c0_i32_0 = arith.constant 0 : i32
    %c0_i32_1 = arith.constant 0 : i32
    return %c0_i32, %c0_i32_0 : i32, i32
  }
  func.func @transform_5(%arg0: i32) -> (i32, i32) {
    %c0_i32 = arith.constant 0 : i32
    %c0_i32_0 = arith.constant 0 : i32
    %c0_i32_1 = arith.constant 0 : i32
    return %c0_i32, %c0_i32_0 : i32, i32
  }
  func.func @transform_6(%arg0: i32) -> (i32, i32) {
    %c0_i32 = arith.constant 0 : i32
    %c0_i32_0 = arith.constant 0 : i32
    %c0_i32_1 = arith.constant 0 : i32
    return %c0_i32, %c0_i32_0 : i32, i32
  }
  func.func @transform_7(%arg0: i32) -> (i32, i32) {
    %c0_i32 = arith.constant 0 : i32
    %c0_i32_0 = arith.constant 0 : i32
    %c0_i32_1 = arith.constant 0 : i32
    return %c0_i32, %c0_i32_0 : i32, i32
  }
  func.func @transform_8(%arg0: i32) -> (i32, i32) {
    %c0_i32 = arith.constant 0 : i32
    %c0_i32_0 = arith.constant 0 : i32
    %c0_i32_1 = arith.constant 0 : i32
    return %c0_i32, %c0_i32_0 : i32, i32
  }
  func.func @transform_9(%arg0: i32) -> (i32, i32) {
    %c0_i32 = arith.constant 0 : i32
    %c0_i32_0 = arith.constant 0 : i32
    %c0_i32_1 = arith.constant 0 : i32
    return %c0_i32, %c0_i32_0 : i32, i32
  }
  func.func @transform_10(%arg0: i32) -> (i32, i32) {
    %c0_i32 = arith.constant 0 : i32
    %c0_i32_0 = arith.constant 0 : i32
    %c0_i32_1 = arith.constant 0 : i32
    return %c0_i32, %c0_i32_0 : i32, i32
  }
  func.func @transform_11(%arg0: i32) -> (i32, i32) {
    %c0_i32 = arith.constant 0 : i32
    %c0_i32_0 = arith.constant 0 : i32
    %c0_i32_1 = arith.constant 0 : i32
    return %c0_i32, %c0_i32_0 : i32, i32
  }
  func.func @transform_12(%arg0: i32) -> (i32, i32) {
    %c0_i32 = arith.constant 0 : i32
    %c0_i32_0 = arith.constant 0 : i32
    %c0_i32_1 = arith.constant 0 : i32
    return %c0_i32, %c0_i32_0 : i32, i32
  }
  func.func @transform_13(%arg0: i32) -> (i32, i32) {
    %c0_i32 = arith.constant 0 : i32
    %c0_i32_0 = arith.constant 0 : i32
    %c0_i32_1 = arith.constant 0 : i32
    return %c0_i32, %c0_i32_0 : i32, i32
  }
  func.func @transform_14(%arg0: i32) -> (i32, i32) {
    %c0_i32 = arith.constant 0 : i32
    %c0_i32_0 = arith.constant 0 : i32
    %c0_i32_1 = arith.constant 0 : i32
    return %c0_i32, %c0_i32_0 : i32, i32
  }
  func.func @transform_15(%arg0: i32) -> (i32, i32) {
    %c0_i32 = arith.constant 0 : i32
    %c0_i32_0 = arith.constant 0 : i32
    %c0_i32_1 = arith.constant 0 : i32
    return %c0_i32, %c0_i32_0 : i32, i32
  }
  func.func @transform_16(%arg0: i32) -> (i32, i32) {
    %c0_i32 = arith.constant 0 : i32
    %c0_i32_0 = arith.constant 0 : i32
    %c0_i32_1 = arith.constant 0 : i32
    return %c0_i32, %c0_i32_0 : i32, i32
  }
  func.func @transform_17(%arg0: i32) -> (i32, i32) {
    %c0_i32 = arith.constant 0 : i32
    %c0_i32_0 = arith.constant 0 : i32
    %c0_i32_1 = arith.constant 0 : i32
    return %c0_i32, %c0_i32_0 : i32, i32
  }
  func.func @transform_18(%arg0: i32) -> (i32, i32) {
    %c0_i32 = arith.constant 0 : i32
    %c0_i32_0 = arith.constant 0 : i32
    %c0_i32_1 = arith.constant 0 : i32
    return %c0_i32, %c0_i32_0 : i32, i32
  }
  func.func @transform_19(%arg0: i32) -> (i32, i32, i32) {
    %c0_i32 = arith.constant 0 : i32
    %c0_i32_0 = arith.constant 0 : i32
    %c0_i32_1 = arith.constant 0 : i32
    return %arg0, %c0_i32, %c0_i32_0 : i32, i32, i32
  }
}

</mosaic_0001>

<bundles_post_ra>
// kernel: customized_encoder_layer.1
= control target key start
LH: loop header
LB: loop body
LE: loop exit
PB: predicated region body
PF: predicated region fallthrough
CT: control target
= control target key end

     0   :  { %s7460_s0 = inlined_call_operand.vmem [shape: f32[2,32,32], index: 0, kind: input, shape index: {}]   ;;  %s7461_s1 = inlined_call_operand.vmem [shape: f32[1,32], index: 1, kind: input, shape index: {}]   ;;  %s7462_s2 = inlined_call_operand.vmem [shape: f32[1,32], index: 2, kind: input, shape index: {}]   ;;  %s7463_s3 = inlined_call_operand.vmem [shape: f32[1,32], index: 3, kind: input, shape index: {}]   ;;  %s7464_s4 = inlined_call_operand.vmem [shape: f32[1,32], index: 4, kind: input, shape index: {}]   ;;  %s7465_s5 = inlined_call_operand.vmem [shape: f32[1,32], index: 5, kind: input, shape index: {}]   ;;  %s7466_s6 = inlined_call_operand.vmem [shape: f32[1,32], index: 6, kind: input, shape index: {}]   ;;  %s7467_s7 = inlined_call_operand.vmem [shape: f32[32,96], index: 7, kind: input, shape index: {}]   ;;  %s7468_s8 = inlined_call_operand.vmem [shape: f32[1,96], index: 8, kind: input, shape index: {}]   ;;  %s7469_s9 = inlined_call_operand.vmem [shape: f32[32,32], index: 9, kind: input, shape index: {}]   ;;  %s7470_s10 = inlined_call_operand.vmem [shape: f32[1,32], index: 10, kind: input, shape index: {}]   ;;  %s7471_s11 = inlined_call_operand.vmem [shape: f32[32,96], index: 11, kind: input, shape index: {}]   ;;  %s7472_s12 = inlined_call_operand.vmem [shape: f32[1,96], index: 12, kind: input, shape index: {}]   ;;  %s7473_s13 = inlined_call_operand.vmem [shape: f32[32,32], index: 13, kind: input, shape index: {}]   ;;  %s7474_s14 = inlined_call_operand.vmem [shape: f32[1,32], index: 14, kind: input, shape index: {}]   ;;  %s7475_s15 = inlined_call_operand.vmem [shape: f32[32,64], index: 15, kind: input, shape index: {}]   ;;  %s7476_s16 = inlined_call_operand.vmem [shape: f32[1,64], index: 16, kind: input, shape index: {}]   ;;  %s7477_s17 = inlined_call_operand.vmem [shape: f32[64,32], index: 17, kind: input, shape index: {}]   ;;  %s7478_s18 = inlined_call_operand.vmem [shape: f32[1,32], index: 18, kind: input, shape index: {}]   ;;  %s7479_s19 = inlined_call_operand.vmem [shape: f32[2,32,32], index: 19, kind: output, shape index: {}]  }
   0x1   :  { %7499 = sst [smem:[#allocation2_spill]] %s7460_s0  ;;  %s6639_s0 = smov 0  }
   0x2   :  { %7500 = sst [smem:[#allocation3_spill]] %s7461_s1 }
   0x3   :  { %7501 = sst [smem:[#allocation4_spill]] %s7462_s2 }
   0x4   :  { %7502 = sst [smem:[#allocation5_spill]] %s7463_s3 }
   0x5 LB: > { %s5430_s30 = sadd.s32 4294967295, %s6521_s0   ;;  %p5434_p0 = scmp.ge.s32.totalorder %s6521_s0, 1  ;;  %s6521_s0 = sphi %s6639_s0, %s29_s0  }
   0x6   : > { %p537_p1 = scmp.lt.s32.totalorder %s6521_s0, 3 }
   0x8   : > { %p538_p2 = pnand %p5434_p0, %p537_p1 }
   0x9   : > { %p593_p3 = scmp.lt.s32.totalorder (!%p538_p2), %s5430_s30, 1  ;;  %vm609_vm0 = vcmask (!%p538_p2), 261120   ;;  %s7503_s22 = sld [smem:[#allocation2_spill]] (!%p538_p2)  ;;  %v683_v28 = vld [vmem:[%s7467_s7] sm:$0xff] (!%p538_p2)  ;;  %v684_v29 = vld [vmem:[%s7467_s7 + $0x8] sm:$0xff] (!%p538_p2)  ;;  %v685_v30 = vld [vmem:[%s7467_s7 + $0x10] sm:$0xff] (!%p538_p2) }
   0xa   : > { %541 = sbr.rel (%p538_p2) target bundleno = 7740 (0x1e3c), region = 96  ;;  %v6119_v31 = vpack.c.bf16 (!%p538_p2), %v684_v29, %v683_v28  ;;  %v686_v32 = vld [vmem:[%s7467_s7 + $0x18] sm:$0xff] (!%p538_p2)  ;;  %s7505_s25 = sld [smem:[#allocation4_spill]] (!%p538_p2)  ;;  %vm6524_vm1 = vmmov (!%p538_p2), 0   ;;  %vm794_vm2 = vcmask (!%p538_p2), 64512   ;;  %vm3496_vm3 = vcmask (!%p538_p2), 130048  }
   0xb   : > { %v6123_v33 = vpack.c.bf16 (!%p538_p2), %v686_v32, %v685_v30  ;;  %s6525_s27 = smov (!%p538_p2), 96   ;;  %s6526_s28 = smov (!%p538_p2), 64   ;;  %vm3501_vm4 = vcmask (!%p538_p2), 195584   ;;  %vm7123_vm5 = vmpackc.low (!%p538_p2), %vm794_vm2, %vm794_vm2  ;;  %vm5258_vm6 = vcmask (!%p538_p2), 523264  }
   0xc   : > { %6120 = vmatprep.subr.bf16.mxu0 (!%p538_p2), %v6119_v31  ;;  %s6527_s29 = smov (!%p538_p2), 88   ;;  %s7497_s21 = smov (!%p538_p2), 120  }
   0xd   : > { %6122 = vmatpush3.bf16.msra.mxu0 (!%p538_p2), %v6119_v31  ;;  %s7495_s1 = smov (!%p538_p2), 56   ;;  %s7491_s23 = smov (!%p538_p2), 112  }
   0xe   : > { %6124 = vmatprep.subr.bf16.mxu0 (!%p538_p2), %v6123_v33  ;;  %s7489_s24 = smov (!%p538_p2), 48   ;;  %s7481_s3 = smov (!%p538_p2), 104  }
   0xf   : > { %s7485_s26 = smov (!%p538_p2), 40  }
  0x10   : > { %v5440_v49 = vld [vmem:[%s7505_s25] ss:$0 sm:$0xff] (!%p538_p2)  ;;  %s7487_s25 = smov (!%p538_p2), 72  }
  0x11   : > { %s7520_s30 = smov (!%p593_p3, %s5430_s30), 1  ;;  %6126 = vmatpush3.bf16.msra.mxu0 %v6123_v33 }
  0x12   : > { %s7480_s20 = sshll.u32 %s7520_s30, 5 }
  0x13   : > { %s6655_s2 = scalar_lea.vmem %s7503_s22, %s7480_s20  ;;  %s7504_s22 = sld [smem:[#allocation3_spill]] }
  0x14   : > { %v603_v0 = vld [vmem:[%s6655_s2] sm:$0xff]  ;;  %v605_v1 = vld [vmem:[%s6655_s2 + $0x10] sm:$0xff]  ;;  %v604_v2 = vld [vmem:[%s6655_s2 + $0x8] sm:$0xff]  ;;  %s7483_s20 = smov 8  }
  0x15   : > { %v610_v3 = vsel %vm609_vm0, %v603_v0, 0.0  ;;  %v616_v4 = vsel %vm609_vm0, %v605_v1, 0.0  ;;  %v606_v5 = vld [vmem:[%s6655_s2 + $0x18] sm:$0xff]  ;;  %v613_v6 = vsel %vm609_vm0, %v604_v2, 0.0 }
  0x16   : > { %611 = vadd.xlane.f32.xlu0 %v610_v3  ;;  %617 = vadd.xlane.f32.xlu1 %v616_v4  ;;  %v619_v7 = vsel %vm609_vm0, %v606_v5, 0.0 }
  0x19   : > { %v5439_v47 = vld [vmem:[%s7504_s22] ss:$0 sm:$0xff]  ;;  %s7493_s22 = smov 80  }
  0x1a   : > { %614 = vadd.xlane.f32.xlu0 %v613_v6  ;;  %620 = vadd.xlane.f32.xlu1 %v619_v7 }
  0xa3   : > { %v612_v8 = vpop.xlane.xlu0 %611  ;;  %v618_v9 = vpop.xlane.xlu1 %617 }
  0xa4   : > { %v623_v10 = vmul.f32 0.03125, %v612_v8  ;;  %v625_v11 = vmul.f32 0.03125, %v618_v9 }
  0xa6   : > { %v627_v12 = vsub.f32 %v603_v0, %v623_v10  ;;  %v629_v13 = vsub.f32 %v605_v1, %v625_v11  ;;  %v6523_v0 = vmov 0.0   ;;  %v5441_v1 = vld [vmem:[%s7468_s8] ss:$0 sm:$0xff] }
  0xa7   : > { %v615_v14 = vpop.xlane.xlu0 %614  ;;  %v621_v15 = vpop.xlane.xlu1 %620  ;;  %5774 = vmatprep.subr.mxu1 %v6523_v0  ;;  %5769 = vmatprep.subr.mxu0 %v6523_v0 }
  0xa8   : > { %v624_v16 = vmul.f32 0.03125, %v615_v14  ;;  %v626_v17 = vmul.f32 0.03125, %v621_v15  ;;  %v631_v18 = vmul.f32 %v627_v12, %v627_v12  ;;  %v633_v19 = vmul.f32 %v629_v13, %v629_v13  ;;  %5776 = vmatprep.mubr.msk.f32.mxu1 %vm6524_vm1, %v6523_v0 }
  0xaa   : > { %v628_v20 = vsub.f32 %v604_v2, %v624_v16  ;;  %v630_v21 = vsub.f32 %v606_v5, %v626_v17  ;;  %v635_v22 = vsel %vm609_vm0, %v631_v18, 0.0  ;;  %v641_v23 = vsel %vm609_vm0, %v633_v19, 0.0 }
  0xab   : > { %636 = vadd.xlane.f32.xlu0 %v635_v22 }
  0xac   : > { %v632_v24 = vmul.f32 %v628_v20, %v628_v20  ;;  %v634_v25 = vmul.f32 %v630_v21, %v630_v21 }
  0xae   : > { %v638_v26 = vsel %vm609_vm0, %v632_v24, 0.0  ;;  %v644_v27 = vsel %vm609_vm0, %v634_v25, 0.0 }
  0xaf   : > { %642 = vadd.xlane.f32.xlu0 %v641_v23  ;;  %639 = vadd.xlane.f32.xlu1 %v638_v26 }
  0xb3   : > { %645 = vadd.xlane.f32.xlu1 %v644_v27 }
 0x138   : > { %v637_v34 = vpop.xlane.xlu0 %636 }
 0x139   : > { %v647_v35 = vmul.f32 0.03125, %v637_v34 }
 0x13b   : > { %v651_v36 = vadd.f32 1e-05, %v647_v35 }
 0x13c   : > { %v640_v37 = vpop.xlane.xlu1 %639  ;;  %v643_v38 = vpop.xlane.xlu0 %642 }
 0x13d   : > { %6359 = vrsqrt.f32 %v651_v36  ;;  %v648_v39 = vmul.f32 0.03125, %v640_v37  ;;  %v649_v40 = vmul.f32 0.03125, %v643_v38 }
 0x13f   : > { %v652_v41 = vadd.f32 1e-05, %v648_v39  ;;  %v653_v42 = vadd.f32 1e-05, %v649_v40 }
 0x140   : > { %v646_v43 = vpop.xlane.xlu1 %645 }
 0x141   : > { %6361 = vrsqrt.f32 %v652_v41  ;;  %v650_v44 = vmul.f32 0.03125, %v646_v43 }
 0x142   : > { %6363 = vrsqrt.f32 %v653_v42 }
 0x143   : > { %v654_v45 = vadd.f32 1e-05, %v650_v44 }
 0x145   : > { %6365 = vrsqrt.f32 %v654_v45 }
 0x147   : > { %v6360_v46 = vpop.eup %6359 }
 0x148   : > { %v659_v48 = vmul.f32 %v6360_v46, %v627_v12 }
 0x14a   : > { %v669_v50 = vmul.f32 %v5439_v47, %v659_v48 }
 0x14b   : > { %v6362_v51 = vpop.eup %6361 }
 0x14c   : > { %v6364_v52 = vpop.eup %6363  ;;  %v679_v53 = vadd.f32 %v5440_v49, %v669_v50  ;;  %v660_v54 = vmul.f32 %v6362_v51, %v628_v20 }
 0x14d   : > { %v661_v55 = vmul.f32 %v6364_v52, %v629_v13 }
 0x14e   : > { %5763 = vmatprep.mubr.msk.f32.mxu0 %vm609_vm0, %v679_v53  ;;  %v670_v56 = vmul.f32 %v5439_v47, %v660_v54 }
 0x14f   : > { %v6366_v57 = vpop.eup %6365  ;;  %v671_v58 = vmul.f32 %v5439_v47, %v661_v55 }
 0x150   : > { %v680_v59 = vadd.f32 %v5440_v49, %v670_v56  ;;  %v662_v60 = vmul.f32 %v6366_v57, %v630_v21 }
 0x151   : > { %v681_v61 = vadd.f32 %v5440_v49, %v671_v58 }
 0x152   : > { %5764 = vmatmul.mubr.msk.f32.vlgmr.msra.gmra.mrb[0].mxu0 %vm609_vm0, %v680_v59  ;;  %v672_v62 = vmul.f32 %v5439_v47, %v662_v60 }
 0x153   : > { %5766 = vmatprep.mubr.msk.f32.mxu0 %vm609_vm0, %v681_v61 }
 0x154   : > { %v682_v63 = vadd.f32 %v5440_v49, %v672_v62 }
 0x156   : > { %5767 = vmatmul.mubr.msk.f32.gmra.mrb[2].mxu0 %vm609_vm0, %v682_v63 }
 0x157   : > { %5771 = vmatprep.mubr.msk.f32.mxu0 %vm6524_vm1, %v6523_v0 }
 0x225   : > { %v5765_v2 = vpop.f32.mrb[0].mxu0 }
 0x226   : > { %v6700_v3 = vadd.f32 %v5765_v2, %v5441_v1  ;;  %v772_v4 = vpop.f32.mrb[1].mxu0 }
 0x227   : > { %v6702_v5 = vadd.f32 %v5441_v1, %v772_v4 }
 0x228   : > { %870 = vrot.lane.b32.xlu1 %v6700_v3, %s6525_s27 }
 0x229   : > { %792 = vrot.lane.b32.xlu0 %v6702_v5, %s6525_s27  ;;  %v5768_v6 = vpop.f32.mrb[2].mxu0 }
 0x22a   : > { %v782_v7 = vpop.f32.mrb[3].mxu0  ;;  %v6712_v9 = vadd.f32 %v5768_v6, %v5441_v1 }
 0x22b   : > { %v6708_v8 = vadd.f32 %v5441_v1, %v782_v7 }
 0x22d   : > { %947 = vrot.lane.b32.xlu1 %v6708_v8, %s6525_s27 }
 0x231   : > { %1024 = vrot.lane.b32.xlu1 %v6712_v9, %s6525_s27 }
 0x29a   : > { %v871_v10 = vpop.permute.xlu1 %870 }
 0x29b   : > { %5775 = vmatpush3.xpose.msk.msra.mxu1 %vm794_vm2, %v871_v10  ;;  %v793_v11 = vpop.permute.xlu0 %792 }
 0x29c   : > { %5770 = vmatpush3.xpose.msk.msra.mxu0 %vm794_vm2, %v793_v11  ;;  %5779 = vmatprep.subr.mxu1 %v6523_v0 }
 0x29d   : > { %5784 = vmatprep.subr.mxu0 %v6523_v0 }
 0x29e   : > { %5777 = vmatmul.mubr.msk.f32.vlgmr.msra.gmra.mrb[0].mxu1 %vm794_vm2, %v6700_v3 }
 0x29f   : > { %v948_v12 = vpop.permute.xlu1 %947  ;;  %5772 = vmatmul.mubr.msk.f32.vlgmr.msra.gmra.mrb[4].mxu0 %vm794_vm2, %v6702_v5  ;;  %5781 = vmatprep.mubr.msk.f32.mxu1 %vm6524_vm1, %v6523_v0 }
 0x2a0   : > { %5780 = vmatpush3.xpose.msk.msra.mxu1 %vm794_vm2, %v948_v12  ;;  %5786 = vmatprep.mubr.msk.f32.mxu0 %vm6524_vm1, %v6523_v0 }
 0x2a1   : > { %5789 = vmatprep.subr.mxu1 %v6523_v0 }
 0x2a3   : > { %5782 = vmatmul.mubr.msk.f32.vlgmr.msra.gmra.mrb[2].mxu1 %vm794_vm2, %v6708_v8  ;;  %v1025_v13 = vpop.permute.xlu1 %1024 }
 0x2a4   : > { %5785 = vmatpush3.xpose.msk.msra.mxu0 %vm794_vm2, %v1025_v13  ;;  %5791 = vmatprep.mubr.msk.f32.mxu1 %vm6524_vm1, %v6523_v0 }
 0x2a5   : > { %5794 = vmatprep.subr.mxu0 %v6523_v0 }
 0x2a7   : > { %5787 = vmatmul.mubr.msk.f32.vlgmr.msra.gmra.mrb[6].mxu0 %vm794_vm2, %v6712_v9 }
 0x2a8   : > { %5796 = vmatprep.mubr.msk.f32.mxu0 %vm6524_vm1, %v6523_v0 }
 0x371   : > { %v942_v14 = vpop.f32.mrb[0].mxu1 }
 0x372   : > { %v1101_v15 = vmul.f32 0.35355338, %v942_v14  ;;  %v865_v16 = vpop.f32.mrb[4].mxu0  ;;  %v5778_v17 = vpop.f32.mrb[1].mxu1 }
 0x373   : > { %v1100_v18 = vmul.f32 0.35355338, %v865_v16  ;;  %v5773_v19 = vpop.f32.mrb[5].mxu0 }
 0x374   : > { %v1107_v20 = vsel %vm794_vm2, %v1101_v15, -inf }
 0x375   : > { %1108 = vmax.xlane.f32.xlu1 %v1107_v20  ;;  %v1104_v21 = vsel %vm794_vm2, %v1100_v18, -inf }
 0x376   : > { %v1019_v22 = vpop.f32.mrb[2].mxu1  ;;  %1105 = vmax.xlane.f32.xlu0 %v1104_v21 }
 0x377   : > { %v1102_v23 = vmul.f32 0.35355338, %v1019_v22  ;;  %v5783_v24 = vpop.f32.mrb[3].mxu1 }
 0x379   : > { %v1110_v25 = vsel %vm794_vm2, %v1102_v23, -inf }
 0x37a   : > { %1111 = vmax.xlane.f32.xlu0 %v1110_v25  ;;  %v1096_v26 = vpop.f32.mrb[6].mxu0 }
 0x37b   : > { %v1103_v27 = vmul.f32 0.35355338, %v1096_v26  ;;  %v5788_v28 = vpop.f32.mrb[7].mxu0 }
 0x37d   : > { %v1113_v29 = vsel %vm794_vm2, %v1103_v27, -inf }
 0x37e   : > { %1114 = vmax.xlane.f32.xlu0 %v1113_v29 }
 0x386   : > { %1224 = vrot.lane.b32.xlu1 %v6700_v3, %s6526_s28 }
 0x38a   : > { %1300 = vrot.lane.b32.xlu1 %v6708_v8, %s6526_s28 }
 0x38e   : > { %1376 = vrot.lane.b32.xlu1 %v6712_v9, %s6526_s28 }
 0x392   : > { %1532 = vrot.lane.b32.xlu1 %v6700_v3, %s6527_s29 }
 0x394   : > { %1148 = vrot.lane.b32.xlu0 %v6702_v5, %s6526_s28 }
 0x398   : > { %1454 = vrot.lane.b32.xlu0 %v6702_v5, %s6527_s29 }
 0x402   : > { %v1109_v30 = vpop.xlane.xlu1 %1108 }
 0x403   : > { %v1117_v31 = vsub.f32 %v1101_v15, %v1109_v30  ;;  %v1106_v32 = vpop.xlane.xlu0 %1105 }
 0x404   : > { %v1116_v33 = vsub.f32 %v1100_v18, %v1106_v32 }
 0x405   : > { %v1122_v34 = vmul.f32 1.442695, %v1117_v31 }
 0x406   : > { %v1120_v35 = vmul.f32 1.442695, %v1116_v33  ;;  %v1225_v36 = vpop.permute.xlu1 %1224 }
 0x407   : > { %6367 = vpow2.f32 %v1122_v34  ;;  %5795 = vmatpush3.msra.mxu0 %v1225_v36  ;;  %v1112_v37 = vpop.xlane.xlu0 %1111 }
 0x408   : > { %6369 = vpow2.f32 %v1120_v35  ;;  %v1118_v38 = vsub.f32 %v1102_v23, %v1112_v37  ;;  %5804 = vmatprep.subr.mxu0 %v6523_v0 }
 0x40a   : > { %v1124_v39 = vmul.f32 1.442695, %v1118_v38  ;;  %v1301_v52 = vpop.permute.xlu1 %1300 }
 0x40b   : > { %v1115_v40 = vpop.xlane.xlu0 %1114 }
 0x40c   : > { %6371 = vpow2.f32 %v1124_v39  ;;  %v1119_v48 = vsub.f32 %v1103_v27, %v1115_v40 }
 0x40e   : > { %v1126_v49 = vmul.f32 1.442695, %v1119_v48  ;;  %v1377_v53 = vpop.permute.xlu1 %1376 }
 0x40f   : > { %v1149_v41 = vpop.permute.xlu0 %1148 }
 0x410   : > { %5790 = vmatpush3.msra.mxu1 %v1149_v41  ;;  %6373 = vpow2.f32 %v1126_v49 }
 0x411   : > { %v6368_v42 = vpop.eup %6367  ;;  %5799 = vmatprep.subr.mxu1 %v6523_v0 }
 0x412   : > { %v6370_v43 = vpop.eup %6369  ;;  %v1131_v44 = vsel %vm794_vm2, %v6368_v42, 0.0  ;;  %v1533_v54 = vpop.permute.xlu1 %1532 }
 0x413   : > { %1132 = vadd.xlane.f32.xlu1 %v1131_v44  ;;  %v1128_v45 = vsel %vm794_vm2, %v6370_v43, 0.0  ;;  %v1455_v55 = vpop.permute.xlu0 %1454 }
 0x414   : > { %1129 = vadd.xlane.f32.xlu0 %v1128_v45 }
 0x416   : > { %v6372_v46 = vpop.eup %6371 }
 0x417   : > { %v1134_v47 = vsel %vm794_vm2, %v6372_v46, 0.0 }
 0x418   : > { %1135 = vadd.xlane.f32.xlu0 %v1134_v47 }
 0x41a   : > { %v6374_v50 = vpop.eup %6373 }
 0x41b   : > { %v1137_v51 = vsel %vm794_vm2, %v6374_v50, 0.0 }
 0x424   : > { %1530 = vrot.lane.b32.xlu1 %v6700_v3, %s7497_s21 }
 0x42e   : > { %1452 = vrot.lane.b32.xlu0 %v6702_v5, %s7497_s21 }
 0x432   : > { %1610 = vrot.lane.b32.xlu0 %v6708_v8, %s6527_s29 }
 0x436   : > { %1608 = vrot.lane.b32.xlu0 %v6708_v8, %s7497_s21 }
 0x448   : > { %1138 = vadd.xlane.f32.xlu1 %v1137_v51 }
 0x459   : > { %1688 = vrot.lane.b32.xlu1 %v6712_v9, %s6527_s29 }
 0x45d   : > { %1686 = vrot.lane.b32.xlu1 %v6712_v9, %s7497_s21 }
 0x4a0   : > { %v1133_v56 = vpop.xlane.xlu1 %1132 }
 0x4a1   : > { %6375 = vrcp.f32 %v1133_v56  ;;  %v1130_v57 = vpop.xlane.xlu0 %1129 }
 0x4a2   : > { %6377 = vrcp.f32 %v1130_v57 }
 0x4a4   : > { %v1531_v7 = vpop.permute.xlu1 %1530 }
 0x4a5   : > { %v1136_v58 = vpop.xlane.xlu0 %1135 }
 0x4a6   : > { %6379 = vrcp.f32 %v1136_v58 }
 0x4a9   : > { %v1453_v1 = vpop.permute.xlu0 %1452 }
 0x4ab   : > { %v6376_v59 = vpop.eup %6375 }
 0x4ac   : > { %v6378_v60 = vpop.eup %6377  ;;  %v1145_v61 = vmul.f32 %v6376_v59, %v6368_v42 }
 0x4ad   : > { %v1144_v62 = vmul.f32 %v6378_v60, %v6370_v43  ;;  %v1611_v4 = vpop.permute.xlu0 %1610 }
 0x4ae   : > { %5797 = vmatmul.mubr.msk.f32.vlgmr.msra.gmra.mrb[8].mxu0 %vm794_vm2, %v1145_v61 }
 0x4af   : > { %5805 = vmatpush3.msra.mxu0 %v1377_v53  ;;  %5792 = vmatmul.mubr.msk.f32.vlgmr.msra.gmra.mrb[4].mxu1 %vm794_vm2, %v1144_v62 }
 0x4b0   : > { %v6380_v63 = vpop.eup %6379  ;;  %5800 = vmatpush3.msra.mxu1 %v1301_v52  ;;  %5801 = vmatprep.mubr.msk.f32.mxu1 %vm6524_vm1, %v6523_v0 }
 0x4b1   : > { %v1146_v2 = vmul.f32 %v6380_v63, %v6372_v46  ;;  %5809 = vmatprep.subr.mxu1 %v6523_v0  ;;  %5806 = vmatprep.mubr.msk.f32.mxu0 %vm6524_vm1, %v6523_v0  ;;  %v1609_v6 = vpop.permute.xlu0 %1608 }
 0x4b2   : > { %5814 = vmatprep.subr.mxu0 %v6523_v0 }
 0x4b3   : > { %5802 = vmatmul.mubr.msk.f32.vlgmr.msra.gmra.mrb[6].mxu1 %vm794_vm2, %v1146_v2 }
 0x4b4   : > { %5811 = vmatprep.mubr.msk.f32.mxu1 %vm6524_vm1, %v6523_v0 }
 0x4b7   : > { %5810 = vmatpush3.xpose.msk.msra.mxu1 %vm794_vm2, %v1455_v55 }
 0x4b8   : > { %5819 = vmatprep.subr.mxu1 %v6523_v0 }
 0x4ba   : > { %5812 = vmatmul.mubr.msk.f32.vlgmr.msra.gmra.mrb[8].mxu1 %vm794_vm2, %v1453_v1 }
 0x4bb   : > { %5820 = vmatpush3.xpose.msk.msra.mxu1 %vm794_vm2, %v1611_v4  ;;  %5821 = vmatprep.mubr.msk.f32.mxu1 %vm6524_vm1, %v6523_v0 }
 0x4bc   : > { %5829 = vmatprep.subr.mxu1 %v6523_v0 }
 0x4be   : > { %5822 = vmatmul.mubr.msk.f32.vlgmr.msra.gmra.mrb[10].mxu1 %vm794_vm2, %v1609_v6 }
 0x4bf   : > { %5831 = vmatprep.mubr.msk.f32.mxu1 %vm6524_vm1, %v6523_v0 }
 0x4d5   : > { %v1139_v10 = vpop.xlane.xlu1 %1138 }
 0x4d6   : > { %6381 = vrcp.f32 %v1139_v10 }
 0x4d9   : > { %v1689_v13 = vpop.permute.xlu1 %1688 }
 0x4dd   : > { %v1687_v14 = vpop.permute.xlu1 %1686 }
 0x4e0   : > { %v6382_v11 = vpop.eup %6381 }
 0x4e1   : > { %v1147_v12 = vmul.f32 %v6382_v11, %v6374_v50 }
 0x4e3   : > { %5807 = vmatmul.mubr.msk.f32.vlgmr.msra.gmra.mrb[10].mxu0 %vm794_vm2, %v1147_v12 }
 0x4e4   : > { %5815 = vmatpush3.xpose.msk.msra.mxu0 %vm794_vm2, %v1533_v54  ;;  %5816 = vmatprep.mubr.msk.f32.mxu0 %vm6524_vm1, %v6523_v0 }
 0x4e5   : > { %5824 = vmatprep.subr.mxu0 %v6523_v0 }
 0x4e7   : > { %5817 = vmatmul.mubr.msk.f32.vlgmr.msra.gmra.mrb[12].mxu0 %vm794_vm2, %v1531_v7 }
 0x4e8   : > { %5825 = vmatpush3.xpose.msk.msra.mxu0 %vm794_vm2, %v1689_v13  ;;  %5826 = vmatprep.mubr.msk.f32.mxu0 %vm6524_vm1, %v6523_v0 }
 0x4e9   : > { %5834 = vmatprep.subr.mxu0 %v6523_v0 }
 0x4eb   : > { %5827 = vmatmul.mubr.msk.f32.vlgmr.msra.gmra.mrb[14].mxu0 %vm794_vm2, %v1687_v14 }
 0x4ec   : > { %5836 = vmatprep.mubr.msk.f32.mxu0 %vm6524_vm1, %v6523_v0 }
 0x581   : > { %v6808_v15 = vpop.f32.mrb[8].mxu0 }
 0x582   : > { %v6810_v16 = vpop.f32.mrb[4].mxu1  ;;  %v5798_v17 = vpop.f32.mrb[9].mxu0 }
 0x583   : > { %v5793_v18 = vpop.f32.mrb[5].mxu1 }
 0x586   : > { %v6812_v19 = vpop.f32.mrb[6].mxu1 }
 0x587   : > { %v5803_v20 = vpop.f32.mrb[7].mxu1 }
 0x58d   : > { %v1526_v21 = vpop.f32.mrb[8].mxu1 }
 0x58e   : > { %v1764_v22 = vmul.f32 0.35355338, %v1526_v21  ;;  %v5813_v23 = vpop.f32.mrb[9].mxu1 }
 0x590   : > { %v1768_v24 = vsel %vm794_vm2, %v1764_v22, -inf }
 0x591   : > { %1769 = vmax.xlane.f32.xlu0 %v1768_v24  ;;  %v1682_v25 = vpop.f32.mrb[10].mxu1 }
 0x592   : > { %v1766_v26 = vmul.f32 0.35355338, %v1682_v25  ;;  %v5823_v27 = vpop.f32.mrb[11].mxu1 }
 0x594   : > { %v1774_v28 = vsel %vm794_vm2, %v1766_v26, -inf }
 0x595   : > { %1775 = vmax.xlane.f32.xlu0 %v1774_v28 }
 0x5b6   : > { %v6816_v29 = vpop.f32.mrb[10].mxu0 }
 0x5b7   : > { %v5808_v30 = vpop.f32.mrb[11].mxu0 }
 0x5ba   : > { %v1604_v31 = vpop.f32.mrb[12].mxu0 }
 0x5bb   : > { %v1765_v32 = vmul.f32 0.35355338, %v1604_v31  ;;  %v5818_v33 = vpop.f32.mrb[13].mxu0 }
 0x5bd   : > { %v1771_v34 = vsel %vm794_vm2, %v1765_v32, -inf }
 0x5be   : > { %1772 = vmax.xlane.f32.xlu1 %v1771_v34  ;;  %v1760_v35 = vpop.f32.mrb[14].mxu0 }
 0x5bf   : > { %v1767_v36 = vmul.f32 0.35355338, %v1760_v35  ;;  %v5828_v37 = vpop.f32.mrb[15].mxu0 }
 0x5c1   : > { %v1777_v38 = vsel %vm794_vm2, %v1767_v36, -inf }
 0x5c2   : > { %1778 = vmax.xlane.f32.xlu0 %v1777_v38 }
 0x5cf   : > { %1888 = vrot.lane.b32.xlu1 %v6700_v3, %s7495_s1 }
 0x5d3   : > { %1964 = vrot.lane.b32.xlu1 %v6708_v8, %s7495_s1 }
 0x5d7   : > { %2040 = vrot.lane.b32.xlu1 %v6712_v9, %s7495_s1 }
 0x5d8   : > { %1812 = vrot.lane.b32.xlu0 %v6702_v5, %s7495_s1  ;;  %s7512_s1 = smov 112  }
 0x5db   : > { %2196 = vrot.lane.b32.xlu1 %v6700_v3, %s7493_s22 }
 0x5dc   : > { %2118 = vrot.lane.b32.xlu0 %v6702_v5, %s7493_s22 }
 0x61e   : > { %v1770_v39 = vpop.xlane.xlu0 %1769 }
 0x61f   : > { %v1780_v40 = vsub.f32 %v1764_v22, %v1770_v39 }
 0x621   : > { %v1784_v41 = vmul.f32 1.442695, %v1780_v40 }
 0x622   : > { %v1776_v42 = vpop.xlane.xlu0 %1775 }
 0x623   : > { %6383 = vpow2.f32 %v1784_v41  ;;  %v1782_v43 = vsub.f32 %v1766_v26, %v1776_v42 }
 0x625   : > { %v1788_v44 = vmul.f32 1.442695, %v1782_v43 }
 0x627   : > { %6385 = vpow2.f32 %v1788_v44 }
 0x62d   : > { %v6384_v45 = vpop.eup %6383 }
 0x62e   : > { %v1792_v46 = vsel %vm794_vm2, %v6384_v45, 0.0 }
 0x62f   : > { %1793 = vadd.xlane.f32.xlu0 %v1792_v46 }
 0x631   : > { %v6386_v47 = vpop.eup %6385 }
 0x632   : > { %v1798_v48 = vsel %vm794_vm2, %v6386_v47, 0.0 }
 0x633   : > { %1799 = vadd.xlane.f32.xlu0 %v1798_v48 }
 0x649   : > { %2116 = vrot.lane.b32.xlu0 %v6702_v5, %s7491_s23 }
 0x64b   : > { %v1773_v49 = vpop.xlane.xlu1 %1772 }
 0x64c   : > { %v1781_v50 = vsub.f32 %v1765_v32, %v1773_v49 }
 0x64d   : > { %2274 = vrot.lane.b32.xlu0 %v6708_v8, %s7493_s22 }
 0x64e   : > { %v1786_v51 = vmul.f32 1.442695, %v1781_v50 }
 0x64f   : > { %v1889_v52 = vpop.permute.xlu1 %1888  ;;  %v1779_v53 = vpop.xlane.xlu0 %1778 }
 0x650   : > { %6387 = vpow2.f32 %v1786_v51  ;;  %v1783_v54 = vsub.f32 %v1767_v36, %v1779_v53  ;;  %5835 = vmatpush3.msra.mxu0 %v1889_v52 }
 0x651   : > { %2272 = vrot.lane.b32.xlu0 %v6708_v8, %s7491_s23  ;;  %5844 = vmatprep.subr.mxu0 %v6523_v0 }
 0x652   : > { %v1790_v55 = vmul.f32 1.442695, %v1783_v54 }
 0x653   : > { %v1813_v56 = vpop.permute.xlu0 %1812  ;;  %v1965_v4 = vpop.permute.xlu1 %1964 }
 0x654   : > { %6389 = vpow2.f32 %v1790_v55  ;;  %5830 = vmatpush3.msra.mxu1 %v1813_v56 }
 0x655   : > { %5839 = vmatprep.subr.mxu1 %v6523_v0 }
 0x657   : > { %v2119_v61 = vpop.permute.xlu0 %2118  ;;  %v2041_v13 = vpop.permute.xlu1 %2040 }
 0x65a   : > { %v6388_v57 = vpop.eup %6387 }
 0x65b   : > { %v1795_v58 = vsel %vm794_vm2, %v6388_v57, 0.0  ;;  %v2197_v14 = vpop.permute.xlu1 %2196 }
 0x65c   : > { %1796 = vadd.xlane.f32.xlu1 %v1795_v58 }
 0x65e   : > { %v6390_v59 = vpop.eup %6389 }
 0x65f   : > { %v1801_v60 = vsel %vm794_vm2, %v6390_v59, 0.0 }
 0x660   : > { %1802 = vadd.xlane.f32.xlu1 %v1801_v60 }
 0x671   : > { %2194 = vrot.lane.b32.xlu1 %v6700_v3, %s7491_s23 }
 0x675   : > { %2352 = vrot.lane.b32.xlu1 %v6712_v9, %s7493_s22  ;;  %s7514_s22 = smov 72  }
 0x679   : > { %2350 = vrot.lane.b32.xlu1 %v6712_v9, %s7491_s23  ;;  %s7506_s23 = sld [smem:[#allocation5_spill]] }
 0x6bc   : > { %v1794_v62 = vpop.xlane.xlu0 %1793 }
 0x6bd   : > { %6391 = vrcp.f32 %v1794_v62 }
 0x6c0   : > { %v1800_v63 = vpop.xlane.xlu0 %1799 }
 0x6c1   : > { %6393 = vrcp.f32 %v1800_v63 }
 0x6c4   : > { %v2117_v7 = vpop.permute.xlu0 %2116 }
 0x6c7   : > { %v6392_v1 = vpop.eup %6391 }
 0x6c8   : > { %v1808_v2 = vmul.f32 %v6392_v1, %v6384_v45  ;;  %v2275_v11 = vpop.permute.xlu0 %2274 }
 0x6ca   : > { %5832 = vmatmul.mubr.msk.f32.vlgmr.msra.gmra.mrb[12].mxu1 %vm794_vm2, %v1808_v2 }
 0x6cb   : > { %v6394_v6 = vpop.eup %6393  ;;  %5840 = vmatpush3.msra.mxu1 %v1965_v4  ;;  %5841 = vmatprep.mubr.msk.f32.mxu1 %vm6524_vm1, %v6523_v0 }
 0x6cc   : > { %v1810_v10 = vmul.f32 %v6394_v6, %v6386_v47  ;;  %5849 = vmatprep.subr.mxu1 %v6523_v0  ;;  %v2273_v12 = vpop.permute.xlu0 %2272 }
 0x6ce   : > { %5842 = vmatmul.mubr.msk.f32.vlgmr.msra.gmra.mrb[14].mxu1 %vm794_vm2, %v1810_v10 }
 0x6cf   : > { %5851 = vmatprep.mubr.msk.f32.mxu1 %vm6524_vm1, %v6523_v0 }
 0x6d2   : > { %5850 = vmatpush3.xpose.msk.msra.mxu1 %vm794_vm2, %v2119_v61 }
 0x6d3   : > { %5859 = vmatprep.subr.mxu1 %v6523_v0 }
 0x6d5   : > { %5852 = vmatmul.mubr.msk.f32.vlgmr.msra.gmra.mrb[16].mxu1 %vm794_vm2, %v2117_v7 }
 0x6d6   : > { %5860 = vmatpush3.xpose.msk.msra.mxu1 %vm794_vm2, %v2275_v11  ;;  %5861 = vmatprep.mubr.msk.f32.mxu1 %vm6524_vm1, %v6523_v0 }
 0x6d7   : > { %5869 = vmatprep.subr.mxu1 %v6523_v0 }
 0x6d9   : > { %5862 = vmatmul.mubr.msk.f32.vlgmr.msra.gmra.mrb[18].mxu1 %vm794_vm2, %v2273_v12 }
 0x6da   : > { %5871 = vmatprep.mubr.msk.f32.mxu1 %vm6524_vm1, %v6523_v0 }
 0x6e9   : > { %v1797_v17 = vpop.xlane.xlu1 %1796 }
 0x6ea   : > { %6395 = vrcp.f32 %v1797_v17 }
 0x6ed   : > { %v1803_v18 = vpop.xlane.xlu1 %1802 }
 0x6ee   : > { %6397 = vrcp.f32 %v1803_v18 }
 0x6f1   : > { %v2195_v23 = vpop.permute.xlu1 %2194 }
 0x6f4   : > { %v6396_v20 = vpop.eup %6395 }
 0x6f5   : > { %v1809_v21 = vmul.f32 %v6396_v20, %v6388_v57  ;;  %v2353_v25 = vpop.permute.xlu1 %2352 }
 0x6f7   : > { %5837 = vmatmul.mubr.msk.f32.vlgmr.msra.gmra.mrb[16].mxu0 %vm794_vm2, %v1809_v21 }
 0x6f8   : > { %v6398_v22 = vpop.eup %6397  ;;  %5845 = vmatpush3.msra.mxu0 %v2041_v13  ;;  %5846 = vmatprep.mubr.msk.f32.mxu0 %vm6524_vm1, %v6523_v0 }
 0x6f9   : > { %v1811_v24 = vmul.f32 %v6398_v22, %v6390_v59  ;;  %5854 = vmatprep.subr.mxu0 %v6523_v0  ;;  %v2351_v26 = vpop.permute.xlu1 %2350 }
 0x6fb   : > { %5847 = vmatmul.mubr.msk.f32.vlgmr.msra.gmra.mrb[18].mxu0 %vm794_vm2, %v1811_v24 }
 0x6fc   : > { %5856 = vmatprep.mubr.msk.f32.mxu0 %vm6524_vm1, %v6523_v0 }
 0x6ff   : > { %5855 = vmatpush3.xpose.msk.msra.mxu0 %vm794_vm2, %v2197_v14 }
 0x700   : > { %5864 = vmatprep.subr.mxu0 %v6523_v0 }
 0x702   : > { %5857 = vmatmul.mubr.msk.f32.vlgmr.msra.gmra.mrb[20].mxu0 %vm794_vm2, %v2195_v23 }
 0x703   : > { %5865 = vmatpush3.xpose.msk.msra.mxu0 %vm794_vm2, %v2353_v25  ;;  %5866 = vmatprep.mubr.msk.f32.mxu0 %vm6524_vm1, %v6523_v0 }
 0x704   : > { %5874 = vmatprep.subr.mxu0 %v6523_v0 }
 0x706   : > { %5867 = vmatmul.mubr.msk.f32.vlgmr.msra.gmra.mrb[22].mxu0 %vm794_vm2, %v2351_v26 }
 0x707   : > { %5876 = vmatprep.mubr.msk.f32.mxu0 %vm6524_vm1, %v6523_v0 }
 0x79d   : > { %v6884_v27 = vpop.f32.mrb[12].mxu1 }
 0x79e   : > { %v5833_v28 = vpop.f32.mrb[13].mxu1 }
 0x7a1   : > { %v6886_v30 = vpop.f32.mrb[14].mxu1 }
 0x7a2   : > { %v5843_v31 = vpop.f32.mrb[15].mxu1 }
 0x7a8   : > { %v2190_v32 = vpop.f32.mrb[16].mxu1 }
 0x7a9   : > { %v2428_v33 = vmul.f32 0.35355338, %v2190_v32  ;;  %v5853_v34 = vpop.f32.mrb[17].mxu1 }
 0x7ab   : > { %v2432_v35 = vsel %vm794_vm2, %v2428_v33, -inf }
 0x7ac   : > { %2433 = vmax.xlane.f32.xlu0 %v2432_v35  ;;  %v2346_v36 = vpop.f32.mrb[18].mxu1 }
 0x7ad   : > { %v5863_v37 = vpop.f32.mrb[19].mxu1  ;;  %v2430_v49 = vmul.f32 0.35355338, %v2346_v36 }
 0x7af   : > { %v2438_v51 = vsel %vm794_vm2, %v2430_v49, -inf }
 0x7ca   : > { %v6889_v38 = vpop.f32.mrb[16].mxu0 }
 0x7cb   : > { %v5838_v39 = vpop.f32.mrb[17].mxu0 }
 0x7ce   : > { %v6891_v40 = vpop.f32.mrb[18].mxu0 }
 0x7cf   : > { %v5848_v41 = vpop.f32.mrb[19].mxu0 }
 0x7d5   : > { %v2268_v42 = vpop.f32.mrb[20].mxu0 }
 0x7d6   : > { %v2429_v43 = vmul.f32 0.35355338, %v2268_v42  ;;  %v5858_v44 = vpop.f32.mrb[21].mxu0 }
 0x7d8   : > { %v2435_v45 = vsel %vm794_vm2, %v2429_v43, -inf }
 0x7d9   : > { %2436 = vmax.xlane.f32.xlu1 %v2435_v45  ;;  %v2424_v46 = vpop.f32.mrb[22].mxu0 }
 0x7da   : > { %v2431_v47 = vmul.f32 0.35355338, %v2424_v46  ;;  %v5868_v48 = vpop.f32.mrb[23].mxu0 }
 0x7dc   : > { %v2441_v50 = vsel %vm794_vm2, %v2431_v47, -inf }
 0x7dd   : > { %2442 = vmax.xlane.f32.xlu0 %v2441_v50 }
 0x7e1   : > { %2439 = vmax.xlane.f32.xlu0 %v2438_v51 }
 0x7ea   : > { %2552 = vrot.lane.b32.xlu1 %v6700_v3, %s7489_s24 }
 0x7ee   : > { %2628 = vrot.lane.b32.xlu1 %v6708_v8, %s7489_s24 }
 0x7f2   : > { %2704 = vrot.lane.b32.xlu1 %v6712_v9, %s7489_s24 }
 0x7f7   : > { %2476 = vrot.lane.b32.xlu0 %v6702_v5, %s7489_s24  ;;  %s7516_s24 = smov 40  }
 0x839   : > { %v2434_v52 = vpop.xlane.xlu0 %2433 }
 0x83a   : > { %v2444_v53 = vsub.f32 %v2428_v33, %v2434_v52 }
 0x83c   : > { %v2448_v54 = vmul.f32 1.442695, %v2444_v53 }
 0x83e   : > { %6399 = vpow2.f32 %v2448_v54 }
 0x848   : > { %v6400_v55 = vpop.eup %6399 }
 0x849   : > { %v2456_v56 = vsel %vm794_vm2, %v6400_v55, 0.0 }
 0x84a   : > { %2457 = vadd.xlane.f32.xlu0 %v2456_v56 }
 0x860   : > { %2782 = vrot.lane.b32.xlu0 %v6702_v5, %s7487_s25 }
 0x866   : > { %v2437_v57 = vpop.xlane.xlu1 %2436 }
 0x867   : > { %v2445_v58 = vsub.f32 %v2429_v43, %v2437_v57 }
 0x869   : > { %v2450_v59 = vmul.f32 1.442695, %v2445_v58 }
 0x86a   : > { %v2553_v60 = vpop.permute.xlu1 %2552  ;;  %v2443_v61 = vpop.xlane.xlu0 %2442 }
 0x86b   : > { %6401 = vpow2.f32 %v2450_v59  ;;  %5875 = vmatpush3.msra.mxu0 %v2553_v60  ;;  %v2447_v11 = vsub.f32 %v2431_v47, %v2443_v61 }
 0x86c   : > { %5884 = vmatprep.subr.mxu0 %v6523_v0 }
 0x86d   : > { %v2454_v12 = vmul.f32 1.442695, %v2447_v11 }
 0x86e   : > { %v2440_v62 = vpop.xlane.xlu0 %2439  ;;  %v2629_v21 = vpop.permute.xlu1 %2628 }
 0x86f   : > { %v2446_v63 = vsub.f32 %v2430_v49, %v2440_v62 }
 0x871   : > { %v2452_v1 = vmul.f32 1.442695, %v2446_v63 }
 0x872   : > { %v2477_v2 = vpop.permute.xlu0 %2476  ;;  %v2705_v22 = vpop.permute.xlu1 %2704 }
 0x873   : > { %6403 = vpow2.f32 %v2452_v1  ;;  %5870 = vmatpush3.msra.mxu1 %v2477_v2 }
 0x874   : > { %5879 = vmatprep.subr.mxu1 %v6523_v0  ;;  %6405 = vpow2.f32 %v2454_v12 }
 0x875   : > { %v6402_v4 = vpop.eup %6401 }
 0x876   : > { %v2459_v6 = vsel %vm794_vm2, %v6402_v4, 0.0 }
 0x877   : > { %2460 = vadd.xlane.f32.xlu1 %v2459_v6 }
 0x87d   : > { %v6404_v7 = vpop.eup %6403 }
 0x87e   : > { %v2462_v10 = vsel %vm794_vm2, %v6404_v7, 0.0  ;;  %v6406_v13 = vpop.eup %6405 }
 0x87f   : > { %2463 = vadd.xlane.f32.xlu0 %v2462_v10  ;;  %v2465_v14 = vsel %vm794_vm2, %v6406_v13, 0.0 }
 0x888   : > { %2860 = vrot.lane.b32.xlu1 %v6700_v3, %s7487_s25 }
 0x895   : > { %2780 = vrot.lane.b32.xlu0 %v6702_v5, %s7481_s3 }
 0x899   : > { %2938 = vrot.lane.b32.xlu0 %v6708_v8, %s7487_s25 }
 0x89d   : > { %2936 = vrot.lane.b32.xlu0 %v6708_v8, %s7481_s3 }
 0x8ac   : > { %2466 = vadd.xlane.f32.xlu1 %v2465_v14 }
 0x8bd   : > { %2858 = vrot.lane.b32.xlu1 %v6700_v3, %s7481_s3 }
 0x8c1   : > { %3016 = vrot.lane.b32.xlu1 %v6712_v9, %s7487_s25  ;;  %s7517_s25 = smov 8  }
 0x8c5   : > { %3014 = vrot.lane.b32.xlu1 %v6712_v9, %s7481_s3  ;;  %s6537_s3 = smov 16  }
 0x8d7   : > { %v2458_v17 = vpop.xlane.xlu0 %2457 }
 0x8d8   : > { %6407 = vrcp.f32 %v2458_v17 }
 0x8db   : > { %v2783_v24 = vpop.permute.xlu0 %2782 }
 0x8e2   : > { %v6408_v18 = vpop.eup %6407 }
 0x8e3   : > { %v2472_v20 = vmul.f32 %v6408_v18, %v6400_v55 }
 0x8e5   : > { %5872 = vmatmul.mubr.msk.f32.vlgmr.msra.gmra.mrb[20].mxu1 %vm794_vm2, %v2472_v20 }
 0x8e6   : > { %5880 = vmatpush3.msra.mxu1 %v2629_v21  ;;  %5881 = vmatprep.mubr.msk.f32.mxu1 %vm6524_vm1, %v6523_v0 }
 0x8e7   : > { %5889 = vmatprep.subr.mxu1 %v6523_v0 }
 0x904   : > { %v2461_v23 = vpop.xlane.xlu1 %2460 }
 0x905   : > { %6409 = vrcp.f32 %v2461_v23 }
 0x908   : > { %v2861_v36 = vpop.permute.xlu1 %2860 }
 0x90c   : > { %v2464_v25 = vpop.xlane.xlu0 %2463 }
 0x90d   : > { %6411 = vrcp.f32 %v2464_v25 }
 0x90f   : > { %v6410_v26 = vpop.eup %6409 }
 0x910   : > { %v2473_v28 = vmul.f32 %v6410_v26, %v6402_v4  ;;  %v2781_v31 = vpop.permute.xlu0 %2780 }
 0x912   : > { %5877 = vmatmul.mubr.msk.f32.vlgmr.msra.gmra.mrb[24].mxu0 %vm794_vm2, %v2473_v28 }
 0x913   : > { %5885 = vmatpush3.msra.mxu0 %v2705_v22  ;;  %5886 = vmatprep.mubr.msk.f32.mxu0 %vm6524_vm1, %v6523_v0 }
 0x914   : > { %5894 = vmatprep.subr.mxu0 %v6523_v0  ;;  %v2939_v34 = vpop.permute.xlu0 %2938 }
 0x917   : > { %v6412_v32 = vpop.eup %6411 }
 0x918   : > { %v2474_v33 = vmul.f32 %v6412_v32, %v6404_v7  ;;  %v2937_v35 = vpop.permute.xlu0 %2936 }
 0x91a   : > { %5882 = vmatmul.mubr.msk.f32.vlgmr.msra.gmra.mrb[22].mxu1 %vm794_vm2, %v2474_v33 }
 0x91b   : > { %5890 = vmatpush3.xpose.msk.msra.mxu1 %vm794_vm2, %v2783_v24  ;;  %5891 = vmatprep.mubr.msk.f32.mxu1 %vm6524_vm1, %v6523_v0 }
 0x91c   : > { %5899 = vmatprep.subr.mxu1 %v6523_v0 }
 0x91e   : > { %5892 = vmatmul.mubr.msk.f32.vlgmr.msra.gmra.mrb[24].mxu1 %vm794_vm2, %v2781_v31 }
 0x91f   : > { %5900 = vmatpush3.xpose.msk.msra.mxu1 %vm794_vm2, %v2939_v34  ;;  %5901 = vmatprep.mubr.msk.f32.mxu1 %vm6524_vm1, %v6523_v0 }
 0x920   : > { %5909 = vmatprep.subr.mxu1 %v6523_v0 }
 0x922   : > { %5902 = vmatmul.mubr.msk.f32.vlgmr.msra.gmra.mrb[26].mxu1 %vm794_vm2, %v2937_v35 }
 0x923   : > { %5911 = vmatprep.mubr.msk.f32.mxu1 %vm6524_vm1, %v6523_v0 }
 0x939   : > { %v2467_v37 = vpop.xlane.xlu1 %2466 }
 0x93a   : > { %6413 = vrcp.f32 %v2467_v37 }
 0x93d   : > { %v2859_v39 = vpop.permute.xlu1 %2858 }
 0x941   : > { %v3017_v43 = vpop.permute.xlu1 %3016 }
 0x944   : > { %v6414_v41 = vpop.eup %6413 }
 0x945   : > { %v2475_v42 = vmul.f32 %v6414_v41, %v6406_v13  ;;  %v3015_v44 = vpop.permute.xlu1 %3014 }
 0x947   : > { %5887 = vmatmul.mubr.msk.f32.vlgmr.msra.gmra.mrb[26].mxu0 %vm794_vm2, %v2475_v42 }
 0x948   : > { %5895 = vmatpush3.xpose.msk.msra.mxu0 %vm794_vm2, %v2861_v36  ;;  %5896 = vmatprep.mubr.msk.f32.mxu0 %vm6524_vm1, %v6523_v0 }
 0x949   : > { %5904 = vmatprep.subr.mxu0 %v6523_v0 }
 0x94b   : > { %5897 = vmatmul.mubr.msk.f32.vlgmr.msra.gmra.mrb[28].mxu0 %vm794_vm2, %v2859_v39 }
 0x94c   : > { %5905 = vmatpush3.xpose.msk.msra.mxu0 %vm794_vm2, %v3017_v43  ;;  %5906 = vmatprep.mubr.msk.f32.mxu0 %vm6524_vm1, %v6523_v0 }
 0x94d   : > { %5914 = vmatprep.subr.mxu0 %v6523_v0 }
 0x94f   : > { %5907 = vmatmul.mubr.msk.f32.vlgmr.msra.gmra.mrb[30].mxu0 %vm794_vm2, %v3015_v44 }
 0x950   : > { %5916 = vmatprep.mubr.msk.f32.mxu0 %vm6524_vm1, %v6523_v0 }
 0x9b8   : > { %v2548_v45 = vpop.f32.mrb[20].mxu1 }
 0x9b9   : > { %v5873_v46 = vpop.f32.mrb[21].mxu1 }
 0x9ba   : > { %v3506_v46 = vld [vmem:[%s7469_s9] sm:$0xff] }
 0x9e5   : > { %v6960_v47 = vpop.f32.mrb[24].mxu0 }
 0x9e6   : > { %v5878_v48 = vpop.f32.mrb[25].mxu0 }
 0x9e7   : > { %v3508_v48 = vld [vmem:[%s7469_s9 + $0x10] sm:$0xff] }
 0x9ed   : > { %v6962_v49 = vpop.f32.mrb[22].mxu1 }
 0x9ee   : > { %v5883_v50 = vpop.f32.mrb[23].mxu1 }
 0x9f1   : > { %v2854_v51 = vpop.f32.mrb[24].mxu1 }
 0x9f2   : > { %v3092_v52 = vmul.f32 0.35355338, %v2854_v51  ;;  %v5893_v53 = vpop.f32.mrb[25].mxu1 }
 0x9f4   : > { %v3096_v54 = vsel %vm794_vm2, %v3092_v52, -inf }
 0x9f5   : > { %3097 = vmax.xlane.f32.xlu0 %v3096_v54  ;;  %v3010_v55 = vpop.f32.mrb[26].mxu1 }
 0x9f6   : > { %v3094_v56 = vmul.f32 0.35355338, %v3010_v55  ;;  %v5903_v57 = vpop.f32.mrb[27].mxu1 }
 0x9f8   : > { %v3102_v58 = vsel %vm794_vm2, %v3094_v56, -inf }
 0x9f9   : > { %3103 = vmax.xlane.f32.xlu0 %v3102_v58 }
 0xa1a   : > { %v6966_v59 = vpop.f32.mrb[26].mxu0 }
 0xa1b   : > { %v5888_v60 = vpop.f32.mrb[27].mxu0 }
 0xa1e   : > { %v2932_v61 = vpop.f32.mrb[28].mxu0 }
 0xa1f   : > { %v3093_v62 = vmul.f32 0.35355338, %v2932_v61  ;;  %v5898_v63 = vpop.f32.mrb[29].mxu0 }
 0xa21   : > { %v3099_v1 = vsel %vm794_vm2, %v3093_v62, -inf }
 0xa22   : > { %3100 = vmax.xlane.f32.xlu1 %v3099_v1  ;;  %v3088_v2 = vpop.f32.mrb[30].mxu0 }
 0xa23   : > { %v3095_v4 = vmul.f32 0.35355338, %v3088_v2  ;;  %v5908_v6 = vpop.f32.mrb[31].mxu0 }
 0xa25   : > { %v3105_v7 = vsel %vm794_vm2, %v3095_v4, -inf }
 0xa26   : > { %3106 = vmax.xlane.f32.xlu0 %v3105_v7 }
 0xa82   : > { %v3098_v10 = vpop.xlane.xlu0 %3097 }
 0xa83   : > { %v3108_v11 = vsub.f32 %v3092_v52, %v3098_v10 }
 0xa85   : > { %v3112_v12 = vmul.f32 1.442695, %v3108_v11 }
 0xa86   : > { %v3104_v13 = vpop.xlane.xlu0 %3103 }
 0xa87   : > { %6415 = vpow2.f32 %v3112_v12  ;;  %v3110_v14 = vsub.f32 %v3094_v56, %v3104_v13 }
 0xa89   : > { %v3116_v17 = vmul.f32 1.442695, %v3110_v14 }
 0xa8b   : > { %6417 = vpow2.f32 %v3116_v17 }
 0xa91   : > { %v6416_v18 = vpop.eup %6415 }
 0xa92   : > { %v3120_v20 = vsel %vm794_vm2, %v6416_v18, 0.0 }
 0xa93   : > { %3121 = vadd.xlane.f32.xlu0 %v3120_v20 }
 0xa95   : > { %v6418_v21 = vpop.eup %6417 }
 0xa96   : > { %v3126_v22 = vsel %vm794_vm2, %v6418_v21, 0.0 }
 0xa97   : > { %3127 = vadd.xlane.f32.xlu0 %v3126_v22 }
 0xaad   : > { %3140 = vrot.lane.b32.xlu0 %v6702_v5, %s7485_s26 }
 0xaaf   : > { %v3101_v23 = vpop.xlane.xlu1 %3100 }
 0xab0   : > { %v3109_v24 = vsub.f32 %v3093_v62, %v3101_v23 }
 0xab1   : > { %3448 = vrot.lane.b32.xlu0 %v6884_v27, %s7483_s20 }
 0xab2   : > { %v3114_v25 = vmul.f32 1.442695, %v3109_v24  ;;  %v5494_v24 = vld [vmem:[%s7470_s10] ss:$0 sm:$0xff] }
 0xab3   : > { %v3107_v26 = vpop.xlane.xlu0 %3106 }
 0xab4   : > { %6419 = vpow2.f32 %v3114_v25  ;;  %v3111_v28 = vsub.f32 %v3095_v4, %v3107_v26 }
 0xab5   : > { %3464 = vrot.lane.b32.xlu0 %v2548_v45, %s6537_s3 }
 0xab6   : > { %v3118_v31 = vmul.f32 1.442695, %v3111_v28 }
 0xab8   : > { %6421 = vpow2.f32 %v3118_v31 }
 0xab9   : > { %3452 = vrot.lane.b32.xlu0 %v6886_v30, %s7483_s20 }
 0xabe   : > { %v6420_v32 = vpop.eup %6419 }
 0xabf   : > { %v3123_v5 = vsel %vm794_vm2, %v6420_v32, 0.0 }
 0xac0   : > { %3124 = vadd.xlane.f32.xlu1 %v3123_v5 }
 0xac2   : > { %v6422_v33 = vpop.eup %6421 }
 0xac3   : > { %v3129_v34 = vsel %vm794_vm2, %v6422_v33, 0.0 }
 0xac4   : > { %3130 = vadd.xlane.f32.xlu1 %v3129_v34 }
 0xad5   : > { %3216 = vrot.lane.b32.xlu1 %v6700_v3, %s7485_s26 }
 0xad9   : > { %3292 = vrot.lane.b32.xlu1 %v6708_v8, %s7485_s26 }
 0xadd   : > { %3368 = vrot.lane.b32.xlu1 %v6712_v9, %s7485_s26 }
 0xae1   : > { %3450 = vrot.lane.b32.xlu1 %v6889_v38, %s7483_s20 }
 0xae5   : > { %3466 = vrot.lane.b32.xlu1 %v6960_v47, %s6537_s3  ;;  %v3507_v47 = vld [vmem:[%s7469_s9 + $0x8] sm:$0xff] }
 0xae6   : > { %v6127_v50 = vpack.c.bf16 %v3507_v47, %v3506_v46 }
 0xae9   : > { %3454 = vrot.lane.b32.xlu1 %v6891_v40, %s7483_s20  ;;  %s6538_s20 = smov 24  }
 0xb20   : > { %v3122_v27 = vpop.xlane.xlu0 %3121 }
 0xb21   : > { %6423 = vrcp.f32 %v3122_v27 }
 0xb24   : > { %v3128_v30 = vpop.xlane.xlu0 %3127 }
 0xb25   : > { %6425 = vrcp.f32 %v3128_v30 }
 0xb28   : > { %v3141_v35 = vpop.permute.xlu0 %3140 }
 0xb29   : > { %5910 = vmatpush3.msra.mxu1 %v3141_v35 }
 0xb2a   : > { %5919 = vmatprep.subr.mxu1 %v6523_v0 }
 0xb2b   : > { %v6424_v3 = vpop.eup %6423 }
 0xb2c   : > { %v3136_v8 = vmul.f32 %v6424_v3, %v6416_v18  ;;  %v3449_v61 = vpop.permute.xlu0 %3448 }
 0xb2e   : > { %5912 = vmatmul.mubr.msk.f32.vlgmr.msra.gmra.mrb[28].mxu1 %vm794_vm2, %v3136_v8 }
 0xb2f   : > { %5921 = vmatprep.mubr.msk.f32.mxu1 %vm6524_vm1, %v6523_v0  ;;  %v6426_v36 = vpop.eup %6425 }
 0xb30   : > { %v3138_v42 = vmul.f32 %v6426_v36, %v6418_v21  ;;  %v3465_v62 = vpop.permute.xlu0 %3464 }
 0xb34   : > { %v3453_v63 = vpop.permute.xlu0 %3452 }
 0xb35   : > { %v3494_v11 = vsel %vm794_vm2, %v6812_v19, %v3453_v63  ;;  %v3693_v63 = vld [vmem:[%s7471_s11 + $0x8] sm:$0xff] }
 0xb4d   : > { %v3125_v9 = vpop.xlane.xlu1 %3124 }
 0xb4e   : > { %6427 = vrcp.f32 %v3125_v9  ;;  %v6513_v9 = vld [vmem:[%s6655_s2 + $0x10] sm:$0xff] }
 0xb51   : > { %v3131_v38 = vpop.xlane.xlu1 %3130 }
 0xb52   : > { %6429 = vrcp.f32 %v3131_v38 }
 0xb55   : > { %v3217_v40 = vpop.permute.xlu1 %3216 }
 0xb56   : > { %5915 = vmatpush3.msra.mxu0 %v3217_v40  ;;  %v6514_v40 = vld [vmem:[%s6655_s2 + $0x18] sm:$0xff] }
 0xb57   : > { %5924 = vmatprep.subr.mxu0 %v6523_v0 }
 0xb58   : > { %v6428_v37 = vpop.eup %6427 }
 0xb59   : > { %v3293_v39 = vpop.permute.xlu1 %3292  ;;  %v3137_v41 = vmul.f32 %v6428_v37, %v6420_v32  ;;  %v6511_v32 = vld [vmem:[%s6655_s2 + $0x8] sm:$0xff] }
 0xb5a   : > { %5920 = vmatpush3.msra.mxu1 %v3293_v39 }
 0xb5b   : > { %5917 = vmatmul.mubr.msk.f32.vlgmr.msra.gmra.mrb[32].mxu0 %vm794_vm2, %v3137_v41  ;;  %5922 = vmatmul.mubr.msk.f32.vlgmr.msra.gmra.mrb[30].mxu1 %vm794_vm2, %v3138_v42 }
 0xb5c   : > { %v6430_v43 = vpop.eup %6429  ;;  %5926 = vmatprep.mubr.msk.f32.mxu0 %vm6524_vm1, %v6523_v0  ;;  %v3509_v0 = vld [vmem:[%s7469_s9 + $0x18] sm:$0xff]  ;;  %6128 = vmatprep.subr.bf16.mxu1 %v6127_v50 }
 0xb5d   : > { %v3369_v44 = vpop.permute.xlu1 %3368  ;;  %v3139_v45 = vmul.f32 %v6430_v43, %v6422_v33  ;;  %v6131_v51 = vpack.c.bf16 %v3509_v0, %v3508_v48  ;;  %6130 = vmatpush3.bf16.msra.mxu1 %v6127_v50 }
 0xb5e   : > { %5925 = vmatpush3.msra.mxu0 %v3369_v44 }
 0xb5f   : > { %5927 = vmatmul.mubr.msk.f32.vlgmr.msra.gmra.mrb[34].mxu0 %vm794_vm2, %v3139_v45  ;;  %6132 = vmatprep.subr.bf16.mxu1 %v6131_v51 }
 0xb61   : > { %6134 = vmatpush3.bf16.msra.mxu1 %v6131_v51  ;;  %v3451_v6 = vpop.permute.xlu1 %3450 }
 0xb62   : > { %v3493_v12 = vsel %vm794_vm2, %v6808_v15, %v3451_v6 }
 0xc01   : > { %v3212_v52 = vpop.f32.mrb[28].mxu1 }
 0xc02   : > { %3480 = vrot.lane.b32.xlu0 %v3212_v52, %s6538_s20  ;;  %v5913_v53 = vpop.f32.mrb[29].mxu1 }
 0xc06   : > { %3468 = vrot.lane.b32.xlu0 %v6962_v49, %s6537_s3  ;;  %v3492_v49 = vsel %vm794_vm2, %v6810_v16, %v3449_v61 }
 0xc07   : > { %v3497_v1 = vsel %vm3496_vm3, %v3492_v49, %v3465_v62  ;;  %v3692_v62 = vld [vmem:[%s7471_s11] sm:$0xff] }
 0xc08   : > { %v6135_v49 = vpack.c.bf16 %v3693_v63, %v3692_v62 }
 0xc0a   : > { %6136 = vmatprep.subr.bf16.mxu0 %v6135_v49 }
 0xc0b   : > { %6138 = vmatpush3.bf16.msra.mxu0 %v6135_v49 }
 0xc2e   : > { %v3288_v54 = vpop.f32.mrb[32].mxu0  ;;  %v3364_v55 = vpop.f32.mrb[30].mxu1 }
 0xc2f   : > { %3484 = vrot.lane.b32.xlu0 %v3364_v55, %s6538_s20  ;;  %v5923_v56 = vpop.f32.mrb[31].mxu1  ;;  %3482 = vrot.lane.b32.xlu1 %v3288_v54, %s6538_s20  ;;  %v5918_v57 = vpop.f32.mrb[33].mxu0 }
 0xc32   : > { %v3440_v58 = vpop.f32.mrb[34].mxu0 }
 0xc33   : > { %3470 = vrot.lane.b32.xlu1 %v6966_v59, %s6537_s3  ;;  %v5928_v60 = vpop.f32.mrb[35].mxu0  ;;  %v3467_v59 = vpop.permute.xlu1 %3466 }
 0xc34   : > { %v3498_v13 = vsel %vm3496_vm3, %v3493_v12, %v3467_v59 }
 0xc37   : > { %3486 = vrot.lane.b32.xlu1 %v3440_v58, %s6538_s20  ;;  %v3455_v7 = vpop.permute.xlu1 %3454 }
 0xc38   : > { %v3495_v15 = vsel %vm794_vm2, %v6816_v29, %v3455_v7  ;;  %v6512_v29 = vld [vmem:[%s6655_s2] sm:$0xff]  ;;  %s7513_s2 = smov 48  }
 0xc74   : > { %v3481_v2 = vpop.permute.xlu0 %3480 }
 0xc75   : > { %v3502_v4 = vsel %vm3501_vm4, %v3497_v1, %v3481_v2  ;;  %v3694_v1 = vld [vmem:[%s7471_s11 + $0x10] sm:$0xff]  ;;  %v3695_v2 = vld [vmem:[%s7471_s11 + $0x18] sm:$0xff] }
 0xc76   : > { %5937 = vmatprep.mubr.msk.f32.mxu1 %vm609_vm0, %v3502_v4  ;;  %v6139_v4 = vpack.c.bf16 %v3695_v2, %v3694_v1 }
 0xc78   : > { %v3469_v10 = vpop.permute.xlu0 %3468  ;;  %6140 = vmatprep.subr.bf16.mxu0 %v6139_v4 }
 0xc79   : > { %v3499_v16 = vsel %vm3496_vm3, %v3494_v11, %v3469_v10  ;;  %6142 = vmatpush3.bf16.msra.mxu0 %v6139_v4 }
 0xca1   : > { %v3485_v14 = vpop.permute.xlu0 %3484  ;;  %v3483_v17 = vpop.permute.xlu1 %3482 }
 0xca2   : > { %v3504_v18 = vsel %vm3501_vm4, %v3499_v16, %v3485_v14  ;;  %v3503_v20 = vsel %vm3501_vm4, %v3498_v13, %v3483_v17 }
 0xca3   : > { %5938 = vmatmul.mubr.msk.f32.vlgmr.msra.gmra.mrb[32].mxu1 %vm609_vm0, %v3503_v20 }
 0xca4   : > { %5940 = vmatprep.mubr.msk.f32.mxu1 %vm609_vm0, %v3504_v18 }
 0xca5   : > { %v3471_v19 = vpop.permute.xlu1 %3470 }
 0xca6   : > { %v3500_v21 = vsel %vm3496_vm3, %v3495_v15, %v3471_v19  ;;  %v5499_v19 = vld [vmem:[%s7506_s23] ss:$0 sm:$0xff]  ;;  %s7515_s23 = smov 104  }
 0xca9   : > { %v3487_v22 = vpop.permute.xlu1 %3486 }
 0xcaa   : > { %v3505_v23 = vsel %vm3501_vm4, %v3500_v21, %v3487_v22 }
 0xcab   : > { %5941 = vmatmul.mubr.msk.f32.gmra.mrb[34].mxu1 %vm609_vm0, %v3505_v23 }
 0xd76   : > { %v5939_v25 = vpop.f32.mrb[32].mxu1 }
 0xd77   : > { %v3601_v26 = vadd.f32 %v5939_v25, %v5494_v24  ;;  %v3595_v28 = vpop.f32.mrb[33].mxu1 }
 0xd78   : > { %v3596_v31 = vadd.f32 %v5494_v24, %v3595_v28 }
 0xd79   : > { %v7047_v5 = vadd.f32 %v6511_v32, %v3601_v26 }
 0xd7a   : > { %v7050_v33 = vadd.f32 %v6512_v29, %v3596_v31 }
 0xd7b   : > { %v3623_v34 = vsel %vm609_vm0, %v7047_v5, 0.0 }
 0xd7c   : > { %3624 = vadd.xlane.f32.xlu1 %v3623_v34  ;;  %v3620_v27 = vsel %vm609_vm0, %v7050_v33, 0.0 }
 0xd7d   : > { %3621 = vadd.xlane.f32.xlu0 %v3620_v27 }
 0xd7e   : > { %v5942_v30 = vpop.f32.mrb[34].mxu1 }
 0xd7f   : > { %v3605_v35 = vpop.f32.mrb[35].mxu1  ;;  %v3611_v3 = vadd.f32 %v5942_v30, %v5494_v24 }
 0xd80   : > { %v3606_v8 = vadd.f32 %v5494_v24, %v3605_v35  ;;  %v5500_v24 = vld [vmem:[%s7464_s4] ss:$0 sm:$0xff] }
 0xd81   : > { %v7060_v36 = vadd.f32 %v6514_v40, %v3611_v3 }
 0xd82   : > { %v7057_v38 = vadd.f32 %v6513_v9, %v3606_v8  ;;  %v5501_v9 = vld [vmem:[%s7472_s12] ss:$0 sm:$0xff] }
 0xd83   : > { %v3629_v39 = vsel %vm609_vm0, %v7060_v36, 0.0 }
 0xd84   : > { %v3626_v37 = vsel %vm609_vm0, %v7057_v38, 0.0 }
 0xd85   : > { %3627 = vadd.xlane.f32.xlu0 %v3626_v37 }
 0xd89   : > { %3630 = vadd.xlane.f32.xlu0 %v3629_v39 }
 0xe09   : > { %v3625_v41 = vpop.xlane.xlu1 %3624 }
 0xe0a   : > { %v3633_v42 = vmul.f32 0.03125, %v3625_v41  ;;  %v3622_v43 = vpop.xlane.xlu0 %3621 }
 0xe0b   : > { %v3632_v44 = vmul.f32 0.03125, %v3622_v43 }
 0xe0c   : > { %v3637_v45 = vsub.f32 %v7047_v5, %v3633_v42 }
 0xe0d   : > { %v3636_v46 = vsub.f32 %v7050_v33, %v3632_v44 }
 0xe0e   : > { %v3641_v47 = vmul.f32 %v3637_v45, %v3637_v45 }
 0xe0f   : > { %v3640_v48 = vmul.f32 %v3636_v46, %v3636_v46 }
 0xe10   : > { %v3647_v50 = vsel %vm609_vm0, %v3641_v47, 0.0 }
 0xe11   : > { %3648 = vadd.xlane.f32.xlu1 %v3647_v50  ;;  %v3644_v0 = vsel %vm609_vm0, %v3640_v48, 0.0 }
 0xe12   : > { %3645 = vadd.xlane.f32.xlu0 %v3644_v0  ;;  %v3628_v51 = vpop.xlane.xlu0 %3627 }
 0xe13   : > { %v3634_v52 = vmul.f32 0.03125, %v3628_v51 }
 0xe15   : > { %v3638_v53 = vsub.f32 %v7057_v38, %v3634_v52 }
 0xe16   : > { %v3631_v54 = vpop.xlane.xlu0 %3630 }
 0xe17   : > { %v3635_v55 = vmul.f32 0.03125, %v3631_v54  ;;  %v3642_v56 = vmul.f32 %v3638_v53, %v3638_v53 }
 0xe19   : > { %v3639_v57 = vsub.f32 %v7060_v36, %v3635_v55  ;;  %v3650_v58 = vsel %vm609_vm0, %v3642_v56, 0.0 }
 0xe1a   : > { %3651 = vadd.xlane.f32.xlu0 %v3650_v58 }
 0xe1b   : > { %v3643_v60 = vmul.f32 %v3639_v57, %v3639_v57 }
 0xe1d   : > { %v3653_v61 = vsel %vm609_vm0, %v3643_v60, 0.0 }
 0xe1e   : > { %3654 = vadd.xlane.f32.xlu1 %v3653_v61 }
 0xe9e   : > { %v3649_v6 = vpop.xlane.xlu1 %3648 }
 0xe9f   : > { %v3657_v59 = vmul.f32 0.03125, %v3649_v6  ;;  %v3646_v7 = vpop.xlane.xlu0 %3645 }
 0xea0   : > { %v3656_v10 = vmul.f32 0.03125, %v3646_v7 }
 0xea1   : > { %v3661_v11 = vadd.f32 1e-05, %v3657_v59 }
 0xea2   : > { %v3660_v12 = vadd.f32 1e-05, %v3656_v10 }
 0xea3   : > { %6431 = vrsqrt.f32 %v3661_v11 }
 0xea4   : > { %6433 = vrsqrt.f32 %v3660_v12 }
 0xea7   : > { %v3652_v13 = vpop.xlane.xlu0 %3651 }
 0xea8   : > { %v3658_v16 = vmul.f32 0.03125, %v3652_v13 }
 0xeaa   : > { %v3662_v14 = vadd.f32 1e-05, %v3658_v16 }
 0xeab   : > { %v3655_v17 = vpop.xlane.xlu1 %3654 }
 0xeac   : > { %6435 = vrsqrt.f32 %v3662_v14  ;;  %v3659_v18 = vmul.f32 0.03125, %v3655_v17 }
 0xead   : > { %v6432_v20 = vpop.eup %6431 }
 0xeae   : > { %v6434_v15 = vpop.eup %6433  ;;  %v3669_v21 = vmul.f32 %v6432_v20, %v3637_v45  ;;  %v3663_v22 = vadd.f32 1e-05, %v3659_v18 }
 0xeaf   : > { %v3668_v23 = vmul.f32 %v6434_v15, %v3636_v46 }
 0xeb0   : > { %6437 = vrsqrt.f32 %v3663_v22  ;;  %v3679_v25 = vmul.f32 %v5499_v19, %v3669_v21 }
 0xeb1   : > { %v3678_v26 = vmul.f32 %v5499_v19, %v3668_v23 }
 0xeb2   : > { %v3689_v31 = vadd.f32 %v5500_v24, %v3679_v25 }
 0xeb3   : > { %v3688_v28 = vadd.f32 %v5500_v24, %v3678_v26 }
 0xeb5   : > { %5951 = vmatprep.mubr.msk.f32.mxu0 %vm609_vm0, %v3688_v28 }
 0xeb6   : > { %v6436_v32 = vpop.eup %6435  ;;  %5952 = vmatmul.mubr.msk.f32.vlgmr.msra.gmra.mrb[36].mxu0 %vm609_vm0, %v3689_v31 }
 0xeb7   : > { %v3670_v29 = vmul.f32 %v6436_v32, %v3638_v53 }
 0xeb9   : > { %v3680_v34 = vmul.f32 %v5499_v19, %v3670_v29 }
 0xeba   : > { %v6438_v27 = vpop.eup %6437 }
 0xebb   : > { %v3690_v30 = vadd.f32 %v5500_v24, %v3680_v34  ;;  %v3671_v35 = vmul.f32 %v6438_v27, %v3639_v57 }
 0xebd   : > { %5954 = vmatprep.mubr.msk.f32.mxu0 %vm609_vm0, %v3690_v30  ;;  %v3681_v3 = vmul.f32 %v5499_v19, %v3671_v35 }
 0xebf   : > { %v3691_v8 = vadd.f32 %v5500_v24, %v3681_v3 }
 0xec1   : > { %5955 = vmatmul.mubr.msk.f32.gmra.mrb[38].mxu0 %vm609_vm0, %v3691_v8 }
 0xf89   : > { %v5953_v40 = vpop.f32.mrb[36].mxu0 }
 0xf8a   : > { %v7099_v37 = vadd.f32 %v5953_v40, %v5501_v9  ;;  %v3781_v39 = vpop.f32.mrb[37].mxu0 }
 0xf8b   : > { %v7101_v41 = vadd.f32 %v5501_v9, %v3781_v39 }
 0xf8d   : > { %5965 = vmatprep.mubr.msk.f32.mxu1 %vm794_vm2, %v7101_v41  ;;  %v7107_v42 = vpack.i.bf16 %v7099_v37, %v7101_v41 }
 0xf8f   : > { %6280 = vrot.lane.b32.xlu0 %v7107_v42, %s6525_s27 }
 0xf94   : > { %v5956_v43 = vpop.f32.mrb[38].mxu0 }
 0xf95   : > { %v7111_v44 = vadd.f32 %v5956_v43, %v5501_v9  ;;  %v3791_v45 = vpop.f32.mrb[39].mxu0 }
 0xf96   : > { %v7113_v46 = vadd.f32 %v5501_v9, %v3791_v45 }
 0xf98   : > { %v7117_v47 = vpack.i.bf16 %v7111_v44, %v7113_v46 }
 0xf9a   : > { %6285 = vrot.lane.b32.xlu1 %v7117_v47, %s6525_s27  ;;  %s7509_s27 = smov 120  }
0x1001   : > { %v6281_v48 = vpop.permute.xlu0 %6280 }
0x1002   : > { %v6283_v50 = vunpack.i.h.bf16 %v6281_v48  ;;  %v6282_v0 = vunpack.i.l.bf16 %v6281_v48 }
0x1004   : > { %v6143_v52 = vpack.c.bf16 %v6283_v50, %v6282_v0 }
0x1006   : > { %6145 = vmatprep.subr.msk.bf16.mxu1 %vm7123_vm5, %v6143_v52 }
0x1007   : > { %6148 = vmatpush3.bf16.xpose.msk.msra.mxu1 %vm7123_vm5, %v6143_v52 }
0x100c   : > { %v6286_v53 = vpop.permute.xlu1 %6285 }
0x100d   : > { %v6288_v54 = vunpack.i.h.bf16 %v6286_v53  ;;  %v6287_v55 = vunpack.i.l.bf16 %v6286_v53 }
0x100f   : > { %v6149_v56 = vpack.c.bf16 %v6288_v54, %v6287_v55 }
0x1011   : > { %6151 = vmatprep.subr.msk.bf16.mxu1 %vm7123_vm5, %v6149_v56 }
0x1012   : > { %6154 = vmatpush3.bf16.xpose.msk.msra.mxu1 %vm7123_vm5, %v6149_v56 }
0x1019   : > { %5966 = vmatmul.mubr.msk.f32.vlgmr.msra.gmra.mrb[36].mxu1 %vm794_vm2, %v7099_v37 }
0x101a   : > { %5968 = vmatprep.mubr.msk.f32.mxu1 %vm794_vm2, %v7113_v46 }
0x101d   : > { %5969 = vmatmul.mubr.msk.f32.gmra.mrb[38].mxu1 %vm794_vm2, %v7111_v44 }
0x10ec   : > { %v5967_v57 = vpop.f32.mrb[36].mxu1 }
0x10ed   : > { %v3914_v58 = vmul.f32 0.35355338, %v5967_v57  ;;  %v3894_v60 = vpop.f32.mrb[37].mxu1 }
0x10ee   : > { %v3913_v61 = vmul.f32 0.35355338, %v3894_v60 }
0x10ef   : > { %v3920_v62 = vsel %vm609_vm0, %v3914_v58, -inf }
0x10f0   : > { %3921 = vmax.xlane.f32.xlu0 %v3920_v62  ;;  %v5970_v63 = vpop.f32.mrb[38].mxu1  ;;  %v3917_v49 = vsel %vm609_vm0, %v3913_v61, -inf }
0x10f1   : > { %v3916_v1 = vmul.f32 0.35355338, %v5970_v63  ;;  %3918 = vmax.xlane.f32.xlu1 %v3917_v49  ;;  %v3904_v2 = vpop.f32.mrb[39].mxu1 }
0x10f2   : > { %v3915_v4 = vmul.f32 0.35355338, %v3904_v2 }
0x10f3   : > { %v3926_v6 = vsel %vm609_vm0, %v3916_v1, -inf }
0x10f4   : > { %v3923_v59 = vsel %vm609_vm0, %v3915_v4, -inf }
0x10f5   : > { %3927 = vmax.xlane.f32.xlu1 %v3926_v6  ;;  %3924 = vmax.xlane.f32.xlu0 %v3923_v59 }
0x117d   : > { %v3922_v7 = vpop.xlane.xlu0 %3921 }
0x117e   : > { %v3930_v10 = vsub.f32 %v3914_v58, %v3922_v7  ;;  %v3919_v11 = vpop.xlane.xlu1 %3918 }
0x117f   : > { %v3929_v12 = vsub.f32 %v3913_v61, %v3919_v11 }
0x1180   : > { %v3935_v13 = vmul.f32 1.442695, %v3930_v10 }
0x1181   : > { %v3933_v16 = vmul.f32 1.442695, %v3929_v12 }
0x1182   : > { %6439 = vpow2.f32 %v3935_v13  ;;  %v3925_v19 = vpop.xlane.xlu0 %3924  ;;  %v3928_v21 = vpop.xlane.xlu1 %3927 }
0x1183   : > { %6441 = vpow2.f32 %v3933_v16  ;;  %v3931_v15 = vsub.f32 %v3915_v4, %v3925_v19  ;;  %v3932_v23 = vsub.f32 %v3916_v1, %v3928_v21 }
0x1185   : > { %v3937_v22 = vmul.f32 1.442695, %v3931_v15  ;;  %v3939_v24 = vmul.f32 1.442695, %v3932_v23 }
0x1187   : > { %6443 = vpow2.f32 %v3937_v22 }
0x1188   : > { %6445 = vpow2.f32 %v3939_v24 }
0x118c   : > { %v6440_v14 = vpop.eup %6439 }
0x118d   : > { %v6442_v17 = vpop.eup %6441  ;;  %v3944_v18 = vsel %vm609_vm0, %v6440_v14, 0.0 }
0x118e   : > { %3945 = vadd.xlane.f32.xlu1 %v3944_v18  ;;  %v3941_v20 = vsel %vm609_vm0, %v6442_v17, 0.0 }
0x118f   : > { %3942 = vadd.xlane.f32.xlu0 %v3941_v20 }
0x1191   : > { %v6444_v25 = vpop.eup %6443 }
0x1192   : > { %v3947_v26 = vsel %vm609_vm0, %v6444_v25, 0.0  ;;  %v6446_v28 = vpop.eup %6445 }
0x1193   : > { %v3950_v31 = vsel %vm609_vm0, %v6446_v28, 0.0 }
0x119f   : > { %6295 = vrot.lane.b32.xlu1 %v7117_v47, %s6526_s28 }
0x11a3   : > { %6300 = vrot.lane.b32.xlu1 %v7107_v42, %s6527_s29 }
0x11a5   : > { %6290 = vrot.lane.b32.xlu0 %v7107_v42, %s6526_s28  ;;  %s7510_s28 = smov 56  }
0x11a7   : > { %6305 = vrot.lane.b32.xlu1 %v7117_v47, %s6527_s29  ;;  %s7511_s29 = smov 80  }
0x11c4   : > { %3948 = vadd.xlane.f32.xlu0 %v3947_v26 }
0x11cb   : > { %3951 = vadd.xlane.f32.xlu1 %v3950_v31 }
0x11da   : > { %4070 = vrot.lane.b32.xlu0 %v7101_v41, %s7509_s27 }
0x11dc   : > { %4072 = vrot.lane.b32.xlu1 %v7099_v37, %s7509_s27 }
0x11de   : > { %4074 = vrot.lane.b32.xlu0 %v7113_v46, %s7509_s27 }
0x11e0   : > { %4076 = vrot.lane.b32.xlu1 %v7111_v44, %s7509_s27  ;;  %s7518_s27 = sshll.u32 %s7520_s30, 5 }
0x121b   : > { %v3946_v32 = vpop.xlane.xlu1 %3945 }
0x121c   : > { %v3943_v29 = vpop.xlane.xlu0 %3942 }
0x121d   : > { %6447 = vrcp.f32 %v3943_v29 }
0x121e   : > { %6449 = vrcp.f32 %v3946_v32 }
0x121f   : > { %v6296_v34 = vpop.permute.xlu1 %6295 }
0x1220   : > { %v6291_v27 = vpop.permute.xlu0 %6290  ;;  %v6298_v30 = vunpack.i.h.bf16 %v6296_v34  ;;  %v6297_v35 = vunpack.i.l.bf16 %v6296_v34 }
0x1221   : > { %v6293_v3 = vunpack.i.h.bf16 %v6291_v27  ;;  %v6292_v8 = vunpack.i.l.bf16 %v6291_v27 }
0x1222   : > { %v6159_v39 = vpack.c.bf16 %v6298_v30, %v6297_v35 }
0x1223   : > { %v6155_v9 = vpack.c.bf16 %v6293_v3, %v6292_v8  ;;  %v6301_v40 = vpop.permute.xlu1 %6300 }
0x1224   : > { %v6303_v43 = vunpack.i.h.bf16 %v6301_v40  ;;  %v6302_v45 = vunpack.i.l.bf16 %v6301_v40 }
0x1225   : > { %6156 = vmatprep.subr.bf16.mxu0 %v6155_v9 }
0x1226   : > { %6158 = vmatpush3.bf16.msra.mxu0 %v6155_v9  ;;  %v6163_v52 = vpack.c.bf16 %v6303_v43, %v6302_v45 }
0x1227   : > { %v6448_v48 = vpop.eup %6447  ;;  %6160 = vmatprep.subr.bf16.mxu0 %v6159_v39  ;;  %v6306_v54 = vpop.permute.xlu1 %6305 }
0x1228   : > { %v6450_v50 = vpop.eup %6449  ;;  %v3957_v0 = vmul.f32 %v6448_v48, %v6442_v17  ;;  %v6308_v55 = vunpack.i.h.bf16 %v6306_v54  ;;  %v6307_v56 = vunpack.i.l.bf16 %v6306_v54 }
0x1229   : > { %v3958_v53 = vmul.f32 %v6450_v50, %v6440_v14 }
0x122a   : > { %6162 = vmatpush3.bf16.msra.mxu0 %v6159_v39  ;;  %5979 = vmatprep.mubr.msk.f32.mxu0 %vm609_vm0, %v3957_v0  ;;  %v6169_v57 = vpack.c.bf16 %v6308_v55, %v6307_v56 }
0x122b   : > { %6165 = vmatprep.subr.msk.bf16.mxu0 %vm7123_vm5, %v6163_v52 }
0x122d   : > { %5980 = vmatmul.mubr.msk.f32.vlgmr.msra.gmra.mrb[40].mxu0 %vm609_vm0, %v3958_v53 }
0x1233   : > { %6168 = vmatpush3.bf16.xpose.msk.msra.mxu0 %vm7123_vm5, %v6163_v52 }
0x1234   : > { %6171 = vmatprep.subr.msk.bf16.mxu0 %vm7123_vm5, %v6169_v57 }
0x123b   : > { %6174 = vmatpush3.bf16.xpose.msk.msra.mxu0 %vm7123_vm5, %v6169_v57 }
0x1251   : > { %v3949_v58 = vpop.xlane.xlu0 %3948 }
0x1252   : > { %6451 = vrcp.f32 %v3949_v58 }
0x1255   : > { %v4071_v49 = vpop.permute.xlu0 %4070 }
0x1258   : > { %v3952_v60 = vpop.xlane.xlu1 %3951 }
0x1259   : > { %6453 = vrcp.f32 %v3952_v60  ;;  %v4075_v4 = vpop.permute.xlu0 %4074 }
0x125c   : > { %v6452_v61 = vpop.eup %6451  ;;  %v4073_v2 = vpop.permute.xlu1 %4072 }
0x125d   : > { %v3959_v62 = vmul.f32 %v6452_v61, %v6444_v25 }
0x125f   : > { %5982 = vmatprep.mubr.msk.f32.mxu0 %vm609_vm0, %v3959_v62 }
0x1260   : > { %v4077_v6 = vpop.permute.xlu1 %4076 }
0x1263   : > { %v6454_v63 = vpop.eup %6453 }
0x1264   : > { %v3960_v1 = vmul.f32 %v6454_v63, %v6446_v28 }
0x1266   : > { %5983 = vmatmul.mubr.msk.f32.gmra.mrb[42].mxu0 %vm609_vm0, %v3960_v1 }
0x1267   : > { %5993 = vmatprep.mubr.msk.f32.mxu0 %vm794_vm2, %v4071_v49 }
0x126a   : > { %5994 = vmatmul.mubr.msk.f32.vlgmr.msra.gmra.mrb[44].mxu0 %vm794_vm2, %v4073_v2 }
0x126b   : > { %5996 = vmatprep.mubr.msk.f32.mxu0 %vm794_vm2, %v4075_v4 }
0x126e   : > { %5997 = vmatmul.mubr.msk.f32.gmra.mrb[46].mxu0 %vm794_vm2, %v4077_v6 }
0x1300   : > { %v7181_v59 = vpop.f32.mrb[40].mxu0 }
0x1301   : > { %v7183_v7 = vpop.f32.mrb[41].mxu0 }
0x1339   : > { %v7185_v10 = vpop.f32.mrb[42].mxu0 }
0x133a   : > { %v7187_v11 = vpop.f32.mrb[43].mxu0 }
0x133d   : > { %v5995_v12 = vpop.f32.mrb[44].mxu0 }
0x133e   : > { %v4188_v13 = vmul.f32 0.35355338, %v5995_v12  ;;  %v4168_v16 = vpop.f32.mrb[45].mxu0 }
0x133f   : > { %v4187_v14 = vmul.f32 0.35355338, %v4168_v16 }
0x1340   : > { %v4194_v17 = vsel %vm609_vm0, %v4188_v13, -inf }
0x1341   : > { %4195 = vmax.xlane.f32.xlu1 %v4194_v17  ;;  %v5998_v18 = vpop.f32.mrb[46].mxu0  ;;  %v4191_v20 = vsel %vm609_vm0, %v4187_v14, -inf }
0x1342   : > { %4192 = vmax.xlane.f32.xlu0 %v4191_v20  ;;  %v4178_v19 = vpop.f32.mrb[47].mxu0  ;;  %v4190_v21 = vmul.f32 0.35355338, %v5998_v18 }
0x1343   : > { %v4189_v15 = vmul.f32 0.35355338, %v4178_v19 }
0x1344   : > { %v4200_v23 = vsel %vm609_vm0, %v4190_v21, -inf }
0x1345   : > { %v4197_v22 = vsel %vm609_vm0, %v4189_v15, -inf }
0x1346   : > { %4198 = vmax.xlane.f32.xlu0 %v4197_v22 }
0x134a   : > { %4201 = vmax.xlane.f32.xlu0 %v4200_v23 }
0x13ce   : > { %v4196_v24 = vpop.xlane.xlu1 %4195 }
0x13cf   : > { %v4204_v25 = vsub.f32 %v4188_v13, %v4196_v24  ;;  %v4193_v26 = vpop.xlane.xlu0 %4192 }
0x13d0   : > { %v4203_v28 = vsub.f32 %v4187_v14, %v4193_v26 }
0x13d1   : > { %v4209_v31 = vmul.f32 1.442695, %v4204_v25 }
0x13d2   : > { %v4207_v32 = vmul.f32 1.442695, %v4203_v28 }
0x13d3   : > { %6455 = vpow2.f32 %v4209_v31  ;;  %v4199_v35 = vpop.xlane.xlu0 %4198 }
0x13d4   : > { %6457 = vpow2.f32 %v4207_v32  ;;  %v4205_v3 = vsub.f32 %v4189_v15, %v4199_v35 }
0x13d6   : > { %v4211_v8 = vmul.f32 1.442695, %v4205_v3 }
0x13d7   : > { %v4202_v9 = vpop.xlane.xlu0 %4201 }
0x13d8   : > { %v4206_v40 = vsub.f32 %v4190_v21, %v4202_v9  ;;  %6459 = vpow2.f32 %v4211_v8 }
0x13da   : > { %v4213_v39 = vmul.f32 1.442695, %v4206_v40 }
0x13dc   : > { %6461 = vpow2.f32 %v4213_v39 }
0x13dd   : > { %v6456_v29 = vpop.eup %6455 }
0x13de   : > { %v6458_v34 = vpop.eup %6457  ;;  %v4218_v27 = vsel %vm609_vm0, %v6456_v29, 0.0 }
0x13df   : > { %4219 = vadd.xlane.f32.xlu1 %v4218_v27  ;;  %v4215_v30 = vsel %vm609_vm0, %v6458_v34, 0.0 }
0x13e0   : > { %4216 = vadd.xlane.f32.xlu0 %v4215_v30 }
0x13e2   : > { %v6460_v43 = vpop.eup %6459 }
0x13e3   : > { %v4221_v45 = vsel %vm609_vm0, %v6460_v43, 0.0 }
0x13e6   : > { %v6462_v48 = vpop.eup %6461 }
0x13e7   : > { %v4224_v50 = vsel %vm609_vm0, %v6462_v48, 0.0 }
0x13f0   : > { %6315 = vrot.lane.b32.xlu1 %v7117_v47, %s7510_s28 }
0x13f4   : > { %6320 = vrot.lane.b32.xlu1 %v7107_v42, %s7511_s29 }
0x13f6   : > { %6310 = vrot.lane.b32.xlu0 %v7107_v42, %s7510_s28 }
0x13f8   : > { %6325 = vrot.lane.b32.xlu1 %v7117_v47, %s7511_s29 }
0x1415   : > { %4222 = vadd.xlane.f32.xlu0 %v4221_v45 }
0x141c   : > { %4225 = vadd.xlane.f32.xlu1 %v4224_v50 }
0x142b   : > { %4344 = vrot.lane.b32.xlu0 %v7101_v41, %s7512_s1 }
0x142d   : > { %4346 = vrot.lane.b32.xlu1 %v7099_v37, %s7512_s1 }
0x142f   : > { %4348 = vrot.lane.b32.xlu0 %v7113_v46, %s7512_s1 }
0x1431   : > { %4350 = vrot.lane.b32.xlu1 %v7111_v44, %s7512_s1  ;;  %s602_s1 = scalar_lea.vmem %s7479_s19, %s7518_s27 }
0x146c   : > { %v4220_v0 = vpop.xlane.xlu1 %4219 }
0x146d   : > { %v4217_v52 = vpop.xlane.xlu0 %4216 }
0x146e   : > { %6463 = vrcp.f32 %v4217_v52 }
0x146f   : > { %6465 = vrcp.f32 %v4220_v0 }
0x1470   : > { %v6316_v53 = vpop.permute.xlu1 %6315 }
0x1471   : > { %v6311_v54 = vpop.permute.xlu0 %6310  ;;  %v6318_v55 = vunpack.i.h.bf16 %v6316_v53  ;;  %v6317_v56 = vunpack.i.l.bf16 %v6316_v53 }
0x1472   : > { %v6313_v57 = vunpack.i.h.bf16 %v6311_v54  ;;  %v6312_v58 = vunpack.i.l.bf16 %v6311_v54 }
0x1473   : > { %v6179_v62 = vpack.c.bf16 %v6318_v55, %v6317_v56 }
0x1474   : > { %v6175_v60 = vpack.c.bf16 %v6313_v57, %v6312_v58  ;;  %v6321_v61 = vpop.permute.xlu1 %6320 }
0x1475   : > { %v6323_v63 = vunpack.i.h.bf16 %v6321_v61  ;;  %v6322_v49 = vunpack.i.l.bf16 %v6321_v61 }
0x1476   : > { %6176 = vmatprep.subr.bf16.mxu1 %v6175_v60 }
0x1477   : > { %6178 = vmatpush3.bf16.msra.mxu1 %v6175_v60  ;;  %v6183_v6 = vpack.c.bf16 %v6323_v63, %v6322_v49 }
0x1478   : > { %v6464_v1 = vpop.eup %6463  ;;  %6180 = vmatprep.subr.bf16.mxu1 %v6179_v62  ;;  %v6326_v13 = vpop.permute.xlu1 %6325 }
0x1479   : > { %v6466_v2 = vpop.eup %6465  ;;  %v4231_v4 = vmul.f32 %v6464_v1, %v6458_v34  ;;  %v6328_v16 = vunpack.i.h.bf16 %v6326_v13  ;;  %v6327_v14 = vunpack.i.l.bf16 %v6326_v13 }
0x147a   : > { %v4232_v12 = vmul.f32 %v6466_v2, %v6456_v29 }
0x147b   : > { %6182 = vmatpush3.bf16.msra.mxu1 %v6179_v62  ;;  %6007 = vmatprep.mubr.msk.f32.mxu1 %vm609_vm0, %v4231_v4  ;;  %v6189_v17 = vpack.c.bf16 %v6328_v16, %v6327_v14 }
0x147c   : > { %6185 = vmatprep.subr.msk.bf16.mxu1 %vm7123_vm5, %v6183_v6 }
0x147e   : > { %6008 = vmatmul.mubr.msk.f32.vlgmr.msra.gmra.mrb[40].mxu1 %vm609_vm0, %v4232_v12 }
0x1484   : > { %6188 = vmatpush3.bf16.xpose.msk.msra.mxu1 %vm7123_vm5, %v6183_v6 }
0x1485   : > { %6191 = vmatprep.subr.msk.bf16.mxu1 %vm7123_vm5, %v6189_v17 }
0x148c   : > { %6194 = vmatpush3.bf16.xpose.msk.msra.mxu1 %vm7123_vm5, %v6189_v17 }
0x14a2   : > { %v4223_v18 = vpop.xlane.xlu0 %4222 }
0x14a3   : > { %6467 = vrcp.f32 %v4223_v18 }
0x14a6   : > { %v4345_v22 = vpop.permute.xlu0 %4344 }
0x14a9   : > { %v4226_v20 = vpop.xlane.xlu1 %4225 }
0x14aa   : > { %6469 = vrcp.f32 %v4226_v20  ;;  %v4349_v25 = vpop.permute.xlu0 %4348 }
0x14ad   : > { %v6468_v19 = vpop.eup %6467  ;;  %v4347_v24 = vpop.permute.xlu1 %4346 }
0x14ae   : > { %v4233_v15 = vmul.f32 %v6468_v19, %v6460_v43 }
0x14b0   : > { %6010 = vmatprep.mubr.msk.f32.mxu1 %vm609_vm0, %v4233_v15 }
0x14b1   : > { %v4351_v26 = vpop.permute.xlu1 %4350 }
0x14b4   : > { %v6470_v21 = vpop.eup %6469 }
0x14b5   : > { %v4234_v23 = vmul.f32 %v6470_v21, %v6462_v48 }
0x14b7   : > { %6011 = vmatmul.mubr.msk.f32.gmra.mrb[42].mxu1 %vm609_vm0, %v4234_v23 }
0x14b8   : > { %6021 = vmatprep.mubr.msk.f32.mxu1 %vm794_vm2, %v4345_v22 }
0x14bb   : > { %6022 = vmatmul.mubr.msk.f32.vlgmr.msra.gmra.mrb[44].mxu1 %vm794_vm2, %v4347_v24 }
0x14bc   : > { %6024 = vmatprep.mubr.msk.f32.mxu1 %vm794_vm2, %v4349_v25 }
0x14bf   : > { %6025 = vmatmul.mubr.msk.f32.gmra.mrb[46].mxu1 %vm794_vm2, %v4351_v26 }
0x1551   : > { %v7229_v28 = vpop.f32.mrb[40].mxu1 }
0x1552   : > { %v7231_v31 = vpop.f32.mrb[41].mxu1 }
0x158a   : > { %v7233_v32 = vpop.f32.mrb[42].mxu1 }
0x158b   : > { %v7235_v29 = vpop.f32.mrb[43].mxu1 }
0x158e   : > { %v6023_v34 = vpop.f32.mrb[44].mxu1 }
0x158f   : > { %v4462_v27 = vmul.f32 0.35355338, %v6023_v34  ;;  %v4442_v30 = vpop.f32.mrb[45].mxu1 }
0x1590   : > { %v4461_v35 = vmul.f32 0.35355338, %v4442_v30 }
0x1591   : > { %v4468_v3 = vsel %vm609_vm0, %v4462_v27, -inf }
0x1592   : > { %4469 = vmax.xlane.f32.xlu1 %v4468_v3  ;;  %v6026_v8 = vpop.f32.mrb[46].mxu1  ;;  %v4465_v9 = vsel %vm609_vm0, %v4461_v35, -inf }
0x1593   : > { %4466 = vmax.xlane.f32.xlu0 %v4465_v9  ;;  %v4452_v40 = vpop.f32.mrb[47].mxu1  ;;  %v4464_v43 = vmul.f32 0.35355338, %v6026_v8 }
0x1594   : > { %v4463_v39 = vmul.f32 0.35355338, %v4452_v40 }
0x1595   : > { %v4474_v48 = vsel %vm609_vm0, %v4464_v43, -inf }
0x1596   : > { %v4471_v45 = vsel %vm609_vm0, %v4463_v39, -inf }
0x1597   : > { %4472 = vmax.xlane.f32.xlu0 %v4471_v45 }
0x159b   : > { %4475 = vmax.xlane.f32.xlu0 %v4474_v48 }
0x161f   : > { %v4470_v50 = vpop.xlane.xlu1 %4469 }
0x1620   : > { %v4478_v0 = vsub.f32 %v4462_v27, %v4470_v50  ;;  %v4467_v52 = vpop.xlane.xlu0 %4466 }
0x1621   : > { %v4477_v53 = vsub.f32 %v4461_v35, %v4467_v52 }
0x1622   : > { %v4483_v54 = vmul.f32 1.442695, %v4478_v0 }
0x1623   : > { %v4481_v55 = vmul.f32 1.442695, %v4477_v53 }
0x1624   : > { %6471 = vpow2.f32 %v4483_v54  ;;  %v4473_v61 = vpop.xlane.xlu0 %4472 }
0x1625   : > { %6473 = vpow2.f32 %v4481_v55  ;;  %v4479_v62 = vsub.f32 %v4463_v39, %v4473_v61 }
0x1627   : > { %v4485_v63 = vmul.f32 1.442695, %v4479_v62 }
0x1628   : > { %v4476_v49 = vpop.xlane.xlu0 %4475 }
0x1629   : > { %v4480_v1 = vsub.f32 %v4464_v43, %v4476_v49  ;;  %6475 = vpow2.f32 %v4485_v63 }
0x162b   : > { %v4487_v2 = vmul.f32 1.442695, %v4480_v1 }
0x162d   : > { %6477 = vpow2.f32 %v4487_v2 }
0x162e   : > { %v6472_v56 = vpop.eup %6471 }
0x162f   : > { %v6474_v57 = vpop.eup %6473  ;;  %v4492_v58 = vsel %vm609_vm0, %v6472_v56, 0.0 }
0x1630   : > { %4493 = vadd.xlane.f32.xlu1 %v4492_v58  ;;  %v4489_v60 = vsel %vm609_vm0, %v6474_v57, 0.0 }
0x1631   : > { %4490 = vadd.xlane.f32.xlu0 %v4489_v60 }
0x1633   : > { %v6476_v4 = vpop.eup %6475 }
0x1634   : > { %v4495_v6 = vsel %vm609_vm0, %v6476_v4, 0.0 }
0x1637   : > { %v6478_v12 = vpop.eup %6477 }
0x1638   : > { %v4498_v13 = vsel %vm609_vm0, %v6478_v12, 0.0 }
0x1641   : > { %6335 = vrot.lane.b32.xlu1 %v7117_v47, %s7513_s2 }
0x1645   : > { %6340 = vrot.lane.b32.xlu1 %v7107_v42, %s7514_s22 }
0x1647   : > { %6330 = vrot.lane.b32.xlu0 %v7107_v42, %s7513_s2 }
0x1649   : > { %6345 = vrot.lane.b32.xlu1 %v7117_v47, %s7514_s22 }
0x1666   : > { %4496 = vadd.xlane.f32.xlu0 %v4495_v6 }
0x166d   : > { %4499 = vadd.xlane.f32.xlu1 %v4498_v13 }
0x167c   : > { %4618 = vrot.lane.b32.xlu0 %v7101_v41, %s7515_s23 }
0x167e   : > { %4620 = vrot.lane.b32.xlu1 %v7099_v37, %s7515_s23 }
0x1680   : > { %4622 = vrot.lane.b32.xlu0 %v7113_v46, %s7515_s23 }
0x1682   : > { %4624 = vrot.lane.b32.xlu1 %v7111_v44, %s7515_s23 }
0x16bd   : > { %v4494_v16 = vpop.xlane.xlu1 %4493 }
0x16be   : > { %v4491_v14 = vpop.xlane.xlu0 %4490 }
0x16bf   : > { %6479 = vrcp.f32 %v4491_v14 }
0x16c0   : > { %6481 = vrcp.f32 %v4494_v16 }
0x16c1   : > { %v6336_v17 = vpop.permute.xlu1 %6335 }
0x16c2   : > { %v6331_v18 = vpop.permute.xlu0 %6330  ;;  %v6338_v20 = vunpack.i.h.bf16 %v6336_v17  ;;  %v6337_v19 = vunpack.i.l.bf16 %v6336_v17 }
0x16c3   : > { %v6333_v15 = vunpack.i.h.bf16 %v6331_v18  ;;  %v6332_v21 = vunpack.i.l.bf16 %v6331_v18 }
0x16c4   : > { %v6199_v23 = vpack.c.bf16 %v6338_v20, %v6337_v19 }
0x16c5   : > { %v6195_v41 = vpack.c.bf16 %v6333_v15, %v6332_v21  ;;  %v6341_v22 = vpop.permute.xlu1 %6340 }
0x16c6   : > { %v6343_v37 = vunpack.i.h.bf16 %v6341_v22  ;;  %v6342_v24 = vunpack.i.l.bf16 %v6341_v22 }
0x16c7   : > { %6196 = vmatprep.subr.bf16.mxu0 %v6195_v41 }
0x16c8   : > { %6198 = vmatpush3.bf16.msra.mxu0 %v6195_v41  ;;  %v6203_v26 = vpack.c.bf16 %v6343_v37, %v6342_v24 }
0x16c9   : > { %v6480_v46 = vpop.eup %6479  ;;  %6200 = vmatprep.subr.bf16.mxu0 %v6199_v23  ;;  %v6346_v27 = vpop.permute.xlu1 %6345 }
0x16ca   : > { %v6482_v44 = vpop.eup %6481  ;;  %v4505_v25 = vmul.f32 %v6480_v46, %v6474_v57  ;;  %v6348_v30 = vunpack.i.h.bf16 %v6346_v27  ;;  %v6347_v35 = vunpack.i.l.bf16 %v6346_v27 }
0x16cb   : > { %v4506_v34 = vmul.f32 %v6482_v44, %v6472_v56 }
0x16cc   : > { %6202 = vmatpush3.bf16.msra.mxu0 %v6199_v23  ;;  %6035 = vmatprep.mubr.msk.f32.mxu0 %vm609_vm0, %v4505_v25  ;;  %v6209_v3 = vpack.c.bf16 %v6348_v30, %v6347_v35 }
0x16cd   : > { %6205 = vmatprep.subr.msk.bf16.mxu0 %vm7123_vm5, %v6203_v26 }
0x16cf   : > { %6036 = vmatmul.mubr.msk.f32.vlgmr.msra.gmra.mrb[48].mxu0 %vm609_vm0, %v4506_v34 }
0x16d5   : > { %6208 = vmatpush3.bf16.xpose.msk.msra.mxu0 %vm7123_vm5, %v6203_v26 }
0x16d6   : > { %6211 = vmatprep.subr.msk.bf16.mxu0 %vm7123_vm5, %v6209_v3 }
0x16dd   : > { %6214 = vmatpush3.bf16.xpose.msk.msra.mxu0 %vm7123_vm5, %v6209_v3 }
0x16f3   : > { %v4497_v8 = vpop.xlane.xlu0 %4496 }
0x16f4   : > { %6483 = vrcp.f32 %v4497_v8 }
0x16f7   : > { %v4619_v45 = vpop.permute.xlu0 %4618 }
0x16fa   : > { %v4500_v9 = vpop.xlane.xlu1 %4499 }
0x16fb   : > { %6485 = vrcp.f32 %v4500_v9  ;;  %v4623_v0 = vpop.permute.xlu0 %4622 }
0x16fe   : > { %v6484_v40 = vpop.eup %6483  ;;  %v4621_v50 = vpop.permute.xlu1 %4620 }
0x16ff   : > { %v4507_v39 = vmul.f32 %v6484_v40, %v6476_v4 }
0x1701   : > { %6038 = vmatprep.mubr.msk.f32.mxu0 %vm609_vm0, %v4507_v39 }
0x1702   : > { %v4625_v51 = vpop.permute.xlu1 %4624 }
0x1705   : > { %v6486_v43 = vpop.eup %6485 }
0x1706   : > { %v4508_v48 = vmul.f32 %v6486_v43, %v6478_v12 }
0x1708   : > { %6039 = vmatmul.mubr.msk.f32.gmra.mrb[50].mxu0 %vm609_vm0, %v4508_v48 }
0x1709   : > { %6049 = vmatprep.mubr.msk.f32.mxu0 %vm794_vm2, %v4619_v45 }
0x170c   : > { %6050 = vmatmul.mubr.msk.f32.vlgmr.msra.gmra.mrb[52].mxu0 %vm794_vm2, %v4621_v50 }
0x170d   : > { %6052 = vmatprep.mubr.msk.f32.mxu0 %vm794_vm2, %v4623_v0 }
0x1710   : > { %6053 = vmatmul.mubr.msk.f32.gmra.mrb[54].mxu0 %vm794_vm2, %v4625_v51 }
0x17a2   : > { %v6037_v52 = vpop.f32.mrb[48].mxu0 }
0x17a3   : > { %v4599_v53 = vpop.f32.mrb[49].mxu0 }
0x17db   : > { %v6040_v54 = vpop.f32.mrb[50].mxu0 }
0x17dc   : > { %v4609_v55 = vpop.f32.mrb[51].mxu0 }
0x17df   : > { %v6051_v56 = vpop.f32.mrb[52].mxu0 }
0x17e0   : > { %v4736_v57 = vmul.f32 0.35355338, %v6051_v56  ;;  %v4716_v58 = vpop.f32.mrb[53].mxu0  ;;  %v4955_v56 = vld [vmem:[%s7473_s13 + $0x18] sm:$0xff] }
0x17e1   : > { %v4735_v60 = vmul.f32 0.35355338, %v4716_v58 }
0x17e2   : > { %v4742_v61 = vsel %vm609_vm0, %v4736_v57, -inf }
0x17e3   : > { %4743 = vmax.xlane.f32.xlu1 %v4742_v61  ;;  %v6054_v62 = vpop.f32.mrb[54].mxu0  ;;  %v4739_v63 = vsel %vm609_vm0, %v4735_v60, -inf }
0x17e4   : > { %4740 = vmax.xlane.f32.xlu0 %v4739_v63  ;;  %v4726_v49 = vpop.f32.mrb[55].mxu0  ;;  %v4738_v2 = vmul.f32 0.35355338, %v6054_v62 }
0x17e5   : > { %v4737_v1 = vmul.f32 0.35355338, %v4726_v49 }
0x17e6   : > { %v4748_v6 = vsel %vm609_vm0, %v4738_v2, -inf }
0x17e7   : > { %v4745_v4 = vsel %vm609_vm0, %v4737_v1, -inf }
0x17e8   : > { %4746 = vmax.xlane.f32.xlu0 %v4745_v4 }
0x17ec   : > { %4749 = vmax.xlane.f32.xlu0 %v4748_v6 }
0x1870   : > { %v4744_v12 = vpop.xlane.xlu1 %4743 }
0x1871   : > { %v4752_v13 = vsub.f32 %v4736_v57, %v4744_v12  ;;  %v4741_v16 = vpop.xlane.xlu0 %4740 }
0x1872   : > { %v4751_v14 = vsub.f32 %v4735_v60, %v4741_v16 }
0x1873   : > { %v4757_v17 = vmul.f32 1.442695, %v4752_v13 }
0x1874   : > { %v4755_v18 = vmul.f32 1.442695, %v4751_v14 }
0x1875   : > { %6487 = vpow2.f32 %v4757_v17  ;;  %v4747_v20 = vpop.xlane.xlu0 %4746 }
0x1876   : > { %6489 = vpow2.f32 %v4755_v18  ;;  %v4753_v19 = vsub.f32 %v4737_v1, %v4747_v20 }
0x1878   : > { %v4759_v15 = vmul.f32 1.442695, %v4753_v19 }
0x1879   : > { %v4750_v21 = vpop.xlane.xlu0 %4749 }
0x187a   : > { %6491 = vpow2.f32 %v4759_v15  ;;  %v4754_v41 = vsub.f32 %v4738_v2, %v4750_v21 }
0x187c   : > { %v4761_v22 = vmul.f32 1.442695, %v4754_v41 }
0x187e   : > { %6493 = vpow2.f32 %v4761_v22 }
0x187f   : > { %v6488_v23 = vpop.eup %6487 }
0x1880   : > { %v6490_v37 = vpop.eup %6489  ;;  %v4766_v24 = vsel %vm609_vm0, %v6488_v23, 0.0 }
0x1881   : > { %4767 = vadd.xlane.f32.xlu1 %v4766_v24  ;;  %v4763_v46 = vsel %vm609_vm0, %v6490_v37, 0.0 }
0x1882   : > { %4764 = vadd.xlane.f32.xlu0 %v4763_v46 }
0x1884   : > { %v6492_v44 = vpop.eup %6491 }
0x1885   : > { %v4769_v25 = vsel %vm609_vm0, %v6492_v44, 0.0 }
0x1886   : > { %4770 = vadd.xlane.f32.xlu0 %v4769_v25 }
0x1888   : > { %v6494_v26 = vpop.eup %6493 }
0x1889   : > { %v4772_v34 = vsel %vm609_vm0, %v6494_v26, 0.0 }
0x188a   : > { %4773 = vadd.xlane.f32.xlu1 %v4772_v34 }
0x189b   : > { %6355 = vrot.lane.b32.xlu1 %v7117_v47, %s7516_s24 }
0x189c   : > { %6350 = vrot.lane.b32.xlu0 %v7107_v42, %s7516_s24 }
0x189f   : > { %4896 = vrot.lane.b32.xlu1 %v7231_v31, %s7517_s25 }
0x18a0   : > { %4912 = vrot.lane.b32.xlu0 %v4599_v53, %s6537_s3  ;;  %v4953_v53 = vld [vmem:[%s7473_s13 + $0x8] sm:$0xff] }
0x18a3   : > { %4898 = vrot.lane.b32.xlu1 %v7229_v28, %s7517_s25 }
0x18a4   : > { %4900 = vrot.lane.b32.xlu0 %v7235_v29, %s7517_s25 }
0x18a7   : > { %4914 = vrot.lane.b32.xlu1 %v6037_v52, %s6537_s3  ;;  %v4952_v52 = vld [vmem:[%s7473_s13] sm:$0xff] }
0x18a8   : > { %4916 = vrot.lane.b32.xlu0 %v4609_v55, %s6537_s3  ;;  %v6223_v55 = vpack.c.bf16 %v4953_v53, %v4952_v52 }
0x18ab   : > { %4902 = vrot.lane.b32.xlu1 %v7233_v32, %s7517_s25 }
0x18af   : > { %4918 = vrot.lane.b32.xlu1 %v6040_v54, %s6537_s3  ;;  %v4954_v54 = vld [vmem:[%s7473_s13 + $0x10] sm:$0xff] }
0x18b0   : > { %v6227_v57 = vpack.c.bf16 %v4955_v56, %v4954_v54 }
0x190e   : > { %v4768_v47 = vpop.xlane.xlu1 %4767 }
0x190f   : > { %v4765_v42 = vpop.xlane.xlu0 %4764 }
0x1910   : > { %6495 = vrcp.f32 %v4765_v42 }
0x1911   : > { %6497 = vrcp.f32 %v4768_v47 }
0x1913   : > { %v4771_v31 = vpop.xlane.xlu0 %4770 }
0x1914   : > { %6499 = vrcp.f32 %v4771_v31 }
0x1917   : > { %v4774_v27 = vpop.xlane.xlu1 %4773  ;;  %v6351_v28 = vpop.permute.xlu0 %6350 }
0x1918   : > { %v6353_v30 = vunpack.i.h.bf16 %v6351_v28  ;;  %v6352_v35 = vunpack.i.l.bf16 %v6351_v28  ;;  %6501 = vrcp.f32 %v4774_v27 }
0x191a   : > { %v6496_v29 = vpop.eup %6495  ;;  %v6215_v3 = vpack.c.bf16 %v6353_v30, %v6352_v35 }
0x191b   : > { %v6356_v8 = vpop.permute.xlu1 %6355  ;;  %v4779_v9 = vmul.f32 %v6496_v29, %v6490_v37  ;;  %v6498_v43 = vpop.eup %6497 }
0x191c   : > { %v6358_v40 = vunpack.i.h.bf16 %v6356_v8  ;;  %v6357_v39 = vunpack.i.l.bf16 %v6356_v8  ;;  %6216 = vmatprep.subr.bf16.mxu1 %v6215_v3  ;;  %v4780_v48 = vmul.f32 %v6498_v43, %v6488_v23  ;;  %v4913_v2 = vpop.permute.xlu0 %4912 }
0x191d   : > { %6218 = vmatpush3.bf16.msra.mxu1 %v6215_v3  ;;  %6063 = vmatprep.mubr.msk.f32.mxu1 %vm609_vm0, %v4779_v9 }
0x191e   : > { %v6219_v32 = vpack.c.bf16 %v6358_v40, %v6357_v39  ;;  %v6500_v45 = vpop.eup %6499 }
0x191f   : > { %v4781_v0 = vmul.f32 %v6500_v45, %v6492_v44  ;;  %v4897_v63 = vpop.permute.xlu1 %4896 }
0x1920   : > { %6220 = vmatprep.subr.bf16.mxu1 %v6219_v32  ;;  %v4901_v6 = vpop.permute.xlu0 %4900  ;;  %v4940_v16 = vsel %vm794_vm2, %v7183_v7, %v4897_v63  ;;  %v5140_v63 = vld [vmem:[%s7475_s15 + $0x10] sm:$0xff] }
0x1921   : > { %6222 = vmatpush3.bf16.msra.mxu1 %v6219_v32  ;;  %v4944_v18 = vsel %vm3496_vm3, %v4940_v16, %v4913_v2  ;;  %v4942_v41 = vsel %vm794_vm2, %v7187_v11, %v4901_v6  ;;  %v5554_v11 = vld [vmem:[%s7474_s14] ss:$0 sm:$0xff]  ;;  %v5252_v6 = vld [vmem:[%s7477_s17 + $0x10] sm:$0xff] }
0x1922   : > { %v6502_v50 = vpop.eup %6501  ;;  %6224 = vmatprep.subr.bf16.mxu1 %v6223_v55  ;;  %v5250_v2 = vld [vmem:[%s7477_s17] sm:$0xff] }
0x1923   : > { %v4782_v51 = vmul.f32 %v6502_v50, %v6494_v26  ;;  %v4899_v49 = vpop.permute.xlu1 %4898 }
0x1924   : > { %6064 = vmatmul.mubr.msk.f32.vlgmr.msra.gmra.mrb[48].mxu1 %vm609_vm0, %v4780_v48  ;;  %v4917_v13 = vpop.permute.xlu0 %4916  ;;  %v4941_v17 = vsel %vm794_vm2, %v7181_v59, %v4899_v49  ;;  %v5141_v49 = vld [vmem:[%s7475_s15 + $0x18] sm:$0xff] }
0x1925   : > { %6066 = vmatprep.mubr.msk.f32.mxu1 %vm609_vm0, %v4781_v0  ;;  %6226 = vmatpush3.bf16.msra.mxu1 %v6223_v55  ;;  %v4946_v22 = vsel %vm3496_vm3, %v4942_v41, %v4917_v13  ;;  %v5253_v13 = vld [vmem:[%s7477_s17 + $0x18] sm:$0xff] }
0x1926   : > { %6228 = vmatprep.subr.bf16.mxu1 %v6227_v57  ;;  %v6243_v16 = vpack.c.bf16 %v5253_v13, %v5252_v6 }
0x1927   : > { %v4915_v1 = vpop.permute.xlu1 %4914 }
0x1928   : > { %6067 = vmatmul.mubr.msk.f32.gmra.mrb[50].mxu1 %vm609_vm0, %v4782_v51  ;;  %v4945_v19 = vsel %vm3496_vm3, %v4941_v17, %v4915_v1  ;;  %v6235_v1 = vpack.c.bf16 %v5141_v49, %v5140_v63  ;;  %v5255_v17 = vld [vmem:[%s7477_s17 + $0x28] sm:$0xff] }
0x1929   : > { %6230 = vmatpush3.bf16.msra.mxu1 %v6227_v57 }
0x192b   : > { %v4903_v4 = vpop.permute.xlu1 %4902 }
0x192c   : > { %v4943_v59 = vsel %vm794_vm2, %v7185_v10, %v4903_v4  ;;  %v5251_v4 = vld [vmem:[%s7477_s17 + $0x8] sm:$0xff] }
0x192f   : > { %v4919_v12 = vpop.permute.xlu1 %4918 }
0x1930   : > { %v4947_v37 = vsel %vm3496_vm3, %v4943_v59, %v4919_v12  ;;  %v6239_v12 = vpack.c.bf16 %v5251_v4, %v5250_v2 }
0x1932   : > { %6240 = vmatprep.subr.bf16.mxu1 %v6239_v12 }
0x19f7   : > { %v6065_v58 = vpop.f32.mrb[48].mxu1 }
0x19f8   : > { %4930 = vrot.lane.b32.xlu1 %v6065_v58, %s6538_s20  ;;  %v4873_v60 = vpop.f32.mrb[49].mxu1 }
0x19f9   : > { %4928 = vrot.lane.b32.xlu0 %v4873_v60, %s6538_s20  ;;  %v5138_v60 = vld [vmem:[%s7475_s15] sm:$0xff] }
0x19fb   : > { %v6068_v61 = vpop.f32.mrb[50].mxu1 }
0x19fc   : > { %4934 = vrot.lane.b32.xlu1 %v6068_v61, %s6538_s20  ;;  %v4883_v62 = vpop.f32.mrb[51].mxu1  ;;  %v5139_v61 = vld [vmem:[%s7475_s15 + $0x8] sm:$0xff] }
0x19fd   : > { %4932 = vrot.lane.b32.xlu0 %v4883_v62, %s6538_s20  ;;  %v6231_v62 = vpack.c.bf16 %v5139_v61, %v5138_v60 }
0x19ff   : > { %6232 = vmatprep.subr.bf16.mxu0 %v6231_v62 }
0x1a00   : > { %6234 = vmatpush3.bf16.msra.mxu0 %v6231_v62  ;;  %v5570_v62 = vld [vmem:[%s7478_s18] ss:$0 sm:$0xff] }
0x1a01   : > { %6236 = vmatprep.subr.bf16.mxu0 %v6235_v1 }
0x1a04   : > { %6238 = vmatpush3.bf16.msra.mxu0 %v6235_v1 }
0x1a6a   : > { %v4931_v14 = vpop.permute.xlu1 %4930 }
0x1a6b   : > { %v4929_v20 = vpop.permute.xlu0 %4928  ;;  %v4949_v21 = vsel %vm3501_vm4, %v4945_v19, %v4931_v14  ;;  %v5254_v14 = vld [vmem:[%s7477_s17 + $0x20] sm:$0xff] }
0x1a6c   : > { %v4948_v15 = vsel %vm3501_vm4, %v4944_v18, %v4929_v20  ;;  %v6247_v18 = vpack.c.bf16 %v5255_v17, %v5254_v14 }
0x1a6d   : > { %6077 = vmatprep.mubr.msk.f32.mxu1 %vm609_vm0, %v4948_v15 }
0x1a6e   : > { %6078 = vmatmul.mubr.msk.f32.vlgmr.msra.gmra.mrb[52].mxu1 %vm609_vm0, %v4949_v21  ;;  %v4935_v7 = vpop.permute.xlu1 %4934 }
0x1a6f   : > { %v4933_v23 = vpop.permute.xlu0 %4932  ;;  %v4951_v46 = vsel %vm3501_vm4, %v4947_v37, %v4935_v7  ;;  %6242 = vmatpush3.bf16.msra.mxu1 %v6239_v12 }
0x1a70   : > { %v4950_v24 = vsel %vm3501_vm4, %v4946_v22, %v4933_v23  ;;  %6244 = vmatprep.subr.bf16.mxu1 %v6243_v16 }
0x1a71   : > { %6080 = vmatprep.mubr.msk.f32.mxu1 %vm609_vm0, %v4950_v24 }
0x1a72   : > { %6081 = vmatmul.mubr.msk.f32.gmra.mrb[54].mxu1 %vm609_vm0, %v4951_v46 }
0x1a73   : > { %6246 = vmatpush3.bf16.msra.mxu1 %v6243_v16 }
0x1a74   : > { %6248 = vmatprep.subr.bf16.mxu1 %v6247_v18 }
0x1a77   : > { %6250 = vmatpush3.bf16.msra.mxu1 %v6247_v18 }
0x1b41   : > { %v6079_v44 = vpop.f32.mrb[52].mxu1 }
0x1b42   : > { %v5047_v25 = vadd.f32 %v6079_v44, %v5554_v11  ;;  %v5041_v26 = vpop.f32.mrb[53].mxu1  ;;  %v5559_v44 = vld [vmem:[%s7465_s5] ss:$0 sm:$0xff] }
0x1b43   : > { %v5042_v34 = vadd.f32 %v5554_v11, %v5041_v26 }
0x1b44   : > { %v7345_v10 = vadd.f32 %v5047_v25, %v7047_v5 }
0x1b45   : > { %v7348_v42 = vadd.f32 %v5042_v34, %v7050_v33  ;;  %v6082_v47 = vpop.f32.mrb[54].mxu1 }
0x1b46   : > { %v5051_v31 = vpop.f32.mrb[55].mxu1  ;;  %v5069_v27 = vsel %vm609_vm0, %v7345_v10, 0.0  ;;  %v5057_v28 = vadd.f32 %v6082_v47, %v5554_v11  ;;  %v5560_v47 = vld [vmem:[%s7466_s6] ss:$0 sm:$0xff] }
0x1b47   : > { %v5052_v30 = vadd.f32 %v5554_v11, %v5051_v31  ;;  %5070 = vadd.xlane.f32.xlu1 %v5069_v27  ;;  %v5066_v35 = vsel %vm609_vm0, %v7348_v42, 0.0 }
0x1b48   : > { %5067 = vadd.xlane.f32.xlu0 %v5066_v35  ;;  %v7358_v5 = vadd.f32 %v5057_v28, %v7060_v36 }
0x1b49   : > { %v7355_v29 = vadd.f32 %v5052_v30, %v7057_v38 }
0x1b4a   : > { %v5075_v3 = vsel %vm609_vm0, %v7358_v5, 0.0 }
0x1b4b   : > { %v5072_v33 = vsel %vm609_vm0, %v7355_v29, 0.0 }
0x1b4c   : > { %5073 = vadd.xlane.f32.xlu0 %v5072_v33 }
0x1b50   : > { %5076 = vadd.xlane.f32.xlu0 %v5075_v3 }
0x1bd4   : > { %v5071_v8 = vpop.xlane.xlu1 %5070 }
0x1bd5   : > { %v5079_v9 = vmul.f32 0.03125, %v5071_v8  ;;  %v5068_v40 = vpop.xlane.xlu0 %5067 }
0x1bd6   : > { %v5078_v39 = vmul.f32 0.03125, %v5068_v40 }
0x1bd7   : > { %v7365_v32 = vsub.f32 %v7345_v10, %v5079_v9 }
0x1bd8   : > { %v7368_v38 = vsub.f32 %v7348_v42, %v5078_v39 }
0x1bd9   : > { %v5074_v36 = vpop.xlane.xlu0 %5073  ;;  %v5087_v43 = vmul.f32 %v7365_v32, %v7365_v32 }
0x1bda   : > { %v5080_v45 = vmul.f32 0.03125, %v5074_v36  ;;  %v5086_v48 = vmul.f32 %v7368_v38, %v7368_v38  ;;  %v5257_v36 = vld [vmem:[%s7477_s17 + $0x38] sm:$0xff] }
0x1bdb   : > { %v5093_v50 = vsel %vm609_vm0, %v5087_v43, 0.0 }
0x1bdc   : > { %v7376_v0 = vsub.f32 %v7355_v29, %v5080_v45  ;;  %5094 = vadd.xlane.f32.xlu1 %v5093_v50  ;;  %v5090_v51 = vsel %vm609_vm0, %v5086_v48, 0.0  ;;  %v5561_v45 = vld [vmem:[%s7476_s16] ss:$0 sm:$0xff] }
0x1bdd   : > { %5091 = vadd.xlane.f32.xlu0 %v5090_v51  ;;  %v5077_v52 = vpop.xlane.xlu0 %5076 }
0x1bde   : > { %v5081_v53 = vmul.f32 0.03125, %v5077_v52  ;;  %v5088_v54 = vmul.f32 %v7376_v0, %v7376_v0 }
0x1be0   : > { %v7382_v55 = vsub.f32 %v7358_v5, %v5081_v53  ;;  %v5096_v56 = vsel %vm609_vm0, %v5088_v54, 0.0 }
0x1be1   : > { %5097 = vadd.xlane.f32.xlu0 %v5096_v56 }
0x1be2   : > { %v5089_v57 = vmul.f32 %v7382_v55, %v7382_v55 }
0x1be4   : > { %v5099_v58 = vsel %vm609_vm0, %v5089_v57, 0.0 }
0x1be5   : > { %5100 = vadd.xlane.f32.xlu1 %v5099_v58 }
0x1c69   : > { %v5095_v20 = vpop.xlane.xlu1 %5094 }
0x1c6a   : > { %v5103_v19 = vmul.f32 0.03125, %v5095_v20  ;;  %v5092_v15 = vpop.xlane.xlu0 %5091 }
0x1c6b   : > { %v5102_v21 = vmul.f32 0.03125, %v5092_v15 }
0x1c6c   : > { %v5107_v41 = vadd.f32 1e-05, %v5103_v19 }
0x1c6d   : > { %v5106_v7 = vadd.f32 1e-05, %v5102_v21 }
0x1c6e   : > { %6503 = vrsqrt.f32 %v5107_v41  ;;  %v5098_v22 = vpop.xlane.xlu0 %5097 }
0x1c6f   : > { %6505 = vrsqrt.f32 %v5106_v7  ;;  %v5104_v59 = vmul.f32 0.03125, %v5098_v22 }
0x1c71   : > { %v5108_v23 = vadd.f32 1e-05, %v5104_v59 }
0x1c72   : > { %v5101_v37 = vpop.xlane.xlu1 %5100 }
0x1c73   : > { %6507 = vrsqrt.f32 %v5108_v23  ;;  %v5105_v24 = vmul.f32 0.03125, %v5101_v37 }
0x1c75   : > { %v5109_v46 = vadd.f32 1e-05, %v5105_v24 }
0x1c77   : > { %6509 = vrsqrt.f32 %v5109_v46 }
0x1c78   : > { %v6504_v11 = vpop.eup %6503 }
0x1c79   : > { %v6506_v25 = vpop.eup %6505  ;;  %v5115_v26 = vmul.f32 %v6504_v11, %v7365_v32 }
0x1c7a   : > { %v5114_v34 = vmul.f32 %v6506_v25, %v7368_v38  ;;  %v5256_v38 = vld [vmem:[%s7477_s17 + $0x30] sm:$0xff] }
0x1c7b   : > { %v5125_v31 = vmul.f32 %v5559_v44, %v5115_v26  ;;  %v6251_v43 = vpack.c.bf16 %v5257_v36, %v5256_v38 }
0x1c7c   : > { %v5124_v27 = vmul.f32 %v5559_v44, %v5114_v34 }
0x1c7d   : > { %v6508_v28 = vpop.eup %6507  ;;  %v5135_v33 = vadd.f32 %v5560_v47, %v5125_v31  ;;  %6252 = vmatprep.subr.bf16.mxu1 %v6251_v43 }
0x1c7e   : > { %v5134_v30 = vadd.f32 %v5560_v47, %v5124_v27  ;;  %v5116_v35 = vmul.f32 %v6508_v28, %v7376_v0  ;;  %6254 = vmatpush3.bf16.msra.mxu1 %v6251_v43 }
0x1c80   : > { %6091 = vmatprep.mubr.msk.f32.mxu0 %vm609_vm0, %v5134_v30  ;;  %v5126_v3 = vmul.f32 %v5559_v44, %v5116_v35 }
0x1c81   : > { %v6510_v8 = vpop.eup %6509  ;;  %6092 = vmatmul.mubr.msk.f32.vlgmr.msra.gmra.mrb[56].mxu0 %vm609_vm0, %v5135_v33 }
0x1c82   : > { %v5136_v9 = vadd.f32 %v5560_v47, %v5126_v3  ;;  %v5117_v40 = vmul.f32 %v6510_v8, %v7382_v55 }
0x1c84   : > { %6094 = vmatprep.mubr.msk.f32.mxu0 %vm609_vm0, %v5136_v9  ;;  %v5127_v39 = vmul.f32 %v5559_v44, %v5117_v40 }
0x1c86   : > { %v5137_v32 = vadd.f32 %v5560_v47, %v5127_v39 }
0x1c88   : > { %6095 = vmatmul.mubr.msk.f32.gmra.mrb[58].mxu0 %vm609_vm0, %v5137_v32 }
0x1d54   : > { %v6093_v48 = vpop.f32.mrb[56].mxu0 }
0x1d55   : > { %v5233_v50 = vadd.f32 %v6093_v48, %v5561_v45  ;;  %v5227_v0 = vpop.f32.mrb[57].mxu0 }
0x1d56   : > { %v5228_v51 = vadd.f32 %v5561_v45, %v5227_v0 }
0x1d57   : > { %v5247_v53 = vmax.f32 %v5233_v50, 0.0 }
0x1d58   : > { %v5246_v52 = vmax.f32 %v5228_v51, 0.0 }
0x1d5a   : > { %6113 = vmatprep.mubr.msk.f32.mxu1 %vm5258_vm6, %v5246_v52 }
0x1d5b   : > { %v6096_v54 = vpop.f32.mrb[58].mxu0  ;;  %6114 = vmatmul.mubr.msk.f32.vlgmr.msra.gmra.mrb[56].mxu1 %vm5258_vm6, %v5247_v53 }
0x1d5c   : > { %v5243_v55 = vadd.f32 %v6096_v54, %v5561_v45  ;;  %v5237_v56 = vpop.f32.mrb[59].mxu0 }
0x1d5d   : > { %v5238_v57 = vadd.f32 %v5561_v45, %v5237_v56 }
0x1d5e   : > { %v5249_v60 = vmax.f32 %v5243_v55, 0.0 }
0x1d5f   : > { %v5248_v58 = vmax.f32 %v5238_v57, 0.0 }
0x1d61   : > { %6116 = vmatprep.mubr.msk.f32.mxu1 %vm5258_vm6, %v5248_v58 }
0x1d62   : > { %6117 = vmatmul.mubr.msk.f32.gmra.mrb[58].mxu1 %vm5258_vm6, %v5249_v60 }
0x1e2e   : > { %v6115_v61 = vpop.f32.mrb[56].mxu1 }
0x1e2f   : > { %v5357_v63 = vadd.f32 %v6115_v61, %v7345_v10  ;;  %v5337_v49 = vpop.f32.mrb[57].mxu1 }
0x1e30   : > { %v5356_v1 = vadd.f32 %v5337_v49, %v7348_v42 }
0x1e31   : > { %v5368_v2 = vadd.f32 %v5570_v62, %v5357_v63 }
0x1e32   : > { %v5367_v4 = vadd.f32 %v5570_v62, %v5356_v1 }
0x1e33   : > { %5372 = vst.msk [vmem:[%s602_s1 + $0x8] sm:$0xff] %vm609_vm0, %v5368_v2 }
0x1e34   : > { %5371 = vst.msk [vmem:[%s602_s1] sm:$0xff] %vm609_vm0, %v5367_v4 }
0x1e35   : > { %v6118_v6 = vpop.f32.mrb[58].mxu1 }
0x1e36   : > { %v5359_v12 = vadd.f32 %v6118_v6, %v7358_v5  ;;  %v5347_v13 = vpop.f32.mrb[59].mxu1 }
0x1e37   : > { %v5358_v10 = vadd.f32 %v5347_v13, %v7355_v29 }
0x1e38   : > { %v5370_v16 = vadd.f32 %v5570_v62, %v5359_v12 }
0x1e39   : > { %v5369_v14 = vadd.f32 %v5570_v62, %v5358_v10 }
0x1e3a   : > { %5374 = vst.msk [vmem:[%s602_s1 + $0x18] sm:$0xff] %vm609_vm0, %v5370_v16 }
0x1e3b   : > { %5373 = vst.msk [vmem:[%s602_s1 + $0x10] sm:$0xff] %vm609_vm0, %v5369_v14 }
0x1e3c PF: > { %s29_s0 = sadd.s32 1, %s6521_s0  }
0x1e3d   : > { %p26_p4 = scmp.ge.s32.totalorder %s29_s0, 4  }
0x1e3f   :  { %28 = sbr.rel (!%p26_p4) target bundleno = 5 (0x5), region = 126 }

</bundles_post_ra>
